<compile_context>
chip_gen: v7x
topology: tpu7x:2x2x1
jax: 0.10.0
libtpu: 0.0.40
codegen_flags: <defaults>
</compile_context>

<pallas_src>
import functools

import jax
import jax.numpy as jnp
from jax.experimental import pallas as pl
from jax.experimental.pallas import tpu as pltpu

PAD = 0
LN_EPS = 1e-12

CFG = dict(
    vocab_size=64,
    dim_hidden=32,
    num_attention_heads=4,
    intermediate_size=128,
    num_hidden_layers_decoder=2,
    max_position=64,
    num_category=4,
    pos_attention=False,
    enhance_input=0,
    watch=0,
    is_FCNet=False,
    is_BCNet=False,
    decoding_type="NARFormer",
)

_VMEM = pl.BlockSpec(memory_space=pltpu.MemorySpace.VMEM)


# ----------------------------- fused decoder kernel -----------------------------

def _decoder_kernel(nh,
                    tgt_ref, cat_ref, enc_ref, emb_ref, wet_ref,
                    wmat_ref, w2_ref, vec_ref,
                    seq_ref, logits_ref):
    f32, bf16 = jnp.float32, jnp.bfloat16
    B, L = tgt_ref.shape
    H, V = wet_ref.shape
    ROWS = emb_ref.shape[0]                      # V + P + 8 (cat) + 8 (ln_g) + 8 (ln_b)
    NL = wmat_ref.shape[0]
    I = w2_ref.shape[1]
    d = H // nh

    # static lane offsets inside the packed per-layer weight slab (lane dim = 8H + I)
    O_QKV, O_SO, O_CQ, O_CKV, O_CO, O_F1 = 0, 3 * H, 4 * H, 5 * H, 7 * H, 8 * H

    ids = tgt_ref[...]                                               # (B, L) int32
    key_bias = jnp.where(ids == PAD, -1e9, 0.0).astype(f32)          # (B, L)
    # replicate the key-padding bias per head once (heads are folded into axis 0 below)
    key_bias_h = jnp.concatenate([key_bias] * nh, axis=0)[:, None, :]  # (nh*B, 1, L)
    non_pad = (ids != PAD).astype(f32)[:, :, None]                   # (B, L, 1)

    def ln(x, g, b):
        mu = jnp.mean(x, axis=-1, keepdims=True)
        var = jnp.mean(jnp.square(x - mu), axis=-1, keepdims=True)
        return (x - mu) * jax.lax.rsqrt(var + LN_EPS) * g + b

    def mm(x, w):                                                    # (B,S,K)x(K,N)->(B,S,N)
        return jax.lax.dot_general(x, w, (((2,), (0,)), ((), ())),
                                   preferred_element_type=f32)

    def heads_split(x):                                              # (B,S,H)->(nh*B,S,d)
        return jnp.concatenate([x[:, :, h * d:(h + 1) * d] for h in range(nh)], axis=0)

    def heads_merge(x, b):                                           # (nh*B,S,d)->(B,S,H)
        return jnp.concatenate([x[h * b:(h + 1) * b] for h in range(nh)], axis=-1)

    def attention(q, k, v, wo, bo, bias):
        # q:(B,Lq,H) k,v:(B,Lk,H) bf16; wo:(H,H) bf16; bo:(1,H) f32; bias:(nh*B,1,Lk)|None
        b = q.shape[0]
        qh, kh, vh = heads_split(q), heads_split(k), heads_split(v)  # (nh*B, *, d)
        s = jnp.einsum('bqd,bkd->bqk', qh, kh, preferred_element_type=f32)
        if bias is not None:
            s = s + bias
        s = s - jnp.max(s, axis=-1, keepdims=True)
        e = jnp.exp(s)
        p = e * pl.reciprocal(jnp.sum(e, axis=-1, keepdims=True), approx=True)
        ctx = jnp.einsum('bqk,bkd->bqd', p.astype(bf16), vh,
                         preferred_element_type=f32)                 # (nh*B, Lq, d)
        ctx = heads_merge(ctx, b).astype(bf16)                       # (B, Lq, H)
        return mm(ctx, wo) + bo                                      # single output proj

    # ---- embeddings: word + position + category fused into ONE 3-hot matmul, then LN ----
    iota_e = jax.lax.broadcasted_iota(jnp.int32, (B, L, ROWS), 2)
    pos_ids = V + jax.lax.broadcasted_iota(jnp.int32, (B, L), 1)     # rows [V, V+P)
    cat_ids = (ROWS - 24) + cat_ref[...]                             # rows [V+P, V+P+C)
    hot = ((iota_e == ids[:, :, None]) |
           (iota_e == pos_ids[:, :, None]) |
           (iota_e == cat_ids[:, :, None])).astype(f32)              # (B, L, ROWS)
    emb_g = emb_ref[ROWS - 16:ROWS - 15, :]                          # (1, H)
    emb_b = emb_ref[ROWS - 8:ROWS - 7, :]
    hidden = ln(mm(hot, emb_ref[...]), emb_g, emb_b)                 # (B, L, H) f32

    enc_bf = enc_ref[...].astype(bf16)                               # cast encoder once

    # ---- decoder layers (unrolled; all weights already resident in VMEM) ----
    for l in range(NL):
        wm = wmat_ref[l]                                             # (H, 8H+I) bf16
        vv = vec_ref[l]                                              # (16, VW)   f32
        x = hidden
        x_bf = x.astype(bf16)

        # masked self-attention (fused QKV projection; scale folded into Q weights)
        qkv = (mm(x_bf, wm[:, O_QKV:O_QKV + 3 * H]) + vv[0:1, 0:3 * H]).astype(bf16)
        sa = attention(qkv[:, :, 0:H], qkv[:, :, H:2 * H], qkv[:, :, 2 * H:3 * H],
                       wm[:, O_SO:O_SO + H], vv[1:2, 0:H], key_bias_h)
        h1 = ln(sa + x, vv[7:8, 0:H], vv[8:9, 0:H]) * non_pad

        # cross-attention to enc_output (fused KV projection, src_seq = ones -> no mask)
        q = (mm(h1.astype(bf16), wm[:, O_CQ:O_CQ + H]) + vv[2:3, 0:H]).astype(bf16)
        kv = (mm(enc_bf, wm[:, O_CKV:O_CKV + 2 * H]) + vv[3:4, 0:2 * H]).astype(bf16)
        ca = attention(q, kv[:, :, 0:H], kv[:, :, H:2 * H],
                       wm[:, O_CO:O_CO + H], vv[4:5, 0:H], None)
        h2 = ln(ca + h1, vv[9:10, 0:H], vv[10:11, 0:H]) * non_pad

        # feed-forward (tanh-approx GELU), f32 elementwise
        ff = mm(h2.astype(bf16), wm[:, O_F1:O_F1 + I]) + vv[5:6, 0:I]
        ff = 0.5 * ff * (1.0 + jnp.tanh(
            0.7978845608028654 * (ff + 0.044715 * ff * ff * ff)))
        ff = mm(ff.astype(bf16), w2_ref[l]) + vv[6:7, 0:H]
        hidden = ln(ff + h2, vv[11:12, 0:H], vv[12:13, 0:H]) * non_pad

    seq_ref[...] = hidden
    # tied word-embedding logits via the pre-transposed (H, V) table (no in-kernel transpose)
    logits_ref[...] = mm(hidden, wet_ref[...])                       # (B, L, V) f32


# ----------------------------- jitted wrapper -----------------------------

@functools.partial(jax.jit, static_argnums=(0,))
def _forward_jit(nh, packed, tgt_seq, enc_output, category):
    B, L = tgt_seq.shape
    T = enc_output.shape[1]
    H, V = packed["we_T"].shape
    NL = packed["wmat"].shape[0]
    I = packed["w2"].shape[1]
    ROWS = packed["emb"].shape[0]

    args = (
        tgt_seq.astype(jnp.int32),
        category.reshape(B, 1).astype(jnp.int32),
        enc_output.astype(jnp.float32),
        packed["emb"], packed["we_T"], packed["wmat"], packed["w2"], packed["vec"],
    )

    flops = (2 * B * L * ROWS * H + 2 * B * L * H * V
             + NL * (2 * B * L * H * 3 * H          # QKV proj
                     + 4 * B * L * L * H            # self scores + ctx
                     + 2 * B * L * H * H            # self out proj
                     + 2 * B * L * H * H            # cross Q
                     + 2 * B * T * H * 2 * H        # cross KV
                     + 4 * B * L * T * H            # cross scores + ctx
                     + 2 * B * L * H * H            # cross out proj
                     + 4 * B * L * H * I))          # FFN
    trans = NL * (nh * B * L * (L + T) + B * L * I)
    bytes_accessed = (sum(int(a.size) * a.dtype.itemsize for a in args)
                      + B * L * H * 4 + B * L * V * 4)

    return pl.pallas_call(
        functools.partial(_decoder_kernel, nh),
        out_shape=(jax.ShapeDtypeStruct((B, L, H), jnp.float32),
                   jax.ShapeDtypeStruct((B, L, V), jnp.float32)),
        in_specs=[_VMEM] * len(args),
        out_specs=(_VMEM, _VMEM),
        cost_estimate=pl.CostEstimate(flops=flops, transcendentals=trans,
                                      bytes_accessed=bytes_accessed),
    )(*args)


# ----------------------------- parameters -----------------------------

def init_params(key, cfg):
    H = cfg["dim_hidden"]
    V = cfg["vocab_size"]
    I = cfg["intermediate_size"]
    NL = cfg["num_hidden_layers_decoder"]
    P = cfg["max_position"]
    C = cfg["num_category"]
    keys = jax.random.split(key, 16)
    it = iter(keys)

    def nrm(shape):
        return 0.02 * jax.random.normal(next(it), shape, jnp.float32)

    def zeros(shape):
        return jnp.zeros(shape, jnp.float32)

    def ones(shape):
        return jnp.ones(shape, jnp.float32)

    return {
        "word_emb": nrm((V, H)),
        "pos_emb": nrm((P, H)),
        "cat_emb": nrm((C, H)),
        "emb_ln_g": ones((1, H)), "emb_ln_b": zeros((1, H)),
        "self_qkv_w": nrm((NL, H, 3 * H)), "self_qkv_b": zeros((NL, 1, 3 * H)),
        "self_o_w": nrm((NL, H, H)), "self_o_b": zeros((NL, 1, H)),
        "cross_q_w": nrm((NL, H, H)), "cross_q_b": zeros((NL, 1, H)),
        "cross_kv_w": nrm((NL, H, 2 * H)), "cross_kv_b": zeros((NL, 1, 2 * H)),
        "cross_o_w": nrm((NL, H, H)), "cross_o_b": zeros((NL, 1, H)),
        "ffn_w1": nrm((NL, H, I)), "ffn_b1": zeros((NL, 1, I)),
        "ffn_w2": nrm((NL, I, H)), "ffn_b2": zeros((NL, 1, H)),
        "ln1_g": ones((NL, 1, H)), "ln1_b": zeros((NL, 1, H)),
        "ln2_g": ones((NL, 1, H)), "ln2_b": zeros((NL, 1, H)),
        "ln3_g": ones((NL, 1, H)), "ln3_b": zeros((NL, 1, H)),
    }


def pack_params(raw, cfg):
    """Pack per-tensor params into a few contiguous VMEM slabs (few entry DMAs)."""
    H = cfg["dim_hidden"]
    I = cfg["intermediate_size"]
    NL = cfg["num_hidden_layers_decoder"]
    C = cfg["num_category"]
    nh = cfg["num_attention_heads"]
    d = H // nh
    scale = 1.0 / float(d) ** 0.5
    f32, bf16 = jnp.float32, jnp.bfloat16
    assert C <= 8, "category table is padded to 8 rows in the packed embedding slab"

    def rpad(a, rows):
        if a.shape[0] >= rows:
            return a
        return jnp.concatenate(
            [a, jnp.zeros((rows - a.shape[0],) + a.shape[1:], a.dtype)], axis=0)

    # embedding slab rows: word | pos | cat(pad->8) | emb_ln_g(pad->8) | emb_ln_b(pad->8)
    emb = jnp.concatenate([raw["word_emb"], raw["pos_emb"], rpad(raw["cat_emb"], 8),
                           rpad(raw["emb_ln_g"], 8), rpad(raw["emb_ln_b"], 8)],
                          axis=0).astype(f32)

    # fold the 1/sqrt(d) attention scale into the Q projections (weights and biases)
    qkv_w = raw["self_qkv_w"].at[:, :, :H].multiply(scale)
    qkv_b = raw["self_qkv_b"].at[:, :, :H].multiply(scale)
    cq_w = raw["cross_q_w"] * scale
    cq_b = raw["cross_q_b"] * scale

    # per-layer matrices with first dim H, concatenated along lanes (bf16 MXU operands)
    wmat = jnp.concatenate([qkv_w, raw["self_o_w"], cq_w, raw["cross_kv_w"],
                            raw["cross_o_w"], raw["ffn_w1"]], axis=2).astype(bf16)
    w2 = raw["ffn_w2"].astype(bf16)                                   # (NL, I, H)

    # per-layer bias / LN vectors: one row each, padded to a 128-multiple lane width
    VW = -(-max(3 * H, 2 * H, I, H) // 128) * 128

    def row(v):
        return jnp.pad(v.astype(f32), ((0, 0), (0, 0), (0, VW - v.shape[2])))

    vec = jnp.concatenate(
        [row(qkv_b), row(raw["self_o_b"]), row(cq_b), row(raw["cross_kv_b"]),
         row(raw["cross_o_b"]), row(raw["ffn_b1"]), row(raw["ffn_b2"]),
         row(raw["ln1_g"]), row(raw["ln1_b"]), row(raw["ln2_g"]), row(raw["ln2_b"]),
         row(raw["ln3_g"]), row(raw["ln3_b"]),
         jnp.zeros((NL, 3, VW), f32)], axis=1)                        # (NL, 16, VW)

    return {
        "emb": emb,
        "we_T": raw["word_emb"].T.astype(f32),                        # (H, V) for tied logits
        "wmat": wmat,
        "w2": w2,
        "vec": vec,
    }


# ----------------------------- model forward -----------------------------

def forward_(packed, cfg, tgt_seq, enc_output, category):
    """Equivalent of BertDecoderDisentangled.forward_ -> (seq_probs, embs)."""
    return _forward_jit(cfg["num_attention_heads"], packed, tgt_seq, enc_output, category)


def bert_decoder_disentangled(packed, cfg, tgt_seq, enc_output, category):
    """Equivalent of BertDecoderDisentangled.forward."""
    if isinstance(enc_output, list):
        assert len(enc_output) == 1
        enc_output = enc_output[0]
    if isinstance(tgt_seq, list):
        assert len(tgt_seq) == 2
        # batch both target sequences into ONE kernel dispatch, then split the outputs
        B = tgt_seq[0].shape[0]
        t = jnp.concatenate([tgt_seq[0], tgt_seq[1]], axis=0)
        e = jnp.concatenate([enc_output, enc_output], axis=0)
        c = jnp.concatenate([category.reshape(-1), category.reshape(-1)], axis=0)
        seq, logits = forward_(packed, cfg, t, e, c)
        return [seq[:B], seq[B:]], logits[B:]     # embs comes from the 2nd sequence
    return forward_(packed, cfg, tgt_seq, enc_output, category)


# ----------------------------- main -----------------------------

if __name__ == "__main__":
    key = jax.random.PRNGKey(0)
    k_par, k_tok, k_enc = jax.random.split(key, 3)

    B, L, T = 2, 8, 16
    H = CFG["dim_hidden"]
    raw_params = init_params(k_par, CFG)
    packed = pack_params(raw_params, CFG)

    # token ids in [1, vocab); pad (=0) the tail of sequence 1
    tgt_seq = jax.random.randint(k_tok, (B, L), 1, CFG["vocab_size"], dtype=jnp.int32)
    tgt_seq = tgt_seq.at[1, 6:].set(PAD)
    enc_output = jax.random.normal(k_enc, (B, T, H), jnp.float32)
    category = jnp.array([0, 1], dtype=jnp.int32)

    seq_probs, embs = bert_decoder_disentangled(packed, CFG, tgt_seq, enc_output, category)
    jax.block_until_ready((seq_probs, embs))
    assert seq_probs.shape == (B, L, H)
    assert embs.shape == (B, L, CFG["vocab_size"])
    assert bool(jnp.all(jnp.isfinite(seq_probs))) and bool(jnp.all(jnp.isfinite(embs)))
    print("KERNEL_OK")
</pallas_src>

<mosaic_0001>
module attributes {stable_mosaic.version = 11 : i64} {
  func.func @_decoder_kernel(%arg0: memref<2x8xi32, #tpu.memory_space<vmem>>, %arg1: memref<2x1xi32, #tpu.memory_space<vmem>>, %arg2: memref<2x16x32xf32, #tpu.memory_space<vmem>>, %arg3: memref<152x32xf32, #tpu.memory_space<vmem>>, %arg4: memref<32x64xf32, #tpu.memory_space<vmem>>, %arg5: memref<2x32x384xbf16, #tpu.memory_space<vmem>>, %arg6: memref<2x128x32xbf16, #tpu.memory_space<vmem>>, %arg7: memref<2x16x128xf32, #tpu.memory_space<vmem>>, %arg8: memref<2x8x32xf32, #tpu.memory_space<vmem>>, %arg9: memref<2x8x64xf32, #tpu.memory_space<vmem>>) attributes {dimension_semantics = [], scalar_prefetch = 0 : i64, scratch_operands = 0 : i64, tpu.core_type = #tpu.core_type<tc>} {
    %c0 = arith.constant 0 : index
    %c0_0 = arith.constant 0 : index
    %0 = vector.load %arg0[%c0, %c0_0] : memref<2x8xi32, #tpu.memory_space<vmem>>, vector<2x8xi32>
    %c0_i32 = arith.constant 0 : i32
    %1 = vector.broadcast %c0_i32 : i32 to vector<2x8xi32>
    %2 = arith.cmpi eq, %0, %1 : vector<2x8xi32>
    %cst = arith.constant -1.000000e+09 : f32
    %cst_1 = arith.constant 0.000000e+00 : f32
    %3 = vector.broadcast %cst : f32 to vector<2x8xf32>
    %4 = vector.broadcast %cst_1 : f32 to vector<2x8xf32>
    %5 = arith.select %2, %3, %4 : vector<2x8xi1>, vector<2x8xf32>
    %6 = tpu.concatenate %5, %5, %5, %5 in 0 : vector<2x8xf32>, vector<2x8xf32>, vector<2x8xf32>, vector<2x8xf32> -> vector<8x8xf32>
    %7 = vector.shape_cast %6 : vector<8x8xf32> to vector<8x1x8xf32>
    %c0_i32_2 = arith.constant 0 : i32
    %8 = vector.broadcast %c0_i32_2 : i32 to vector<2x8xi32>
    %9 = arith.cmpi ne, %0, %8 : vector<2x8xi32>
    %10 = arith.extui %9 : vector<2x8xi1> to vector<2x8xi32>
    %11 = arith.sitofp %10 : vector<2x8xi32> to vector<2x8xf32>
    %12 = vector.shape_cast %11 : vector<2x8xf32> to vector<2x8x1xf32>
    %13 = tpu.iota {dimensions = array<i32: 2>} : vector<2x8x152xi32>
    %14 = tpu.iota {dimensions = array<i32: 1>} : vector<2x8xi32>
    %c64_i32 = arith.constant 64 : i32
    %15 = vector.broadcast %c64_i32 : i32 to vector<2x8xi32>
    %16 = arith.addi %15, %14 : vector<2x8xi32>
    %c0_3 = arith.constant 0 : index
    %c0_4 = arith.constant 0 : index
    %17 = vector.load %arg1[%c0_3, %c0_4] : memref<2x1xi32, #tpu.memory_space<vmem>>, vector<2x1xi32>
    %c128_i32 = arith.constant 128 : i32
    %18 = vector.broadcast %c128_i32 : i32 to vector<2x1xi32>
    %19 = arith.addi %18, %17 : vector<2x1xi32>
    %20 = vector.shape_cast %0 : vector<2x8xi32> to vector<2x8x1xi32>
    %21 = vector.broadcast %20 : vector<2x8x1xi32> to vector<2x8x152xi32>
    %22 = arith.cmpi eq, %13, %21 : vector<2x8x152xi32>
    %23 = vector.shape_cast %16 : vector<2x8xi32> to vector<2x8x1xi32>
    %24 = vector.broadcast %23 : vector<2x8x1xi32> to vector<2x8x152xi32>
    %25 = arith.cmpi eq, %13, %24 : vector<2x8x152xi32>
    %26 = arith.ori %22, %25 : vector<2x8x152xi1>
    %27 = vector.shape_cast %19 : vector<2x1xi32> to vector<2x1x1xi32>
    %28 = vector.broadcast %27 : vector<2x1x1xi32> to vector<2x8x152xi32>
    %29 = arith.cmpi eq, %13, %28 : vector<2x8x152xi32>
    %30 = arith.ori %26, %29 : vector<2x8x152xi1>
    %31 = arith.extui %30 : vector<2x8x152xi1> to vector<2x8x152xi32>
    %32 = arith.sitofp %31 : vector<2x8x152xi32> to vector<2x8x152xf32>
    %c136 = arith.constant 136 : index
    %c0_5 = arith.constant 0 : index
    %33 = vector.load %arg3[%c136, %c0_5] : memref<152x32xf32, #tpu.memory_space<vmem>>, vector<1x32xf32>
    %c144 = arith.constant 144 : index
    %c0_6 = arith.constant 0 : index
    %34 = vector.load %arg3[%c144, %c0_6] : memref<152x32xf32, #tpu.memory_space<vmem>>, vector<1x32xf32>
    %c0_7 = arith.constant 0 : index
    %c0_8 = arith.constant 0 : index
    %35 = vector.load %arg3[%c0_7, %c0_8] : memref<152x32xf32, #tpu.memory_space<vmem>>, vector<152x32xf32>
    %cst_9 = arith.constant dense<0.000000e+00> : vector<2x8x32xf32>
    %36 = tpu.matmul %32, %35, %cst_9 {dimension_numbers = #tpu.dot_dimension_numbers<[2], [0], [0, 1], [1], [0, 0, 0, 1, 1, 1], [], []>} : vector<2x8x152xf32>, vector<152x32xf32>, vector<2x8x32xf32> -> vector<2x8x32xf32>
    %cst_10 = arith.constant dense<0.000000e+00> : vector<2x8xf32>
    %37 = vector.multi_reduction <add>, %36, %cst_10 [2] : vector<2x8x32xf32> to vector<2x8xf32>
    %38 = vector.shape_cast %37 : vector<2x8xf32> to vector<2x8x1xf32>
    %cst_11 = arith.constant 3.200000e+01 : f32
    %39 = vector.broadcast %cst_11 : f32 to vector<2x8x1xf32>
    %40 = arith.divf %38, %39 : vector<2x8x1xf32>
    %41 = vector.broadcast %40 : vector<2x8x1xf32> to vector<2x8x32xf32>
    %42 = arith.subf %36, %41 : vector<2x8x32xf32>
    %43 = arith.mulf %42, %42 : vector<2x8x32xf32>
    %cst_12 = arith.constant dense<0.000000e+00> : vector<2x8xf32>
    %44 = vector.multi_reduction <add>, %43, %cst_12 [2] : vector<2x8x32xf32> to vector<2x8xf32>
    %45 = vector.shape_cast %44 : vector<2x8xf32> to vector<2x8x1xf32>
    %cst_13 = arith.constant 3.200000e+01 : f32
    %46 = vector.broadcast %cst_13 : f32 to vector<2x8x1xf32>
    %47 = arith.divf %45, %46 : vector<2x8x1xf32>
    %48 = vector.broadcast %40 : vector<2x8x1xf32> to vector<2x8x32xf32>
    %49 = arith.subf %36, %48 : vector<2x8x32xf32>
    %cst_14 = arith.constant 9.99999996E-13 : f32
    %50 = vector.broadcast %cst_14 : f32 to vector<2x8x1xf32>
    %51 = arith.addf %47, %50 : vector<2x8x1xf32>
    %52 = math.rsqrt %51 : vector<2x8x1xf32>
    %53 = vector.broadcast %52 : vector<2x8x1xf32> to vector<2x8x32xf32>
    %54 = arith.mulf %49, %53 : vector<2x8x32xf32>
    %55 = vector.shape_cast %33 : vector<1x32xf32> to vector<1x1x32xf32>
    %56 = vector.broadcast %55 : vector<1x1x32xf32> to vector<2x8x32xf32>
    %57 = arith.mulf %54, %56 : vector<2x8x32xf32>
    %58 = vector.shape_cast %34 : vector<1x32xf32> to vector<1x1x32xf32>
    %59 = vector.broadcast %58 : vector<1x1x32xf32> to vector<2x8x32xf32>
    %60 = arith.addf %57, %59 : vector<2x8x32xf32>
    %c0_15 = arith.constant 0 : index
    %c0_16 = arith.constant 0 : index
    %c0_17 = arith.constant 0 : index
    %61 = vector.load %arg2[%c0_15, %c0_16, %c0_17] : memref<2x16x32xf32, #tpu.memory_space<vmem>>, vector<2x16x32xf32>
    %62 = arith.truncf %61 : vector<2x16x32xf32> to vector<2x16x32xbf16>
    %c0_18 = arith.constant 0 : index
    %c0_19 = arith.constant 0 : index
    %c0_20 = arith.constant 0 : index
    %63 = vector.load %arg5[%c0_18, %c0_19, %c0_20] : memref<2x32x384xbf16, #tpu.memory_space<vmem>>, vector<1x32x384xbf16>
    %64 = vector.shape_cast %63 : vector<1x32x384xbf16> to vector<32x384xbf16>
    %c0_21 = arith.constant 0 : index
    %c0_22 = arith.constant 0 : index
    %c0_23 = arith.constant 0 : index
    %65 = vector.load %arg7[%c0_21, %c0_22, %c0_23] : memref<2x16x128xf32, #tpu.memory_space<vmem>>, vector<1x16x128xf32>
    %66 = vector.shape_cast %65 : vector<1x16x128xf32> to vector<16x128xf32>
    %67 = arith.truncf %60 : vector<2x8x32xf32> to vector<2x8x32xbf16>
    %68 = vector.extract_strided_slice %64 {offsets = [0, 0], sizes = [32, 96], strides = [1, 1]} : vector<32x384xbf16> to vector<32x96xbf16>
    %cst_24 = arith.constant dense<0.000000e+00> : vector<2x8x96xf32>
    %69 = tpu.matmul %67, %68, %cst_24 {dimension_numbers = #tpu.dot_dimension_numbers<[2], [0], [0, 1], [1], [0, 0, 0, 1, 1, 1], [], []>} : vector<2x8x32xbf16>, vector<32x96xbf16>, vector<2x8x96xf32> -> vector<2x8x96xf32>
    %70 = vector.extract_strided_slice %66 {offsets = [0, 0], sizes = [1, 96], strides = [1, 1]} : vector<16x128xf32> to vector<1x96xf32>
    %71 = vector.shape_cast %70 : vector<1x96xf32> to vector<1x1x96xf32>
    %72 = vector.broadcast %71 : vector<1x1x96xf32> to vector<2x8x96xf32>
    %73 = arith.addf %69, %72 : vector<2x8x96xf32>
    %74 = arith.truncf %73 : vector<2x8x96xf32> to vector<2x8x96xbf16>
    %75 = vector.extract_strided_slice %74 {offsets = [0, 0, 0], sizes = [2, 8, 32], strides = [1, 1, 1]} : vector<2x8x96xbf16> to vector<2x8x32xbf16>
    %76 = vector.extract_strided_slice %74 {offsets = [0, 0, 32], sizes = [2, 8, 32], strides = [1, 1, 1]} : vector<2x8x96xbf16> to vector<2x8x32xbf16>
    %77 = vector.extract_strided_slice %74 {offsets = [0, 0, 64], sizes = [2, 8, 32], strides = [1, 1, 1]} : vector<2x8x96xbf16> to vector<2x8x32xbf16>
    %78 = vector.extract_strided_slice %64 {offsets = [0, 96], sizes = [32, 32], strides = [1, 1]} : vector<32x384xbf16> to vector<32x32xbf16>
    %79 = vector.extract_strided_slice %66 {offsets = [1, 0], sizes = [1, 32], strides = [1, 1]} : vector<16x128xf32> to vector<1x32xf32>
    %80 = vector.extract_strided_slice %75 {offsets = [0, 0, 0], sizes = [2, 8, 8], strides = [1, 1, 1]} : vector<2x8x32xbf16> to vector<2x8x8xbf16>
    %81 = vector.extract_strided_slice %75 {offsets = [0, 0, 8], sizes = [2, 8, 8], strides = [1, 1, 1]} : vector<2x8x32xbf16> to vector<2x8x8xbf16>
    %82 = vector.extract_strided_slice %75 {offsets = [0, 0, 16], sizes = [2, 8, 8], strides = [1, 1, 1]} : vector<2x8x32xbf16> to vector<2x8x8xbf16>
    %83 = vector.extract_strided_slice %75 {offsets = [0, 0, 24], sizes = [2, 8, 8], strides = [1, 1, 1]} : vector<2x8x32xbf16> to vector<2x8x8xbf16>
    %84 = tpu.concatenate %80, %81, %82, %83 in 0 : vector<2x8x8xbf16>, vector<2x8x8xbf16>, vector<2x8x8xbf16>, vector<2x8x8xbf16> -> vector<8x8x8xbf16>
    %85 = vector.extract_strided_slice %76 {offsets = [0, 0, 0], sizes = [2, 8, 8], strides = [1, 1, 1]} : vector<2x8x32xbf16> to vector<2x8x8xbf16>
    %86 = vector.extract_strided_slice %76 {offsets = [0, 0, 8], sizes = [2, 8, 8], strides = [1, 1, 1]} : vector<2x8x32xbf16> to vector<2x8x8xbf16>
    %87 = vector.extract_strided_slice %76 {offsets = [0, 0, 16], sizes = [2, 8, 8], strides = [1, 1, 1]} : vector<2x8x32xbf16> to vector<2x8x8xbf16>
    %88 = vector.extract_strided_slice %76 {offsets = [0, 0, 24], sizes = [2, 8, 8], strides = [1, 1, 1]} : vector<2x8x32xbf16> to vector<2x8x8xbf16>
    %89 = tpu.concatenate %85, %86, %87, %88 in 0 : vector<2x8x8xbf16>, vector<2x8x8xbf16>, vector<2x8x8xbf16>, vector<2x8x8xbf16> -> vector<8x8x8xbf16>
    %90 = vector.extract_strided_slice %77 {offsets = [0, 0, 0], sizes = [2, 8, 8], strides = [1, 1, 1]} : vector<2x8x32xbf16> to vector<2x8x8xbf16>
    %91 = vector.extract_strided_slice %77 {offsets = [0, 0, 8], sizes = [2, 8, 8], strides = [1, 1, 1]} : vector<2x8x32xbf16> to vector<2x8x8xbf16>
    %92 = vector.extract_strided_slice %77 {offsets = [0, 0, 16], sizes = [2, 8, 8], strides = [1, 1, 1]} : vector<2x8x32xbf16> to vector<2x8x8xbf16>
    %93 = vector.extract_strided_slice %77 {offsets = [0, 0, 24], sizes = [2, 8, 8], strides = [1, 1, 1]} : vector<2x8x32xbf16> to vector<2x8x8xbf16>
    %94 = tpu.concatenate %90, %91, %92, %93 in 0 : vector<2x8x8xbf16>, vector<2x8x8xbf16>, vector<2x8x8xbf16>, vector<2x8x8xbf16> -> vector<8x8x8xbf16>
    "tpu.trace_start"() <{level = 10 : i32, message = "bqd,bkd->bqk"}> : () -> ()
    %cst_25 = arith.constant dense<0.000000e+00> : vector<8x8x8xf32>
    %95 = tpu.matmul %84, %89, %cst_25 {dimension_numbers = #tpu.dot_dimension_numbers<[2], [2], [1], [1], [0, 0, 0, 1, 1, 1], [0], [0]>} : vector<8x8x8xbf16>, vector<8x8x8xbf16>, vector<8x8x8xf32> -> vector<8x8x8xf32>
    "tpu.trace_stop"() : () -> ()
    %96 = vector.broadcast %7 : vector<8x1x8xf32> to vector<8x8x8xf32>
    %97 = arith.addf %95, %96 : vector<8x8x8xf32>
    %cst_26 = arith.constant dense<0xFF800000> : vector<8x8xf32>
    %98 = vector.multi_reduction <maximumf>, %97, %cst_26 [2] : vector<8x8x8xf32> to vector<8x8xf32>
    %99 = vector.shape_cast %98 : vector<8x8xf32> to vector<8x8x1xf32>
    %100 = vector.broadcast %99 : vector<8x8x1xf32> to vector<8x8x8xf32>
    %101 = arith.subf %97, %100 : vector<8x8x8xf32>
    %102 = math.exp %101 : vector<8x8x8xf32>
    %cst_27 = arith.constant dense<0.000000e+00> : vector<8x8xf32>
    %103 = vector.multi_reduction <add>, %102, %cst_27 [2] : vector<8x8x8xf32> to vector<8x8xf32>
    %104 = vector.shape_cast %103 : vector<8x8xf32> to vector<8x8x1xf32>
    %105 = tpu.reciprocal %104 {approx = true} : vector<8x8x1xf32> -> vector<8x8x1xf32>
    %106 = vector.broadcast %105 : vector<8x8x1xf32> to vector<8x8x8xf32>
    %107 = arith.mulf %102, %106 : vector<8x8x8xf32>
    %108 = arith.truncf %107 : vector<8x8x8xf32> to vector<8x8x8xbf16>
    "tpu.trace_start"() <{level = 10 : i32, message = "bqk,bkd->bqd"}> : () -> ()
    %cst_28 = arith.constant dense<0.000000e+00> : vector<8x8x8xf32>
    %109 = tpu.matmul %108, %94, %cst_28 {dimension_numbers = #tpu.dot_dimension_numbers<[2], [1], [1], [2], [0, 0, 0, 1, 1, 2], [0], [0]>} : vector<8x8x8xbf16>, vector<8x8x8xbf16>, vector<8x8x8xf32> -> vector<8x8x8xf32>
    "tpu.trace_stop"() : () -> ()
    %110 = vector.extract_strided_slice %109 {offsets = [0, 0, 0], sizes = [2, 8, 8], strides = [1, 1, 1]} : vector<8x8x8xf32> to vector<2x8x8xf32>
    %111 = vector.extract_strided_slice %109 {offsets = [2, 0, 0], sizes = [2, 8, 8], strides = [1, 1, 1]} : vector<8x8x8xf32> to vector<2x8x8xf32>
    %112 = vector.extract_strided_slice %109 {offsets = [4, 0, 0], sizes = [2, 8, 8], strides = [1, 1, 1]} : vector<8x8x8xf32> to vector<2x8x8xf32>
    %113 = vector.extract_strided_slice %109 {offsets = [6, 0, 0], sizes = [2, 8, 8], strides = [1, 1, 1]} : vector<8x8x8xf32> to vector<2x8x8xf32>
    %114 = tpu.concatenate %110, %111, %112, %113 in 2 : vector<2x8x8xf32>, vector<2x8x8xf32>, vector<2x8x8xf32>, vector<2x8x8xf32> -> vector<2x8x32xf32>
    %115 = arith.truncf %114 : vector<2x8x32xf32> to vector<2x8x32xbf16>
    %cst_29 = arith.constant dense<0.000000e+00> : vector<2x8x32xf32>
    %116 = tpu.matmul %115, %78, %cst_29 {dimension_numbers = #tpu.dot_dimension_numbers<[2], [0], [0, 1], [1], [0, 0, 0, 1, 1, 1], [], []>} : vector<2x8x32xbf16>, vector<32x32xbf16>, vector<2x8x32xf32> -> vector<2x8x32xf32>
    %117 = vector.shape_cast %79 : vector<1x32xf32> to vector<1x1x32xf32>
    %118 = vector.broadcast %117 : vector<1x1x32xf32> to vector<2x8x32xf32>
    %119 = arith.addf %116, %118 : vector<2x8x32xf32>
    %120 = arith.addf %119, %60 : vector<2x8x32xf32>
    %121 = vector.extract_strided_slice %66 {offsets = [7, 0], sizes = [1, 32], strides = [1, 1]} : vector<16x128xf32> to vector<1x32xf32>
    %122 = vector.extract_strided_slice %66 {offsets = [8, 0], sizes = [1, 32], strides = [1, 1]} : vector<16x128xf32> to vector<1x32xf32>
    %cst_30 = arith.constant dense<0.000000e+00> : vector<2x8xf32>
    %123 = vector.multi_reduction <add>, %120, %cst_30 [2] : vector<2x8x32xf32> to vector<2x8xf32>
    %124 = vector.shape_cast %123 : vector<2x8xf32> to vector<2x8x1xf32>
    %cst_31 = arith.constant 3.200000e+01 : f32
    %125 = vector.broadcast %cst_31 : f32 to vector<2x8x1xf32>
    %126 = arith.divf %124, %125 : vector<2x8x1xf32>
    %127 = vector.broadcast %126 : vector<2x8x1xf32> to vector<2x8x32xf32>
    %128 = arith.subf %120, %127 : vector<2x8x32xf32>
    %129 = arith.mulf %128, %128 : vector<2x8x32xf32>
    %cst_32 = arith.constant dense<0.000000e+00> : vector<2x8xf32>
    %130 = vector.multi_reduction <add>, %129, %cst_32 [2] : vector<2x8x32xf32> to vector<2x8xf32>
    %131 = vector.shape_cast %130 : vector<2x8xf32> to vector<2x8x1xf32>
    %cst_33 = arith.constant 3.200000e+01 : f32
    %132 = vector.broadcast %cst_33 : f32 to vector<2x8x1xf32>
    %133 = arith.divf %131, %132 : vector<2x8x1xf32>
    %134 = vector.broadcast %126 : vector<2x8x1xf32> to vector<2x8x32xf32>
    %135 = arith.subf %120, %134 : vector<2x8x32xf32>
    %cst_34 = arith.constant 9.99999996E-13 : f32
    %136 = vector.broadcast %cst_34 : f32 to vector<2x8x1xf32>
    %137 = arith.addf %133, %136 : vector<2x8x1xf32>
    %138 = math.rsqrt %137 : vector<2x8x1xf32>
    %139 = vector.broadcast %138 : vector<2x8x1xf32> to vector<2x8x32xf32>
    %140 = arith.mulf %135, %139 : vector<2x8x32xf32>
    %141 = vector.shape_cast %121 : vector<1x32xf32> to vector<1x1x32xf32>
    %142 = vector.broadcast %141 : vector<1x1x32xf32> to vector<2x8x32xf32>
    %143 = arith.mulf %140, %142 : vector<2x8x32xf32>
    %144 = vector.shape_cast %122 : vector<1x32xf32> to vector<1x1x32xf32>
    %145 = vector.broadcast %144 : vector<1x1x32xf32> to vector<2x8x32xf32>
    %146 = arith.addf %143, %145 : vector<2x8x32xf32>
    %147 = vector.broadcast %12 : vector<2x8x1xf32> to vector<2x8x32xf32>
    %148 = arith.mulf %146, %147 : vector<2x8x32xf32>
    %149 = arith.truncf %148 : vector<2x8x32xf32> to vector<2x8x32xbf16>
    %150 = vector.extract_strided_slice %64 {offsets = [0, 128], sizes = [32, 32], strides = [1, 1]} : vector<32x384xbf16> to vector<32x32xbf16>
    %cst_35 = arith.constant dense<0.000000e+00> : vector<2x8x32xf32>
    %151 = tpu.matmul %149, %150, %cst_35 {dimension_numbers = #tpu.dot_dimension_numbers<[2], [0], [0, 1], [1], [0, 0, 0, 1, 1, 1], [], []>} : vector<2x8x32xbf16>, vector<32x32xbf16>, vector<2x8x32xf32> -> vector<2x8x32xf32>
    %152 = vector.extract_strided_slice %66 {offsets = [2, 0], sizes = [1, 32], strides = [1, 1]} : vector<16x128xf32> to vector<1x32xf32>
    %153 = vector.shape_cast %152 : vector<1x32xf32> to vector<1x1x32xf32>
    %154 = vector.broadcast %153 : vector<1x1x32xf32> to vector<2x8x32xf32>
    %155 = arith.addf %151, %154 : vector<2x8x32xf32>
    %156 = arith.truncf %155 : vector<2x8x32xf32> to vector<2x8x32xbf16>
    %157 = vector.extract_strided_slice %64 {offsets = [0, 160], sizes = [32, 64], strides = [1, 1]} : vector<32x384xbf16> to vector<32x64xbf16>
    %cst_36 = arith.constant dense<0.000000e+00> : vector<2x16x64xf32>
    %158 = tpu.matmul %62, %157, %cst_36 {dimension_numbers = #tpu.dot_dimension_numbers<[2], [0], [0, 1], [1], [0, 0, 0, 1, 1, 1], [], []>} : vector<2x16x32xbf16>, vector<32x64xbf16>, vector<2x16x64xf32> -> vector<2x16x64xf32>
    %159 = vector.extract_strided_slice %66 {offsets = [3, 0], sizes = [1, 64], strides = [1, 1]} : vector<16x128xf32> to vector<1x64xf32>
    %160 = vector.shape_cast %159 : vector<1x64xf32> to vector<1x1x64xf32>
    %161 = vector.broadcast %160 : vector<1x1x64xf32> to vector<2x16x64xf32>
    %162 = arith.addf %158, %161 : vector<2x16x64xf32>
    %163 = arith.truncf %162 : vector<2x16x64xf32> to vector<2x16x64xbf16>
    %164 = vector.extract_strided_slice %163 {offsets = [0, 0, 0], sizes = [2, 16, 32], strides = [1, 1, 1]} : vector<2x16x64xbf16> to vector<2x16x32xbf16>
    %165 = vector.extract_strided_slice %163 {offsets = [0, 0, 32], sizes = [2, 16, 32], strides = [1, 1, 1]} : vector<2x16x64xbf16> to vector<2x16x32xbf16>
    %166 = vector.extract_strided_slice %64 {offsets = [0, 224], sizes = [32, 32], strides = [1, 1]} : vector<32x384xbf16> to vector<32x32xbf16>
    %167 = vector.extract_strided_slice %66 {offsets = [4, 0], sizes = [1, 32], strides = [1, 1]} : vector<16x128xf32> to vector<1x32xf32>
    %168 = vector.extract_strided_slice %156 {offsets = [0, 0, 0], sizes = [2, 8, 8], strides = [1, 1, 1]} : vector<2x8x32xbf16> to vector<2x8x8xbf16>
    %169 = vector.extract_strided_slice %156 {offsets = [0, 0, 8], sizes = [2, 8, 8], strides = [1, 1, 1]} : vector<2x8x32xbf16> to vector<2x8x8xbf16>
    %170 = vector.extract_strided_slice %156 {offsets = [0, 0, 16], sizes = [2, 8, 8], strides = [1, 1, 1]} : vector<2x8x32xbf16> to vector<2x8x8xbf16>
    %171 = vector.extract_strided_slice %156 {offsets = [0, 0, 24], sizes = [2, 8, 8], strides = [1, 1, 1]} : vector<2x8x32xbf16> to vector<2x8x8xbf16>
    %172 = tpu.concatenate %168, %169, %170, %171 in 0 : vector<2x8x8xbf16>, vector<2x8x8xbf16>, vector<2x8x8xbf16>, vector<2x8x8xbf16> -> vector<8x8x8xbf16>
    %173 = vector.extract_strided_slice %164 {offsets = [0, 0, 0], sizes = [2, 16, 8], strides = [1, 1, 1]} : vector<2x16x32xbf16> to vector<2x16x8xbf16>
    %174 = vector.extract_strided_slice %164 {offsets = [0, 0, 8], sizes = [2, 16, 8], strides = [1, 1, 1]} : vector<2x16x32xbf16> to vector<2x16x8xbf16>
    %175 = vector.extract_strided_slice %164 {offsets = [0, 0, 16], sizes = [2, 16, 8], strides = [1, 1, 1]} : vector<2x16x32xbf16> to vector<2x16x8xbf16>
    %176 = vector.extract_strided_slice %164 {offsets = [0, 0, 24], sizes = [2, 16, 8], strides = [1, 1, 1]} : vector<2x16x32xbf16> to vector<2x16x8xbf16>
    %177 = tpu.concatenate %173, %174, %175, %176 in 0 : vector<2x16x8xbf16>, vector<2x16x8xbf16>, vector<2x16x8xbf16>, vector<2x16x8xbf16> -> vector<8x16x8xbf16>
    %178 = vector.extract_strided_slice %165 {offsets = [0, 0, 0], sizes = [2, 16, 8], strides = [1, 1, 1]} : vector<2x16x32xbf16> to vector<2x16x8xbf16>
    %179 = vector.extract_strided_slice %165 {offsets = [0, 0, 8], sizes = [2, 16, 8], strides = [1, 1, 1]} : vector<2x16x32xbf16> to vector<2x16x8xbf16>
    %180 = vector.extract_strided_slice %165 {offsets = [0, 0, 16], sizes = [2, 16, 8], strides = [1, 1, 1]} : vector<2x16x32xbf16> to vector<2x16x8xbf16>
    %181 = vector.extract_strided_slice %165 {offsets = [0, 0, 24], sizes = [2, 16, 8], strides = [1, 1, 1]} : vector<2x16x32xbf16> to vector<2x16x8xbf16>
    %182 = tpu.concatenate %178, %179, %180, %181 in 0 : vector<2x16x8xbf16>, vector<2x16x8xbf16>, vector<2x16x8xbf16>, vector<2x16x8xbf16> -> vector<8x16x8xbf16>
    "tpu.trace_start"() <{level = 10 : i32, message = "bqd,bkd->bqk"}> : () -> ()
    %cst_37 = arith.constant dense<0.000000e+00> : vector<8x8x16xf32>
    %183 = tpu.matmul %172, %177, %cst_37 {dimension_numbers = #tpu.dot_dimension_numbers<[2], [2], [1], [1], [0, 0, 0, 1, 1, 1], [0], [0]>} : vector<8x8x8xbf16>, vector<8x16x8xbf16>, vector<8x8x16xf32> -> vector<8x8x16xf32>
    "tpu.trace_stop"() : () -> ()
    %cst_38 = arith.constant dense<0xFF800000> : vector<8x8xf32>
    %184 = vector.multi_reduction <maximumf>, %183, %cst_38 [2] : vector<8x8x16xf32> to vector<8x8xf32>
    %185 = vector.shape_cast %184 : vector<8x8xf32> to vector<8x8x1xf32>
    %186 = vector.broadcast %185 : vector<8x8x1xf32> to vector<8x8x16xf32>
    %187 = arith.subf %183, %186 : vector<8x8x16xf32>
    %188 = math.exp %187 : vector<8x8x16xf32>
    %cst_39 = arith.constant dense<0.000000e+00> : vector<8x8xf32>
    %189 = vector.multi_reduction <add>, %188, %cst_39 [2] : vector<8x8x16xf32> to vector<8x8xf32>
    %190 = vector.shape_cast %189 : vector<8x8xf32> to vector<8x8x1xf32>
    %191 = tpu.reciprocal %190 {approx = true} : vector<8x8x1xf32> -> vector<8x8x1xf32>
    %192 = vector.broadcast %191 : vector<8x8x1xf32> to vector<8x8x16xf32>
    %193 = arith.mulf %188, %192 : vector<8x8x16xf32>
    %194 = arith.truncf %193 : vector<8x8x16xf32> to vector<8x8x16xbf16>
    "tpu.trace_start"() <{level = 10 : i32, message = "bqk,bkd->bqd"}> : () -> ()
    %cst_40 = arith.constant dense<0.000000e+00> : vector<8x8x8xf32>
    %195 = tpu.matmul %194, %182, %cst_40 {dimension_numbers = #tpu.dot_dimension_numbers<[2], [1], [1], [2], [0, 0, 0, 1, 1, 2], [0], [0]>} : vector<8x8x16xbf16>, vector<8x16x8xbf16>, vector<8x8x8xf32> -> vector<8x8x8xf32>
    "tpu.trace_stop"() : () -> ()
    %196 = vector.extract_strided_slice %195 {offsets = [0, 0, 0], sizes = [2, 8, 8], strides = [1, 1, 1]} : vector<8x8x8xf32> to vector<2x8x8xf32>
    %197 = vector.extract_strided_slice %195 {offsets = [2, 0, 0], sizes = [2, 8, 8], strides = [1, 1, 1]} : vector<8x8x8xf32> to vector<2x8x8xf32>
    %198 = vector.extract_strided_slice %195 {offsets = [4, 0, 0], sizes = [2, 8, 8], strides = [1, 1, 1]} : vector<8x8x8xf32> to vector<2x8x8xf32>
    %199 = vector.extract_strided_slice %195 {offsets = [6, 0, 0], sizes = [2, 8, 8], strides = [1, 1, 1]} : vector<8x8x8xf32> to vector<2x8x8xf32>
    %200 = tpu.concatenate %196, %197, %198, %199 in 2 : vector<2x8x8xf32>, vector<2x8x8xf32>, vector<2x8x8xf32>, vector<2x8x8xf32> -> vector<2x8x32xf32>
    %201 = arith.truncf %200 : vector<2x8x32xf32> to vector<2x8x32xbf16>
    %cst_41 = arith.constant dense<0.000000e+00> : vector<2x8x32xf32>
    %202 = tpu.matmul %201, %166, %cst_41 {dimension_numbers = #tpu.dot_dimension_numbers<[2], [0], [0, 1], [1], [0, 0, 0, 1, 1, 1], [], []>} : vector<2x8x32xbf16>, vector<32x32xbf16>, vector<2x8x32xf32> -> vector<2x8x32xf32>
    %203 = vector.shape_cast %167 : vector<1x32xf32> to vector<1x1x32xf32>
    %204 = vector.broadcast %203 : vector<1x1x32xf32> to vector<2x8x32xf32>
    %205 = arith.addf %202, %204 : vector<2x8x32xf32>
    %206 = arith.addf %205, %148 : vector<2x8x32xf32>
    %207 = vector.extract_strided_slice %66 {offsets = [9, 0], sizes = [1, 32], strides = [1, 1]} : vector<16x128xf32> to vector<1x32xf32>
    %208 = vector.extract_strided_slice %66 {offsets = [10, 0], sizes = [1, 32], strides = [1, 1]} : vector<16x128xf32> to vector<1x32xf32>
    %cst_42 = arith.constant dense<0.000000e+00> : vector<2x8xf32>
    %209 = vector.multi_reduction <add>, %206, %cst_42 [2] : vector<2x8x32xf32> to vector<2x8xf32>
    %210 = vector.shape_cast %209 : vector<2x8xf32> to vector<2x8x1xf32>
    %cst_43 = arith.constant 3.200000e+01 : f32
    %211 = vector.broadcast %cst_43 : f32 to vector<2x8x1xf32>
    %212 = arith.divf %210, %211 : vector<2x8x1xf32>
    %213 = vector.broadcast %212 : vector<2x8x1xf32> to vector<2x8x32xf32>
    %214 = arith.subf %206, %213 : vector<2x8x32xf32>
    %215 = arith.mulf %214, %214 : vector<2x8x32xf32>
    %cst_44 = arith.constant dense<0.000000e+00> : vector<2x8xf32>
    %216 = vector.multi_reduction <add>, %215, %cst_44 [2] : vector<2x8x32xf32> to vector<2x8xf32>
    %217 = vector.shape_cast %216 : vector<2x8xf32> to vector<2x8x1xf32>
    %cst_45 = arith.constant 3.200000e+01 : f32
    %218 = vector.broadcast %cst_45 : f32 to vector<2x8x1xf32>
    %219 = arith.divf %217, %218 : vector<2x8x1xf32>
    %220 = vector.broadcast %212 : vector<2x8x1xf32> to vector<2x8x32xf32>
    %221 = arith.subf %206, %220 : vector<2x8x32xf32>
    %cst_46 = arith.constant 9.99999996E-13 : f32
    %222 = vector.broadcast %cst_46 : f32 to vector<2x8x1xf32>
    %223 = arith.addf %219, %222 : vector<2x8x1xf32>
    %224 = math.rsqrt %223 : vector<2x8x1xf32>
    %225 = vector.broadcast %224 : vector<2x8x1xf32> to vector<2x8x32xf32>
    %226 = arith.mulf %221, %225 : vector<2x8x32xf32>
    %227 = vector.shape_cast %207 : vector<1x32xf32> to vector<1x1x32xf32>
    %228 = vector.broadcast %227 : vector<1x1x32xf32> to vector<2x8x32xf32>
    %229 = arith.mulf %226, %228 : vector<2x8x32xf32>
    %230 = vector.shape_cast %208 : vector<1x32xf32> to vector<1x1x32xf32>
    %231 = vector.broadcast %230 : vector<1x1x32xf32> to vector<2x8x32xf32>
    %232 = arith.addf %229, %231 : vector<2x8x32xf32>
    %233 = vector.broadcast %12 : vector<2x8x1xf32> to vector<2x8x32xf32>
    %234 = arith.mulf %232, %233 : vector<2x8x32xf32>
    %235 = arith.truncf %234 : vector<2x8x32xf32> to vector<2x8x32xbf16>
    %236 = vector.extract_strided_slice %64 {offsets = [0, 256], sizes = [32, 128], strides = [1, 1]} : vector<32x384xbf16> to vector<32x128xbf16>
    %cst_47 = arith.constant dense<0.000000e+00> : vector<2x8x128xf32>
    %237 = tpu.matmul %235, %236, %cst_47 {dimension_numbers = #tpu.dot_dimension_numbers<[2], [0], [0, 1], [1], [0, 0, 0, 1, 1, 1], [], []>} : vector<2x8x32xbf16>, vector<32x128xbf16>, vector<2x8x128xf32> -> vector<2x8x128xf32>
    %238 = vector.extract_strided_slice %66 {offsets = [5, 0], sizes = [1, 128], strides = [1, 1]} : vector<16x128xf32> to vector<1x128xf32>
    %239 = vector.shape_cast %238 : vector<1x128xf32> to vector<1x1x128xf32>
    %240 = vector.broadcast %239 : vector<1x1x128xf32> to vector<2x8x128xf32>
    %241 = arith.addf %237, %240 : vector<2x8x128xf32>
    %cst_48 = arith.constant 5.000000e-01 : f32
    %242 = vector.broadcast %cst_48 : f32 to vector<2x8x128xf32>
    %243 = arith.mulf %242, %241 : vector<2x8x128xf32>
    %cst_49 = arith.constant 4.471500e-02 : f32
    %244 = vector.broadcast %cst_49 : f32 to vector<2x8x128xf32>
    %245 = arith.mulf %244, %241 : vector<2x8x128xf32>
    %246 = arith.mulf %245, %241 : vector<2x8x128xf32>
    %247 = arith.mulf %246, %241 : vector<2x8x128xf32>
    %248 = arith.addf %241, %247 : vector<2x8x128xf32>
    %cst_50 = arith.constant 0.797884583 : f32
    %249 = vector.broadcast %cst_50 : f32 to vector<2x8x128xf32>
    %250 = arith.mulf %249, %248 : vector<2x8x128xf32>
    %251 = math.tanh %250 : vector<2x8x128xf32>
    %cst_51 = arith.constant 1.000000e+00 : f32
    %252 = vector.broadcast %cst_51 : f32 to vector<2x8x128xf32>
    %253 = arith.addf %252, %251 : vector<2x8x128xf32>
    %254 = arith.mulf %243, %253 : vector<2x8x128xf32>
    %255 = arith.truncf %254 : vector<2x8x128xf32> to vector<2x8x128xbf16>
    %c0_52 = arith.constant 0 : index
    %c0_53 = arith.constant 0 : index
    %c0_54 = arith.constant 0 : index
    %256 = vector.load %arg6[%c0_52, %c0_53, %c0_54] : memref<2x128x32xbf16, #tpu.memory_space<vmem>>, vector<1x128x32xbf16>
    %257 = vector.shape_cast %256 : vector<1x128x32xbf16> to vector<128x32xbf16>
    %cst_55 = arith.constant dense<0.000000e+00> : vector<2x8x32xf32>
    %258 = tpu.matmul %255, %257, %cst_55 {dimension_numbers = #tpu.dot_dimension_numbers<[2], [0], [0, 1], [1], [0, 0, 0, 1, 1, 1], [], []>} : vector<2x8x128xbf16>, vector<128x32xbf16>, vector<2x8x32xf32> -> vector<2x8x32xf32>
    %259 = vector.extract_strided_slice %66 {offsets = [6, 0], sizes = [1, 32], strides = [1, 1]} : vector<16x128xf32> to vector<1x32xf32>
    %260 = vector.shape_cast %259 : vector<1x32xf32> to vector<1x1x32xf32>
    %261 = vector.broadcast %260 : vector<1x1x32xf32> to vector<2x8x32xf32>
    %262 = arith.addf %258, %261 : vector<2x8x32xf32>
    %263 = arith.addf %262, %234 : vector<2x8x32xf32>
    %264 = vector.extract_strided_slice %66 {offsets = [11, 0], sizes = [1, 32], strides = [1, 1]} : vector<16x128xf32> to vector<1x32xf32>
    %265 = vector.extract_strided_slice %66 {offsets = [12, 0], sizes = [1, 32], strides = [1, 1]} : vector<16x128xf32> to vector<1x32xf32>
    %cst_56 = arith.constant dense<0.000000e+00> : vector<2x8xf32>
    %266 = vector.multi_reduction <add>, %263, %cst_56 [2] : vector<2x8x32xf32> to vector<2x8xf32>
    %267 = vector.shape_cast %266 : vector<2x8xf32> to vector<2x8x1xf32>
    %cst_57 = arith.constant 3.200000e+01 : f32
    %268 = vector.broadcast %cst_57 : f32 to vector<2x8x1xf32>
    %269 = arith.divf %267, %268 : vector<2x8x1xf32>
    %270 = vector.broadcast %269 : vector<2x8x1xf32> to vector<2x8x32xf32>
    %271 = arith.subf %263, %270 : vector<2x8x32xf32>
    %272 = arith.mulf %271, %271 : vector<2x8x32xf32>
    %cst_58 = arith.constant dense<0.000000e+00> : vector<2x8xf32>
    %273 = vector.multi_reduction <add>, %272, %cst_58 [2] : vector<2x8x32xf32> to vector<2x8xf32>
    %274 = vector.shape_cast %273 : vector<2x8xf32> to vector<2x8x1xf32>
    %cst_59 = arith.constant 3.200000e+01 : f32
    %275 = vector.broadcast %cst_59 : f32 to vector<2x8x1xf32>
    %276 = arith.divf %274, %275 : vector<2x8x1xf32>
    %277 = vector.broadcast %269 : vector<2x8x1xf32> to vector<2x8x32xf32>
    %278 = arith.subf %263, %277 : vector<2x8x32xf32>
    %cst_60 = arith.constant 9.99999996E-13 : f32
    %279 = vector.broadcast %cst_60 : f32 to vector<2x8x1xf32>
    %280 = arith.addf %276, %279 : vector<2x8x1xf32>
    %281 = math.rsqrt %280 : vector<2x8x1xf32>
    %282 = vector.broadcast %281 : vector<2x8x1xf32> to vector<2x8x32xf32>
    %283 = arith.mulf %278, %282 : vector<2x8x32xf32>
    %284 = vector.shape_cast %264 : vector<1x32xf32> to vector<1x1x32xf32>
    %285 = vector.broadcast %284 : vector<1x1x32xf32> to vector<2x8x32xf32>
    %286 = arith.mulf %283, %285 : vector<2x8x32xf32>
    %287 = vector.shape_cast %265 : vector<1x32xf32> to vector<1x1x32xf32>
    %288 = vector.broadcast %287 : vector<1x1x32xf32> to vector<2x8x32xf32>
    %289 = arith.addf %286, %288 : vector<2x8x32xf32>
    %290 = vector.broadcast %12 : vector<2x8x1xf32> to vector<2x8x32xf32>
    %291 = arith.mulf %289, %290 : vector<2x8x32xf32>
    %c1 = arith.constant 1 : index
    %c0_61 = arith.constant 0 : index
    %c0_62 = arith.constant 0 : index
    %292 = vector.load %arg5[%c1, %c0_61, %c0_62] : memref<2x32x384xbf16, #tpu.memory_space<vmem>>, vector<1x32x384xbf16>
    %293 = vector.shape_cast %292 : vector<1x32x384xbf16> to vector<32x384xbf16>
    %c1_63 = arith.constant 1 : index
    %c0_64 = arith.constant 0 : index
    %c0_65 = arith.constant 0 : index
    %294 = vector.load %arg7[%c1_63, %c0_64, %c0_65] : memref<2x16x128xf32, #tpu.memory_space<vmem>>, vector<1x16x128xf32>
    %295 = vector.shape_cast %294 : vector<1x16x128xf32> to vector<16x128xf32>
    %296 = arith.truncf %291 : vector<2x8x32xf32> to vector<2x8x32xbf16>
    %297 = vector.extract_strided_slice %293 {offsets = [0, 0], sizes = [32, 96], strides = [1, 1]} : vector<32x384xbf16> to vector<32x96xbf16>
    %cst_66 = arith.constant dense<0.000000e+00> : vector<2x8x96xf32>
    %298 = tpu.matmul %296, %297, %cst_66 {dimension_numbers = #tpu.dot_dimension_numbers<[2], [0], [0, 1], [1], [0, 0, 0, 1, 1, 1], [], []>} : vector<2x8x32xbf16>, vector<32x96xbf16>, vector<2x8x96xf32> -> vector<2x8x96xf32>
    %299 = vector.extract_strided_slice %295 {offsets = [0, 0], sizes = [1, 96], strides = [1, 1]} : vector<16x128xf32> to vector<1x96xf32>
    %300 = vector.shape_cast %299 : vector<1x96xf32> to vector<1x1x96xf32>
    %301 = vector.broadcast %300 : vector<1x1x96xf32> to vector<2x8x96xf32>
    %302 = arith.addf %298, %301 : vector<2x8x96xf32>
    %303 = arith.truncf %302 : vector<2x8x96xf32> to vector<2x8x96xbf16>
    %304 = vector.extract_strided_slice %303 {offsets = [0, 0, 0], sizes = [2, 8, 32], strides = [1, 1, 1]} : vector<2x8x96xbf16> to vector<2x8x32xbf16>
    %305 = vector.extract_strided_slice %303 {offsets = [0, 0, 32], sizes = [2, 8, 32], strides = [1, 1, 1]} : vector<2x8x96xbf16> to vector<2x8x32xbf16>
    %306 = vector.extract_strided_slice %303 {offsets = [0, 0, 64], sizes = [2, 8, 32], strides = [1, 1, 1]} : vector<2x8x96xbf16> to vector<2x8x32xbf16>
    %307 = vector.extract_strided_slice %293 {offsets = [0, 96], sizes = [32, 32], strides = [1, 1]} : vector<32x384xbf16> to vector<32x32xbf16>
    %308 = vector.extract_strided_slice %295 {offsets = [1, 0], sizes = [1, 32], strides = [1, 1]} : vector<16x128xf32> to vector<1x32xf32>
    %309 = vector.extract_strided_slice %304 {offsets = [0, 0, 0], sizes = [2, 8, 8], strides = [1, 1, 1]} : vector<2x8x32xbf16> to vector<2x8x8xbf16>
    %310 = vector.extract_strided_slice %304 {offsets = [0, 0, 8], sizes = [2, 8, 8], strides = [1, 1, 1]} : vector<2x8x32xbf16> to vector<2x8x8xbf16>
    %311 = vector.extract_strided_slice %304 {offsets = [0, 0, 16], sizes = [2, 8, 8], strides = [1, 1, 1]} : vector<2x8x32xbf16> to vector<2x8x8xbf16>
    %312 = vector.extract_strided_slice %304 {offsets = [0, 0, 24], sizes = [2, 8, 8], strides = [1, 1, 1]} : vector<2x8x32xbf16> to vector<2x8x8xbf16>
    %313 = tpu.concatenate %309, %310, %311, %312 in 0 : vector<2x8x8xbf16>, vector<2x8x8xbf16>, vector<2x8x8xbf16>, vector<2x8x8xbf16> -> vector<8x8x8xbf16>
    %314 = vector.extract_strided_slice %305 {offsets = [0, 0, 0], sizes = [2, 8, 8], strides = [1, 1, 1]} : vector<2x8x32xbf16> to vector<2x8x8xbf16>
    %315 = vector.extract_strided_slice %305 {offsets = [0, 0, 8], sizes = [2, 8, 8], strides = [1, 1, 1]} : vector<2x8x32xbf16> to vector<2x8x8xbf16>
    %316 = vector.extract_strided_slice %305 {offsets = [0, 0, 16], sizes = [2, 8, 8], strides = [1, 1, 1]} : vector<2x8x32xbf16> to vector<2x8x8xbf16>
    %317 = vector.extract_strided_slice %305 {offsets = [0, 0, 24], sizes = [2, 8, 8], strides = [1, 1, 1]} : vector<2x8x32xbf16> to vector<2x8x8xbf16>
    %318 = tpu.concatenate %314, %315, %316, %317 in 0 : vector<2x8x8xbf16>, vector<2x8x8xbf16>, vector<2x8x8xbf16>, vector<2x8x8xbf16> -> vector<8x8x8xbf16>
    %319 = vector.extract_strided_slice %306 {offsets = [0, 0, 0], sizes = [2, 8, 8], strides = [1, 1, 1]} : vector<2x8x32xbf16> to vector<2x8x8xbf16>
    %320 = vector.extract_strided_slice %306 {offsets = [0, 0, 8], sizes = [2, 8, 8], strides = [1, 1, 1]} : vector<2x8x32xbf16> to vector<2x8x8xbf16>
    %321 = vector.extract_strided_slice %306 {offsets = [0, 0, 16], sizes = [2, 8, 8], strides = [1, 1, 1]} : vector<2x8x32xbf16> to vector<2x8x8xbf16>
    %322 = vector.extract_strided_slice %306 {offsets = [0, 0, 24], sizes = [2, 8, 8], strides = [1, 1, 1]} : vector<2x8x32xbf16> to vector<2x8x8xbf16>
    %323 = tpu.concatenate %319, %320, %321, %322 in 0 : vector<2x8x8xbf16>, vector<2x8x8xbf16>, vector<2x8x8xbf16>, vector<2x8x8xbf16> -> vector<8x8x8xbf16>
    "tpu.trace_start"() <{level = 10 : i32, message = "bqd,bkd->bqk"}> : () -> ()
    %cst_67 = arith.constant dense<0.000000e+00> : vector<8x8x8xf32>
    %324 = tpu.matmul %313, %318, %cst_67 {dimension_numbers = #tpu.dot_dimension_numbers<[2], [2], [1], [1], [0, 0, 0, 1, 1, 1], [0], [0]>} : vector<8x8x8xbf16>, vector<8x8x8xbf16>, vector<8x8x8xf32> -> vector<8x8x8xf32>
    "tpu.trace_stop"() : () -> ()
    %325 = vector.broadcast %7 : vector<8x1x8xf32> to vector<8x8x8xf32>
    %326 = arith.addf %324, %325 : vector<8x8x8xf32>
    %cst_68 = arith.constant dense<0xFF800000> : vector<8x8xf32>
    %327 = vector.multi_reduction <maximumf>, %326, %cst_68 [2] : vector<8x8x8xf32> to vector<8x8xf32>
    %328 = vector.shape_cast %327 : vector<8x8xf32> to vector<8x8x1xf32>
    %329 = vector.broadcast %328 : vector<8x8x1xf32> to vector<8x8x8xf32>
    %330 = arith.subf %326, %329 : vector<8x8x8xf32>
    %331 = math.exp %330 : vector<8x8x8xf32>
    %cst_69 = arith.constant dense<0.000000e+00> : vector<8x8xf32>
    %332 = vector.multi_reduction <add>, %331, %cst_69 [2] : vector<8x8x8xf32> to vector<8x8xf32>
    %333 = vector.shape_cast %332 : vector<8x8xf32> to vector<8x8x1xf32>
    %334 = tpu.reciprocal %333 {approx = true} : vector<8x8x1xf32> -> vector<8x8x1xf32>
    %335 = vector.broadcast %334 : vector<8x8x1xf32> to vector<8x8x8xf32>
    %336 = arith.mulf %331, %335 : vector<8x8x8xf32>
    %337 = arith.truncf %336 : vector<8x8x8xf32> to vector<8x8x8xbf16>
    "tpu.trace_start"() <{level = 10 : i32, message = "bqk,bkd->bqd"}> : () -> ()
    %cst_70 = arith.constant dense<0.000000e+00> : vector<8x8x8xf32>
    %338 = tpu.matmul %337, %323, %cst_70 {dimension_numbers = #tpu.dot_dimension_numbers<[2], [1], [1], [2], [0, 0, 0, 1, 1, 2], [0], [0]>} : vector<8x8x8xbf16>, vector<8x8x8xbf16>, vector<8x8x8xf32> -> vector<8x8x8xf32>
    "tpu.trace_stop"() : () -> ()
    %339 = vector.extract_strided_slice %338 {offsets = [0, 0, 0], sizes = [2, 8, 8], strides = [1, 1, 1]} : vector<8x8x8xf32> to vector<2x8x8xf32>
    %340 = vector.extract_strided_slice %338 {offsets = [2, 0, 0], sizes = [2, 8, 8], strides = [1, 1, 1]} : vector<8x8x8xf32> to vector<2x8x8xf32>
    %341 = vector.extract_strided_slice %338 {offsets = [4, 0, 0], sizes = [2, 8, 8], strides = [1, 1, 1]} : vector<8x8x8xf32> to vector<2x8x8xf32>
    %342 = vector.extract_strided_slice %338 {offsets = [6, 0, 0], sizes = [2, 8, 8], strides = [1, 1, 1]} : vector<8x8x8xf32> to vector<2x8x8xf32>
    %343 = tpu.concatenate %339, %340, %341, %342 in 2 : vector<2x8x8xf32>, vector<2x8x8xf32>, vector<2x8x8xf32>, vector<2x8x8xf32> -> vector<2x8x32xf32>
    %344 = arith.truncf %343 : vector<2x8x32xf32> to vector<2x8x32xbf16>
    %cst_71 = arith.constant dense<0.000000e+00> : vector<2x8x32xf32>
    %345 = tpu.matmul %344, %307, %cst_71 {dimension_numbers = #tpu.dot_dimension_numbers<[2], [0], [0, 1], [1], [0, 0, 0, 1, 1, 1], [], []>} : vector<2x8x32xbf16>, vector<32x32xbf16>, vector<2x8x32xf32> -> vector<2x8x32xf32>
    %346 = vector.shape_cast %308 : vector<1x32xf32> to vector<1x1x32xf32>
    %347 = vector.broadcast %346 : vector<1x1x32xf32> to vector<2x8x32xf32>
    %348 = arith.addf %345, %347 : vector<2x8x32xf32>
    %349 = arith.addf %348, %291 : vector<2x8x32xf32>
    %350 = vector.extract_strided_slice %295 {offsets = [7, 0], sizes = [1, 32], strides = [1, 1]} : vector<16x128xf32> to vector<1x32xf32>
    %351 = vector.extract_strided_slice %295 {offsets = [8, 0], sizes = [1, 32], strides = [1, 1]} : vector<16x128xf32> to vector<1x32xf32>
    %cst_72 = arith.constant dense<0.000000e+00> : vector<2x8xf32>
    %352 = vector.multi_reduction <add>, %349, %cst_72 [2] : vector<2x8x32xf32> to vector<2x8xf32>
    %353 = vector.shape_cast %352 : vector<2x8xf32> to vector<2x8x1xf32>
    %cst_73 = arith.constant 3.200000e+01 : f32
    %354 = vector.broadcast %cst_73 : f32 to vector<2x8x1xf32>
    %355 = arith.divf %353, %354 : vector<2x8x1xf32>
    %356 = vector.broadcast %355 : vector<2x8x1xf32> to vector<2x8x32xf32>
    %357 = arith.subf %349, %356 : vector<2x8x32xf32>
    %358 = arith.mulf %357, %357 : vector<2x8x32xf32>
    %cst_74 = arith.constant dense<0.000000e+00> : vector<2x8xf32>
    %359 = vector.multi_reduction <add>, %358, %cst_74 [2] : vector<2x8x32xf32> to vector<2x8xf32>
    %360 = vector.shape_cast %359 : vector<2x8xf32> to vector<2x8x1xf32>
    %cst_75 = arith.constant 3.200000e+01 : f32
    %361 = vector.broadcast %cst_75 : f32 to vector<2x8x1xf32>
    %362 = arith.divf %360, %361 : vector<2x8x1xf32>
    %363 = vector.broadcast %355 : vector<2x8x1xf32> to vector<2x8x32xf32>
    %364 = arith.subf %349, %363 : vector<2x8x32xf32>
    %cst_76 = arith.constant 9.99999996E-13 : f32
    %365 = vector.broadcast %cst_76 : f32 to vector<2x8x1xf32>
    %366 = arith.addf %362, %365 : vector<2x8x1xf32>
    %367 = math.rsqrt %366 : vector<2x8x1xf32>
    %368 = vector.broadcast %367 : vector<2x8x1xf32> to vector<2x8x32xf32>
    %369 = arith.mulf %364, %368 : vector<2x8x32xf32>
    %370 = vector.shape_cast %350 : vector<1x32xf32> to vector<1x1x32xf32>
    %371 = vector.broadcast %370 : vector<1x1x32xf32> to vector<2x8x32xf32>
    %372 = arith.mulf %369, %371 : vector<2x8x32xf32>
    %373 = vector.shape_cast %351 : vector<1x32xf32> to vector<1x1x32xf32>
    %374 = vector.broadcast %373 : vector<1x1x32xf32> to vector<2x8x32xf32>
    %375 = arith.addf %372, %374 : vector<2x8x32xf32>
    %376 = vector.broadcast %12 : vector<2x8x1xf32> to vector<2x8x32xf32>
    %377 = arith.mulf %375, %376 : vector<2x8x32xf32>
    %378 = arith.truncf %377 : vector<2x8x32xf32> to vector<2x8x32xbf16>
    %379 = vector.extract_strided_slice %293 {offsets = [0, 128], sizes = [32, 32], strides = [1, 1]} : vector<32x384xbf16> to vector<32x32xbf16>
    %cst_77 = arith.constant dense<0.000000e+00> : vector<2x8x32xf32>
    %380 = tpu.matmul %378, %379, %cst_77 {dimension_numbers = #tpu.dot_dimension_numbers<[2], [0], [0, 1], [1], [0, 0, 0, 1, 1, 1], [], []>} : vector<2x8x32xbf16>, vector<32x32xbf16>, vector<2x8x32xf32> -> vector<2x8x32xf32>
    %381 = vector.extract_strided_slice %295 {offsets = [2, 0], sizes = [1, 32], strides = [1, 1]} : vector<16x128xf32> to vector<1x32xf32>
    %382 = vector.shape_cast %381 : vector<1x32xf32> to vector<1x1x32xf32>
    %383 = vector.broadcast %382 : vector<1x1x32xf32> to vector<2x8x32xf32>
    %384 = arith.addf %380, %383 : vector<2x8x32xf32>
    %385 = arith.truncf %384 : vector<2x8x32xf32> to vector<2x8x32xbf16>
    %386 = vector.extract_strided_slice %293 {offsets = [0, 160], sizes = [32, 64], strides = [1, 1]} : vector<32x384xbf16> to vector<32x64xbf16>
    %cst_78 = arith.constant dense<0.000000e+00> : vector<2x16x64xf32>
    %387 = tpu.matmul %62, %386, %cst_78 {dimension_numbers = #tpu.dot_dimension_numbers<[2], [0], [0, 1], [1], [0, 0, 0, 1, 1, 1], [], []>} : vector<2x16x32xbf16>, vector<32x64xbf16>, vector<2x16x64xf32> -> vector<2x16x64xf32>
    %388 = vector.extract_strided_slice %295 {offsets = [3, 0], sizes = [1, 64], strides = [1, 1]} : vector<16x128xf32> to vector<1x64xf32>
    %389 = vector.shape_cast %388 : vector<1x64xf32> to vector<1x1x64xf32>
    %390 = vector.broadcast %389 : vector<1x1x64xf32> to vector<2x16x64xf32>
    %391 = arith.addf %387, %390 : vector<2x16x64xf32>
    %392 = arith.truncf %391 : vector<2x16x64xf32> to vector<2x16x64xbf16>
    %393 = vector.extract_strided_slice %392 {offsets = [0, 0, 0], sizes = [2, 16, 32], strides = [1, 1, 1]} : vector<2x16x64xbf16> to vector<2x16x32xbf16>
    %394 = vector.extract_strided_slice %392 {offsets = [0, 0, 32], sizes = [2, 16, 32], strides = [1, 1, 1]} : vector<2x16x64xbf16> to vector<2x16x32xbf16>
    %395 = vector.extract_strided_slice %293 {offsets = [0, 224], sizes = [32, 32], strides = [1, 1]} : vector<32x384xbf16> to vector<32x32xbf16>
    %396 = vector.extract_strided_slice %295 {offsets = [4, 0], sizes = [1, 32], strides = [1, 1]} : vector<16x128xf32> to vector<1x32xf32>
    %397 = vector.extract_strided_slice %385 {offsets = [0, 0, 0], sizes = [2, 8, 8], strides = [1, 1, 1]} : vector<2x8x32xbf16> to vector<2x8x8xbf16>
    %398 = vector.extract_strided_slice %385 {offsets = [0, 0, 8], sizes = [2, 8, 8], strides = [1, 1, 1]} : vector<2x8x32xbf16> to vector<2x8x8xbf16>
    %399 = vector.extract_strided_slice %385 {offsets = [0, 0, 16], sizes = [2, 8, 8], strides = [1, 1, 1]} : vector<2x8x32xbf16> to vector<2x8x8xbf16>
    %400 = vector.extract_strided_slice %385 {offsets = [0, 0, 24], sizes = [2, 8, 8], strides = [1, 1, 1]} : vector<2x8x32xbf16> to vector<2x8x8xbf16>
    %401 = tpu.concatenate %397, %398, %399, %400 in 0 : vector<2x8x8xbf16>, vector<2x8x8xbf16>, vector<2x8x8xbf16>, vector<2x8x8xbf16> -> vector<8x8x8xbf16>
    %402 = vector.extract_strided_slice %393 {offsets = [0, 0, 0], sizes = [2, 16, 8], strides = [1, 1, 1]} : vector<2x16x32xbf16> to vector<2x16x8xbf16>
    %403 = vector.extract_strided_slice %393 {offsets = [0, 0, 8], sizes = [2, 16, 8], strides = [1, 1, 1]} : vector<2x16x32xbf16> to vector<2x16x8xbf16>
    %404 = vector.extract_strided_slice %393 {offsets = [0, 0, 16], sizes = [2, 16, 8], strides = [1, 1, 1]} : vector<2x16x32xbf16> to vector<2x16x8xbf16>
    %405 = vector.extract_strided_slice %393 {offsets = [0, 0, 24], sizes = [2, 16, 8], strides = [1, 1, 1]} : vector<2x16x32xbf16> to vector<2x16x8xbf16>
    %406 = tpu.concatenate %402, %403, %404, %405 in 0 : vector<2x16x8xbf16>, vector<2x16x8xbf16>, vector<2x16x8xbf16>, vector<2x16x8xbf16> -> vector<8x16x8xbf16>
    %407 = vector.extract_strided_slice %394 {offsets = [0, 0, 0], sizes = [2, 16, 8], strides = [1, 1, 1]} : vector<2x16x32xbf16> to vector<2x16x8xbf16>
    %408 = vector.extract_strided_slice %394 {offsets = [0, 0, 8], sizes = [2, 16, 8], strides = [1, 1, 1]} : vector<2x16x32xbf16> to vector<2x16x8xbf16>
    %409 = vector.extract_strided_slice %394 {offsets = [0, 0, 16], sizes = [2, 16, 8], strides = [1, 1, 1]} : vector<2x16x32xbf16> to vector<2x16x8xbf16>
    %410 = vector.extract_strided_slice %394 {offsets = [0, 0, 24], sizes = [2, 16, 8], strides = [1, 1, 1]} : vector<2x16x32xbf16> to vector<2x16x8xbf16>
    %411 = tpu.concatenate %407, %408, %409, %410 in 0 : vector<2x16x8xbf16>, vector<2x16x8xbf16>, vector<2x16x8xbf16>, vector<2x16x8xbf16> -> vector<8x16x8xbf16>
    "tpu.trace_start"() <{level = 10 : i32, message = "bqd,bkd->bqk"}> : () -> ()
    %cst_79 = arith.constant dense<0.000000e+00> : vector<8x8x16xf32>
    %412 = tpu.matmul %401, %406, %cst_79 {dimension_numbers = #tpu.dot_dimension_numbers<[2], [2], [1], [1], [0, 0, 0, 1, 1, 1], [0], [0]>} : vector<8x8x8xbf16>, vector<8x16x8xbf16>, vector<8x8x16xf32> -> vector<8x8x16xf32>
    "tpu.trace_stop"() : () -> ()
    %cst_80 = arith.constant dense<0xFF800000> : vector<8x8xf32>
    %413 = vector.multi_reduction <maximumf>, %412, %cst_80 [2] : vector<8x8x16xf32> to vector<8x8xf32>
    %414 = vector.shape_cast %413 : vector<8x8xf32> to vector<8x8x1xf32>
    %415 = vector.broadcast %414 : vector<8x8x1xf32> to vector<8x8x16xf32>
    %416 = arith.subf %412, %415 : vector<8x8x16xf32>
    %417 = math.exp %416 : vector<8x8x16xf32>
    %cst_81 = arith.constant dense<0.000000e+00> : vector<8x8xf32>
    %418 = vector.multi_reduction <add>, %417, %cst_81 [2] : vector<8x8x16xf32> to vector<8x8xf32>
    %419 = vector.shape_cast %418 : vector<8x8xf32> to vector<8x8x1xf32>
    %420 = tpu.reciprocal %419 {approx = true} : vector<8x8x1xf32> -> vector<8x8x1xf32>
    %421 = vector.broadcast %420 : vector<8x8x1xf32> to vector<8x8x16xf32>
    %422 = arith.mulf %417, %421 : vector<8x8x16xf32>
    %423 = arith.truncf %422 : vector<8x8x16xf32> to vector<8x8x16xbf16>
    "tpu.trace_start"() <{level = 10 : i32, message = "bqk,bkd->bqd"}> : () -> ()
    %cst_82 = arith.constant dense<0.000000e+00> : vector<8x8x8xf32>
    %424 = tpu.matmul %423, %411, %cst_82 {dimension_numbers = #tpu.dot_dimension_numbers<[2], [1], [1], [2], [0, 0, 0, 1, 1, 2], [0], [0]>} : vector<8x8x16xbf16>, vector<8x16x8xbf16>, vector<8x8x8xf32> -> vector<8x8x8xf32>
    "tpu.trace_stop"() : () -> ()
    %425 = vector.extract_strided_slice %424 {offsets = [0, 0, 0], sizes = [2, 8, 8], strides = [1, 1, 1]} : vector<8x8x8xf32> to vector<2x8x8xf32>
    %426 = vector.extract_strided_slice %424 {offsets = [2, 0, 0], sizes = [2, 8, 8], strides = [1, 1, 1]} : vector<8x8x8xf32> to vector<2x8x8xf32>
    %427 = vector.extract_strided_slice %424 {offsets = [4, 0, 0], sizes = [2, 8, 8], strides = [1, 1, 1]} : vector<8x8x8xf32> to vector<2x8x8xf32>
    %428 = vector.extract_strided_slice %424 {offsets = [6, 0, 0], sizes = [2, 8, 8], strides = [1, 1, 1]} : vector<8x8x8xf32> to vector<2x8x8xf32>
    %429 = tpu.concatenate %425, %426, %427, %428 in 2 : vector<2x8x8xf32>, vector<2x8x8xf32>, vector<2x8x8xf32>, vector<2x8x8xf32> -> vector<2x8x32xf32>
    %430 = arith.truncf %429 : vector<2x8x32xf32> to vector<2x8x32xbf16>
    %cst_83 = arith.constant dense<0.000000e+00> : vector<2x8x32xf32>
    %431 = tpu.matmul %430, %395, %cst_83 {dimension_numbers = #tpu.dot_dimension_numbers<[2], [0], [0, 1], [1], [0, 0, 0, 1, 1, 1], [], []>} : vector<2x8x32xbf16>, vector<32x32xbf16>, vector<2x8x32xf32> -> vector<2x8x32xf32>
    %432 = vector.shape_cast %396 : vector<1x32xf32> to vector<1x1x32xf32>
    %433 = vector.broadcast %432 : vector<1x1x32xf32> to vector<2x8x32xf32>
    %434 = arith.addf %431, %433 : vector<2x8x32xf32>
    %435 = arith.addf %434, %377 : vector<2x8x32xf32>
    %436 = vector.extract_strided_slice %295 {offsets = [9, 0], sizes = [1, 32], strides = [1, 1]} : vector<16x128xf32> to vector<1x32xf32>
    %437 = vector.extract_strided_slice %295 {offsets = [10, 0], sizes = [1, 32], strides = [1, 1]} : vector<16x128xf32> to vector<1x32xf32>
    %cst_84 = arith.constant dense<0.000000e+00> : vector<2x8xf32>
    %438 = vector.multi_reduction <add>, %435, %cst_84 [2] : vector<2x8x32xf32> to vector<2x8xf32>
    %439 = vector.shape_cast %438 : vector<2x8xf32> to vector<2x8x1xf32>
    %cst_85 = arith.constant 3.200000e+01 : f32
    %440 = vector.broadcast %cst_85 : f32 to vector<2x8x1xf32>
    %441 = arith.divf %439, %440 : vector<2x8x1xf32>
    %442 = vector.broadcast %441 : vector<2x8x1xf32> to vector<2x8x32xf32>
    %443 = arith.subf %435, %442 : vector<2x8x32xf32>
    %444 = arith.mulf %443, %443 : vector<2x8x32xf32>
    %cst_86 = arith.constant dense<0.000000e+00> : vector<2x8xf32>
    %445 = vector.multi_reduction <add>, %444, %cst_86 [2] : vector<2x8x32xf32> to vector<2x8xf32>
    %446 = vector.shape_cast %445 : vector<2x8xf32> to vector<2x8x1xf32>
    %cst_87 = arith.constant 3.200000e+01 : f32
    %447 = vector.broadcast %cst_87 : f32 to vector<2x8x1xf32>
    %448 = arith.divf %446, %447 : vector<2x8x1xf32>
    %449 = vector.broadcast %441 : vector<2x8x1xf32> to vector<2x8x32xf32>
    %450 = arith.subf %435, %449 : vector<2x8x32xf32>
    %cst_88 = arith.constant 9.99999996E-13 : f32
    %451 = vector.broadcast %cst_88 : f32 to vector<2x8x1xf32>
    %452 = arith.addf %448, %451 : vector<2x8x1xf32>
    %453 = math.rsqrt %452 : vector<2x8x1xf32>
    %454 = vector.broadcast %453 : vector<2x8x1xf32> to vector<2x8x32xf32>
    %455 = arith.mulf %450, %454 : vector<2x8x32xf32>
    %456 = vector.shape_cast %436 : vector<1x32xf32> to vector<1x1x32xf32>
    %457 = vector.broadcast %456 : vector<1x1x32xf32> to vector<2x8x32xf32>
    %458 = arith.mulf %455, %457 : vector<2x8x32xf32>
    %459 = vector.shape_cast %437 : vector<1x32xf32> to vector<1x1x32xf32>
    %460 = vector.broadcast %459 : vector<1x1x32xf32> to vector<2x8x32xf32>
    %461 = arith.addf %458, %460 : vector<2x8x32xf32>
    %462 = vector.broadcast %12 : vector<2x8x1xf32> to vector<2x8x32xf32>
    %463 = arith.mulf %461, %462 : vector<2x8x32xf32>
    %464 = arith.truncf %463 : vector<2x8x32xf32> to vector<2x8x32xbf16>
    %465 = vector.extract_strided_slice %293 {offsets = [0, 256], sizes = [32, 128], strides = [1, 1]} : vector<32x384xbf16> to vector<32x128xbf16>
    %cst_89 = arith.constant dense<0.000000e+00> : vector<2x8x128xf32>
    %466 = tpu.matmul %464, %465, %cst_89 {dimension_numbers = #tpu.dot_dimension_numbers<[2], [0], [0, 1], [1], [0, 0, 0, 1, 1, 1], [], []>} : vector<2x8x32xbf16>, vector<32x128xbf16>, vector<2x8x128xf32> -> vector<2x8x128xf32>
    %467 = vector.extract_strided_slice %295 {offsets = [5, 0], sizes = [1, 128], strides = [1, 1]} : vector<16x128xf32> to vector<1x128xf32>
    %468 = vector.shape_cast %467 : vector<1x128xf32> to vector<1x1x128xf32>
    %469 = vector.broadcast %468 : vector<1x1x128xf32> to vector<2x8x128xf32>
    %470 = arith.addf %466, %469 : vector<2x8x128xf32>
    %cst_90 = arith.constant 5.000000e-01 : f32
    %471 = vector.broadcast %cst_90 : f32 to vector<2x8x128xf32>
    %472 = arith.mulf %471, %470 : vector<2x8x128xf32>
    %cst_91 = arith.constant 4.471500e-02 : f32
    %473 = vector.broadcast %cst_91 : f32 to vector<2x8x128xf32>
    %474 = arith.mulf %473, %470 : vector<2x8x128xf32>
    %475 = arith.mulf %474, %470 : vector<2x8x128xf32>
    %476 = arith.mulf %475, %470 : vector<2x8x128xf32>
    %477 = arith.addf %470, %476 : vector<2x8x128xf32>
    %cst_92 = arith.constant 0.797884583 : f32
    %478 = vector.broadcast %cst_92 : f32 to vector<2x8x128xf32>
    %479 = arith.mulf %478, %477 : vector<2x8x128xf32>
    %480 = math.tanh %479 : vector<2x8x128xf32>
    %cst_93 = arith.constant 1.000000e+00 : f32
    %481 = vector.broadcast %cst_93 : f32 to vector<2x8x128xf32>
    %482 = arith.addf %481, %480 : vector<2x8x128xf32>
    %483 = arith.mulf %472, %482 : vector<2x8x128xf32>
    %484 = arith.truncf %483 : vector<2x8x128xf32> to vector<2x8x128xbf16>
    %c1_94 = arith.constant 1 : index
    %c0_95 = arith.constant 0 : index
    %c0_96 = arith.constant 0 : index
    %485 = vector.load %arg6[%c1_94, %c0_95, %c0_96] : memref<2x128x32xbf16, #tpu.memory_space<vmem>>, vector<1x128x32xbf16>
    %486 = vector.shape_cast %485 : vector<1x128x32xbf16> to vector<128x32xbf16>
    %cst_97 = arith.constant dense<0.000000e+00> : vector<2x8x32xf32>
    %487 = tpu.matmul %484, %486, %cst_97 {dimension_numbers = #tpu.dot_dimension_numbers<[2], [0], [0, 1], [1], [0, 0, 0, 1, 1, 1], [], []>} : vector<2x8x128xbf16>, vector<128x32xbf16>, vector<2x8x32xf32> -> vector<2x8x32xf32>
    %488 = vector.extract_strided_slice %295 {offsets = [6, 0], sizes = [1, 32], strides = [1, 1]} : vector<16x128xf32> to vector<1x32xf32>
    %489 = vector.shape_cast %488 : vector<1x32xf32> to vector<1x1x32xf32>
    %490 = vector.broadcast %489 : vector<1x1x32xf32> to vector<2x8x32xf32>
    %491 = arith.addf %487, %490 : vector<2x8x32xf32>
    %492 = arith.addf %491, %463 : vector<2x8x32xf32>
    %493 = vector.extract_strided_slice %295 {offsets = [11, 0], sizes = [1, 32], strides = [1, 1]} : vector<16x128xf32> to vector<1x32xf32>
    %494 = vector.extract_strided_slice %295 {offsets = [12, 0], sizes = [1, 32], strides = [1, 1]} : vector<16x128xf32> to vector<1x32xf32>
    %cst_98 = arith.constant dense<0.000000e+00> : vector<2x8xf32>
    %495 = vector.multi_reduction <add>, %492, %cst_98 [2] : vector<2x8x32xf32> to vector<2x8xf32>
    %496 = vector.shape_cast %495 : vector<2x8xf32> to vector<2x8x1xf32>
    %cst_99 = arith.constant 3.200000e+01 : f32
    %497 = vector.broadcast %cst_99 : f32 to vector<2x8x1xf32>
    %498 = arith.divf %496, %497 : vector<2x8x1xf32>
    %499 = vector.broadcast %498 : vector<2x8x1xf32> to vector<2x8x32xf32>
    %500 = arith.subf %492, %499 : vector<2x8x32xf32>
    %501 = arith.mulf %500, %500 : vector<2x8x32xf32>
    %cst_100 = arith.constant dense<0.000000e+00> : vector<2x8xf32>
    %502 = vector.multi_reduction <add>, %501, %cst_100 [2] : vector<2x8x32xf32> to vector<2x8xf32>
    %503 = vector.shape_cast %502 : vector<2x8xf32> to vector<2x8x1xf32>
    %cst_101 = arith.constant 3.200000e+01 : f32
    %504 = vector.broadcast %cst_101 : f32 to vector<2x8x1xf32>
    %505 = arith.divf %503, %504 : vector<2x8x1xf32>
    %506 = vector.broadcast %498 : vector<2x8x1xf32> to vector<2x8x32xf32>
    %507 = arith.subf %492, %506 : vector<2x8x32xf32>
    %cst_102 = arith.constant 9.99999996E-13 : f32
    %508 = vector.broadcast %cst_102 : f32 to vector<2x8x1xf32>
    %509 = arith.addf %505, %508 : vector<2x8x1xf32>
    %510 = math.rsqrt %509 : vector<2x8x1xf32>
    %511 = vector.broadcast %510 : vector<2x8x1xf32> to vector<2x8x32xf32>
    %512 = arith.mulf %507, %511 : vector<2x8x32xf32>
    %513 = vector.shape_cast %493 : vector<1x32xf32> to vector<1x1x32xf32>
    %514 = vector.broadcast %513 : vector<1x1x32xf32> to vector<2x8x32xf32>
    %515 = arith.mulf %512, %514 : vector<2x8x32xf32>
    %516 = vector.shape_cast %494 : vector<1x32xf32> to vector<1x1x32xf32>
    %517 = vector.broadcast %516 : vector<1x1x32xf32> to vector<2x8x32xf32>
    %518 = arith.addf %515, %517 : vector<2x8x32xf32>
    %519 = vector.broadcast %12 : vector<2x8x1xf32> to vector<2x8x32xf32>
    %520 = arith.mulf %518, %519 : vector<2x8x32xf32>
    %c0_103 = arith.constant 0 : index
    %c0_104 = arith.constant 0 : index
    %c0_105 = arith.constant 0 : index
    %521 = vector.load %arg8[%c0_103, %c0_104, %c0_105] : memref<2x8x32xf32, #tpu.memory_space<vmem>>, vector<2x8x32xf32>
    tpu.vector_store %arg8[%c0_103, %c0_104, %c0_105], %520 {strides = array<i32>} : memref<2x8x32xf32, #tpu.memory_space<vmem>>, vector<2x8x32xf32>,
    %c0_106 = arith.constant 0 : index
    %c0_107 = arith.constant 0 : index
    %522 = vector.load %arg4[%c0_106, %c0_107] : memref<32x64xf32, #tpu.memory_space<vmem>>, vector<32x64xf32>
    %cst_108 = arith.constant dense<0.000000e+00> : vector<2x8x64xf32>
    %523 = tpu.matmul %520, %522, %cst_108 {dimension_numbers = #tpu.dot_dimension_numbers<[2], [0], [0, 1], [1], [0, 0, 0, 1, 1, 1], [], []>} : vector<2x8x32xf32>, vector<32x64xf32>, vector<2x8x64xf32> -> vector<2x8x64xf32>
    %c0_109 = arith.constant 0 : index
    %c0_110 = arith.constant 0 : index
    %c0_111 = arith.constant 0 : index
    %524 = vector.load %arg9[%c0_109, %c0_110, %c0_111] : memref<2x8x64xf32, #tpu.memory_space<vmem>>, vector<2x8x64xf32>
    tpu.vector_store %arg9[%c0_109, %c0_110, %c0_111], %523 {strides = array<i32>} : memref<2x8x64xf32, #tpu.memory_space<vmem>>, vector<2x8x64xf32>,
    return
  }
}

</mosaic_0001>

<bundles_post_ra>
// kernel: _forward_jit.1
= control target key start
LH: loop header
LB: loop body
LE: loop exit
PB: predicated region body
PF: predicated region fallthrough
CT: control target
= control target key end

     0   :  { %15 = vsyncpa [#allocation3], 0  ;;  %v55_v0 = vlaneseq  ;;  %v6681_v2 = vmov 0   ;;  %v6682_v3 = vmov 1966171168   ;;  %v6683_v7 = vmov 0.0   ;;  %s8134_s0 = inlined_call_operand.vmem [shape: s32[2,8], index: 0, kind: input, shape index: {}]   ;;  %s8135_s1 = inlined_call_operand.vmem [shape: s32[2,1], index: 1, kind: input, shape index: {}]   ;;  %s8136_s2 = inlined_call_operand.vmem [shape: f32[2,16,32], index: 2, kind: input, shape index: {}]   ;;  %s8137_s3 = inlined_call_operand.vmem [shape: f32[152,32], index: 3, kind: input, shape index: {}]   ;;  %s8138_s4 = inlined_call_operand.vmem [shape: f32[32,64], index: 4, kind: input, shape index: {}]   ;;  %s8139_s5 = inlined_call_operand.vmem [shape: bf16[2,32,384], index: 5, kind: input, shape index: {}]   ;;  %s8140_s6 = inlined_call_operand.vmem [shape: bf16[2,128,32], index: 6, kind: input, shape index: {}]   ;;  %s8141_s7 = inlined_call_operand.vmem [shape: f32[2,16,128], index: 7, kind: input, shape index: {}]   ;;  %s8142_s8 = inlined_call_operand.hbm [shape: f32[2,8,32], index: 8, kind: output, shape index: {0}]   ;;  %s8143_s9 = inlined_call_operand.hbm [shape: f32[2,8,64], index: 9, kind: output, shape index: {1}]  }
   0x1   :  { %v121_v1 = vld [vmem:[%s8135_s1] sm:$0x3]  ;;  %6373 = vset.pattern.permute.xlu0 %v6681_v2  ;;  %v53_v4 = vunpack.c.l.s4 %v6682_v3  ;;  %v205_v6 = vld [vmem:[%s8137_s3 + $0x8] sm:$0xff]  ;;  %5797 = vmatprep.subr.bf16.mxu1 %v6683_v7  ;;  %v6684_v9 = vmov 0.0|0.0   ;;  %v206_v11 = vld [vmem:[%s8137_s3 + $0x10] sm:$0xff] }
   0x2   :  { %v204_v5 = vld [vmem:[%s8137_s3] sm:$0xff]  ;;  %v6759_v8 = vshrl.u32 %v55_v0, 7  ;;  %6320 = vmatprep.subr.bf16.mxu0 %v6684_v9  ;;  %v207_v12 = vld [vmem:[%s8137_s3 + $0x18] sm:$0xff]  ;;  %v122_v14 = vadd.s32 128, %v121_v1  ;;  %v6776_v17 = vand.u32 127, %v55_v0  ;;  %v209_v21 = vld [vmem:[%s8137_s3 + $0x28] sm:$0xff] }
   0x3   :  { %v6321_v10 = vpack.c.bf16 %v205_v6, %v204_v5  ;;  %v54_v13 = vunpack.c.0.s8 %v53_v4  ;;  %v6771_v15 = vld [vmem:[%s8134_s0] sm:$0x3]  ;;  %v6324_v18 = vpack.c.bf16 %v207_v12, %v206_v11  ;;  %v210_v24 = vld [vmem:[%s8137_s3 + $0x30] sm:$0xff]  ;;  %v211_v25 = vld [vmem:[%s8137_s3 + $0x38] sm:$0xff] }
   0x4   :  { %v6774_v16 = vsub.s32 0, %v6759_v8  ;;  %v208_v20 = vld [vmem:[%s8137_s3 + $0x20] sm:$0xff]  ;;  %v120_v26 = vadd.s32 64, %v6776_v17  ;;  %v6801_v30 = vsub.s32 1, %v6759_v8  ;;  %v213_v34 = vld [vmem:[%s8137_s3 + $0x48] sm:$0xff]  ;;  %v6330_v35 = vpack.c.bf16 %v211_v25, %v210_v24  ;;  %v214_v37 = vld [vmem:[%s8137_s3 + $0x50] sm:$0xff] }
   0x5   :  { %6322 = vmatpush1.bf16.msra.mxu0 %v6321_v10  ;;  %v6779_v19 = vsub.s32 %v54_v13, %v6759_v8  ;;  %v6327_v27 = vpack.c.bf16 %v209_v21, %v208_v20  ;;  %v212_v33 = vld [vmem:[%s8137_s3 + $0x40] sm:$0xff]  ;;  %v215_v38 = vld [vmem:[%s8137_s3 + $0x58] sm:$0xff]  ;;  %v217_v43 = vld [vmem:[%s8137_s3 + $0x68] sm:$0xff] }
   0x6   :  { %6323 = vmatprep.subr.bf16.mxu0 %v6684_v9  ;;  %v126_v22 = vrot.slane %v6771_v15, %v6774_v16  ;;  %v6333_v39 = vpack.c.bf16 %v213_v34, %v212_v33  ;;  %v133_v40 = vrot.slane %v6771_v15, %v6801_v30  ;;  %v216_v41 = vld [vmem:[%s8137_s3 + $0x60] sm:$0xff]  ;;  %v6336_v42 = vpack.c.bf16 %v215_v38, %v214_v37 }
   0x7   :  { %v156_v23 = vrot.slane %v122_v14, %v6779_v19  ;;  %v6339_v44 = vpack.c.bf16 %v217_v43, %v216_v41 }
   0x8   :  { %128 = vbcast.lane.b32.xlu1 %v126_v22, 256 }
   0x9   :  { %6325 = vmatpush1.bf16.msra.mxu0 %v6324_v18  ;;  %v164_v28 = vrot.slane %v156_v23, %v6779_v19  ;;  %v157_v29 = vcombine.high %v156_v23, %v156_v23 }
   0xa   :  { %6326 = vmatprep.subr.bf16.mxu0 %v6684_v9 }
   0xb   :  { %v175_v31 = vrot.slane %v164_v28, %v6774_v16  ;;  %v171_v32 = vrot.slane %v157_v29, %v6779_v19 }
   0xc   :  { %142 = vbcast.lane.b32.xlu1 %v120_v26, 256 }
   0xd   :  { %6328 = vmatpush1.bf16.msra.mxu0 %v6327_v27  ;;  %181 = vperm.xlu0 %6373, %v175_v31   ;;  %v179_v36 = vrot.slane %v171_v32, %v6774_v16 }
   0xe   :  { %6329 = vmatprep.subr.bf16.mxu0 %v6684_v9 }
  0x11   :  { %6331 = vmatpush1.bf16.msra.mxu0 %v6330_v35  ;;  %184 = vperm.xlu0 %6373, %v179_v36  }
  0x12   :  { %6332 = vmatprep.subr.bf16.mxu0 %v6684_v9 }
  0x15   :  { %6334 = vmatpush1.bf16.msra.mxu0 %v6333_v39  ;;  %135 = vbcast.lane.b32.xlu0 %v133_v40, 256 }
  0x16   :  { %6335 = vmatprep.subr.bf16.mxu0 %v6684_v9 }
  0x19   :  { %6337 = vmatpush1.bf16.msra.mxu0 %v6336_v42 }
  0x1a   :  { %16 = vsyncpa [#allocation5], 0  ;;  %6338 = vmatprep.subr.bf16.mxu0 %v6684_v9  ;;  %v218_v45 = vld [vmem:[%s8137_s3 + $0x70] sm:$0xff]  ;;  %v219_v46 = vld [vmem:[%s8137_s3 + $0x78] sm:$0xff]  ;;  %v119_v53 = vadd.s32 128, %v6776_v17  ;;  %vm223_vm7 = vcmask 195584  }
  0x1b   :  { %v6342_v47 = vpack.c.bf16 %v219_v46, %v218_v45  ;;  %v220_v48 = vld [vmem:[%s8137_s3 + $0x80] sm:$0xff]  ;;  %v221_v49 = vld [vmem:[%s8137_s3 + $0x88] sm:$0xff]  ;;  %v222_v51 = vld [vmem:[%s8137_s3 + $0x90] sm:$0xff]  ;;  %v6685_v58 = vmov 1.0   ;;  %s6688_s16 = smov 112   ;;  %s6689_s17 = smov 104  }
  0x1c   :  { %v6345_v50 = vpack.c.bf16 %v221_v49, %v220_v48  ;;  %v6879_v18 = vld [vmem:[%s8139_s5 + $0x18] ss:$12 sps:$4 sm:$0xff]   ;;  %v5439_v28 = vld [vmem:[%s8137_s3 + $0x88] ss:$0 sm:$0xff]  ;;  %v5440_v33 = vld [vmem:[%s8137_s3 + $0x90] ss:$0 sm:$0xff] }
  0x1d   :  { %6340 = vmatpush1.bf16.msra.mxu0 %v6339_v44  ;;  %v6905_v38 = vld [vmem:[%s8141_s7] sm:$0xff]  ;;  %s6687_s3 = smov 120   ;;  %s6690_s18 = smov 96  }
  0x1e   :  { %6341 = vmatprep.subr.bf16.mxu0 %v6684_v9  ;;  %v366_v39 = vrot.slane %v6905_v38, %v6774_v16  ;;  %s6691_s19 = smov 64   ;;  %s6692_s20 = smov 32  }
  0x1f   :  { %s6693_s21 = smov 8   ;;  %s6694_s22 = smov 16  }
  0x20   :  { %s6695_s23 = smov 24  }
  0x21   :  { %6343 = vmatpush1.bf16.msra.mxu0 %v6342_v47 }
  0x22   :  { %6344 = vmatprep.subr.bf16.mxu0 %v6684_v9 }
  0x25   :  { %6346 = vmatpush1.bf16.msra.mxu0 %v6345_v50 }
  0x26   :  { %266 = vmatprep.subr.mxu0 %v6683_v7 }
  0x29   :  { %267 = vmatpush1.msra.mxu0 %v222_v51 }
  0x2a   :  { %5789 = vmatprep.subr.bf16.mxu0 %v6683_v7 }
  0x7a   :  { %v129_v52 = vpop.permute.xlu1 %128 }
  0x7b   :  { %vm138_vm0 = vcmp.eq.s32.totalorder %v119_v53, %v129_v52  ;;  %vm137_vm2 = vcmp.eq.s32.totalorder %v6776_v17, %v129_v52 }
  0x7e   :  { %v143_v54 = vpop.permute.xlu1 %142 }
  0x7f   :  { %vm145_vm1 = vcmp.eq.s32.totalorder %v119_v53, %v143_v54  ;;  %vm144_vm3 = vcmp.eq.s32.totalorder %v6776_v17, %v143_v54 }
  0x80   :  { %vm147_vm4 = vmor %vm138_vm0, %vm145_vm1 }
  0x81   :  { %vm146_vm8 = vmor %vm137_vm2, %vm144_vm3 }
  0x8c   :  { %v182_v55 = vpop.permute.xlu0 %181 }
  0x8d   :  { %vm186_vm5 = vcmp.eq.s32.totalorder %v6776_v17, %v182_v55  ;;  %vm187_vm6 = vcmp.eq.s32.totalorder %v119_v53, %v182_v55 }
  0x8e   :  { %vm191_vm9 = vmor %vm147_vm4, %vm187_vm6  ;;  %vm46_vm6 = vcmask 1043456  }
  0x8f   :  { %v5432_v56 = vsel %vm191_vm9, 1.0, %v6683_v7  ;;  %vm190_vm10 = vmor %vm146_vm8, %vm186_vm5  ;;  %vm305_vm5 = vcmask 261120   ;;  %vm35_vm8 = vcmp.eq.s32.totalorder %v6771_v15, 0  ;;  %vm44_vm9 = vcmask 1041408  }
  0x90   :  { %v185_v57 = vpop.permute.xlu0 %184  ;;  %5435 = vmatprep.mubr.msk.f32.mxu0 %vm223_vm7, %v5432_v56 }
  0x91   :  { %5436 = vmatmul.mubr.msk.f32.vlgmr.msra.gmra.mrb[0].mxu0 %vm190_vm10, %v6685_v58  ;;  %vm189_vm13 = vcmp.eq.s32.totalorder %v119_v53, %v185_v57  ;;  %vm188_vm0 = vcmp.eq.s32.totalorder %v6776_v17, %v185_v57  ;;  %vm48_vm10 = vcmask 1045504  }
  0x94   :  { %v136_v59 = vpop.permute.xlu0 %135 }
  0x95   :  { %vm139_vm11 = vcmp.eq.s32.totalorder %v6776_v17, %v136_v59  ;;  %vm140_vm12 = vcmp.eq.s32.totalorder %v119_v53, %v136_v59  ;;  %v6872_v17 = vld [vmem:[%s8139_s5] ss:$12 sps:$4 sm:$0xff]  }
  0x96   :  { %vm149_vm14 = vmor %vm140_vm12, %vm145_vm1  ;;  %5790 = vmatpush3.bf16.msra.mxu0 %v6872_v17  ;;  %vm6686_vm1 = vmmov 0  }
  0x97   :  { %vm193_vm15 = vmor %vm149_vm14, %vm189_vm13  ;;  %5791 = vmatprep.subr.bf16.mxu0 %v6683_v7  ;;  %5799 = vmatprep.mubr.msk.bf16.mxu1 %vm6686_vm1, %v6683_v7 }
  0x98   :  { %v5434_v60 = vsel %vm193_vm15, 1.0, %v6683_v7  ;;  %vm148_vm2 = vmor %vm139_vm11, %vm144_vm3  ;;  %vm486_vm3 = vcmask 64512   ;;  %vm1375_vm11 = vcmask 130048  }
  0x99   :  { %5437 = vmatprep.mubr.msk.f32.mxu0 %vm223_vm7, %v5434_v60  ;;  %vm192_vm4 = vmor %vm148_vm2, %vm188_vm0 }
  0x9a   :  { %5438 = vmatmul.mubr.msk.f32.gmra.mrb[2].mxu0 %vm192_vm4, %v6685_v58 }
  0x9b   :  { %5793 = vmatprep.mubr.msk.bf16.mxu0 %vm6686_vm1, %v6683_v7  ;;  %5792 = vmatpush3.bf16.msra.mxu0 %v6879_v18 }
  0x9c   :  { %5821 = vmatprep.subr.bf16.mxu0 %v6683_v7 }
 0x164   :  { %v296_v61 = vpop.f32.mrb[0].mxu0 }
 0x165   :  { %v298_v62 = vpop.f32.mrb[1].mxu0  ;;  %v306_v63 = vsel %vm305_vm5, %v296_v61, 0.0 }
 0x166   :  { %307 = vadd.xlane.f32.xlu1 %v306_v63 }
 0x16d   :  { %v301_v0 = vpop.f32.mrb[2].mxu0 }
 0x16e   :  { %v303_v1 = vpop.f32.mrb[3].mxu0  ;;  %v309_v2 = vsel %vm305_vm5, %v301_v0, 0.0 }
 0x16f   :  { %310 = vadd.xlane.f32.xlu0 %v309_v2 }
 0x1f3   :  { %v308_v3 = vpop.xlane.xlu1 %307 }
 0x1f4   :  { %v313_v4 = vmul.f32 0.03125, %v308_v3 }
 0x1f6   :  { %v315_v5 = vsub.f32 %v296_v61, %v313_v4 }
 0x1f8   :  { %v317_v6 = vmul.f32 %v315_v5, %v315_v5 }
 0x1fa   :  { %v319_v9 = vsel %vm305_vm5, %v317_v6, 0.0 }
 0x1fb   :  { %320 = vadd.xlane.f32.xlu0 %v319_v9 }
 0x1fc   :  { %v311_v10 = vpop.xlane.xlu0 %310 }
 0x1fd   :  { %v314_v11 = vmul.f32 0.03125, %v311_v10 }
 0x1ff   :  { %v316_v12 = vsub.f32 %v301_v0, %v314_v11 }
 0x201   :  { %v318_v13 = vmul.f32 %v316_v12, %v316_v12 }
 0x203   :  { %v322_v14 = vsel %vm305_vm5, %v318_v13, 0.0 }
 0x204   :  { %323 = vadd.xlane.f32.xlu1 %v322_v14 }
 0x288   :  { %v321_v20 = vpop.xlane.xlu0 %320 }
 0x289   :  { %v325_v21 = vmul.f32 0.03125, %v321_v20 }
 0x28b   :  { %v327_v22 = vadd.f32 1e-12, %v325_v21 }
 0x28d   :  { %6466 = vrsqrt.f32 %v327_v22 }
 0x291   :  { %v324_v23 = vpop.xlane.xlu1 %323 }
 0x292   :  { %v326_v24 = vmul.f32 0.03125, %v324_v23 }
 0x294   :  { %v328_v25 = vadd.f32 1e-12, %v326_v24 }
 0x296   :  { %6468 = vrsqrt.f32 %v328_v25 }
 0x297   :  { %v6467_v26 = vpop.eup %6466 }
 0x298   :  { %v331_v27 = vmul.f32 %v6467_v26, %v315_v5 }
 0x29a   :  { %v337_v31 = vmul.f32 %v5439_v28, %v331_v27 }
 0x29c   :  { %v6893_v35 = vadd.f32 %v5440_v33, %v337_v31 }
 0x2a0   :  { %v6469_v29 = vpop.eup %6468 }
 0x2a1   :  { %v332_v32 = vmul.f32 %v6469_v29, %v316_v12  ;;  %v36_v12 = vsel %vm35_vm8, -1e+09, %v6683_v7 }
 0x2a2   :  { %v38_v13 = vrot.slane %v36_v12, 6  ;;  %v40_v14 = vrot.slane %v36_v12, 4  ;;  %v42_v21 = vrot.slane %v36_v12, 2 }
 0x2a3   :  { %v338_v34 = vmul.f32 %v5439_v28, %v332_v32 }
 0x2a4   :  { %v45_v20 = vsel %vm44_vm9, %v36_v12, %v38_v13 }
 0x2a5   :  { %v6895_v36 = vadd.f32 %v5440_v33, %v338_v34  ;;  %v47_v22 = vsel %vm46_vm6, %v45_v20, %v40_v14 }
 0x2a6   :  { %v49_v23 = vsel %vm48_vm10, %v47_v22, %v42_v21 }
 0x2a7   :  { %v5587_v37 = vpack.c.bf16 %v6895_v36, %v6893_v35  ;;  %v58_v24 = vrot.slane %v49_v23, %v6779_v19 }
 0x2a9   :  { %5794 = vmatmul.mubr.msk.bf16.vlgmr.msra.gmra.mrb[4].mxu0 %vm305_vm5, %v5587_v37  ;;  %v74_v25 = vrot.slane %v58_v24, %v6779_v19  ;;  %v66_v27 = vcombine.high %v58_v24, %v58_v24 }
 0x2aa   :  { %5823 = vmatprep.mubr.msk.bf16.mxu0 %vm6686_vm1, %v6683_v7 }
 0x2ab   :  { %v6999_v26 = vrot.slane %v74_v25, %v6774_v16  ;;  %v88_v31 = vrot.slane %v66_v27, %v6779_v19 }
 0x2ad   :  { %v7008_v37 = vrot.slane %v88_v31, %v6774_v16 }
 0x37c   :  { %v421_v40 = vpop.f32.mrb[4].mxu0 }
 0x37d   :  { %v422_v41 = vadd.f32 %v421_v40, %v366_v39  ;;  %v5795_v42 = vpop.f32.mrb[5].mxu0 }
 0x37e   :  { %v424_v43 = vpop.f32.mrb[6].mxu0 }
 0x37f   :  { %v428_v44 = vpack.c.bf16 %v422_v41, %v422_v41  ;;  %v425_v45 = vadd.f32 %v424_v43, %v366_v39  ;;  %v5796_v46 = vpop.f32.mrb[7].mxu0 }
 0x380   :  { %v96_v46 = vcombine.high %v74_v25, %v74_v25 }
 0x381   :  { %v429_v47 = vpack.c.bf16 %v425_v45, %v425_v45  ;;  %432 = vrot.lane.b32.xlu0 %v428_v44, %s6687_s3  ;;  %v51_v45 = vcombine.high %v49_v23, %v49_v23 }
 0x383   :  { %434 = vrot.lane.b32.xlu1 %v429_v47, %s6687_s3 }
 0x385   :  { %438 = vrot.lane.b32.xlu0 %v429_v47, %s6688_s16 }
 0x387   :  { %436 = vrot.lane.b32.xlu1 %v428_v44, %s6688_s16 }
 0x389   :  { %442 = vrot.lane.b32.xlu0 %v429_v47, %s6689_s17 }
 0x38b   :  { %440 = vrot.lane.b32.xlu1 %v428_v44, %s6689_s17 }
 0x38d   :  { %533 = vrot.lane.b32.xlu0 %v429_v47, %s6690_s18 }
 0x38f   :  { %484 = vrot.lane.b32.xlu1 %v428_v44, %s6690_s18 }
 0x3f3   :  { %v6917_v48 = vpop.permute.xlu0 %432 }
 0x3f4   :  { %581 = vrot.lane.b32.xlu1 %v6917_v48, %s6690_s18 }
 0x3f5   :  { %v6921_v49 = vpop.permute.xlu1 %434 }
 0x3f6   :  { %629 = vrot.lane.b32.xlu0 %v6921_v49, %s6690_s18 }
 0x3f7   :  { %v6925_v50 = vpop.permute.xlu0 %438 }
 0x3f9   :  { %v6927_v51 = vpop.permute.xlu1 %436 }
 0x3fa   :  { %725 = vrot.lane.b32.xlu0 %v6925_v50, %s6690_s18  ;;  %677 = vrot.lane.b32.xlu1 %v6927_v51, %s6690_s18 }
 0x3fb   :  { %v6933_v52 = vpop.permute.xlu0 %442 }
 0x3fd   :  { %v6935_v53 = vpop.permute.xlu1 %440 }
 0x3fe   :  { %821 = vrot.lane.b32.xlu0 %v6933_v52, %s6690_s18  ;;  %773 = vrot.lane.b32.xlu1 %v6935_v53, %s6690_s18 }
 0x3ff   :  { %v534_v56 = vpop.permute.xlu0 %533 }
 0x400   :  { %v539_v57 = vsel %vm486_vm3, %v534_v56, 0 }
 0x401   :  { %v485_v54 = vpop.permute.xlu1 %484 }
 0x402   :  { %965 = vrot.lane.b32.xlu0 %v428_v44, %s6691_s19  ;;  %1013 = vrot.lane.b32.xlu1 %v429_v47, %s6691_s19  ;;  %v491_v55 = vsel %vm486_vm3, %v485_v54, 0  ;;  %v7017_v54 = vrot.slane %v96_v46, %v6774_v16 }
 0x403   :  { %5798 = vmatpush3.bf16.xpose.msra.mxu1 %v491_v55 }
 0x404   :  { %5803 = vmatprep.subr.bf16.mxu1 %v6683_v7 }
 0x40a   :  { %5800 = vmatmul.mubr.msk.bf16.vlgmr.msra.gmra.mrb[0].mxu1 %vm486_vm3, %v428_v44 }
 0x40b   :  { %5804 = vmatpush3.bf16.xpose.msra.mxu1 %v539_v57  ;;  %5805 = vmatprep.mubr.msk.bf16.mxu1 %vm6686_vm1, %v6683_v7 }
 0x40c   :  { %5809 = vmatprep.subr.bf16.mxu1 %v6683_v7 }
 0x412   :  { %5806 = vmatmul.mubr.msk.bf16.vlgmr.msra.gmra.mrb[4].mxu1 %vm486_vm3, %v429_v47  ;;  %v65_v47 = vrot.slane %v51_v45, %v6779_v19 }
 0x413   :  { %5811 = vmatprep.mubr.msk.bf16.mxu1 %vm6686_vm1, %v6683_v7 }
 0x414   :  { %v81_v55 = vrot.slane %v65_v47, %v6779_v19 }
 0x466   :  { %v582_v58 = vpop.permute.xlu1 %581 }
 0x467   :  { %v587_v59 = vsel %vm486_vm3, %v582_v58, 0 }
 0x468   :  { %v630_v60 = vpop.permute.xlu0 %629  ;;  %5810 = vmatpush3.bf16.xpose.msra.mxu1 %v587_v59  ;;  %v98_v59 = vcombine.high %v88_v31, %v88_v31 }
 0x469   :  { %5815 = vmatprep.subr.bf16.mxu1 %v6683_v7  ;;  %v635_v0 = vsel %vm486_vm3, %v630_v60, 0 }
 0x46c   :  { %v678_v61 = vpop.permute.xlu1 %677  ;;  %v726_v63 = vpop.permute.xlu0 %725 }
 0x46d   :  { %v683_v62 = vsel %vm486_vm3, %v678_v61, 0  ;;  %v731_v4 = vsel %vm486_vm3, %v726_v63, 0  ;;  %v7026_v63 = vrot.slane %v81_v55, %v6774_v16 }
 0x46e   :  { %5822 = vmatpush3.bf16.xpose.msra.mxu0 %v683_v62 }
 0x46f   :  { %5812 = vmatmul.mubr.msk.bf16.vlgmr.msra.gmra.mrb[8].mxu1 %vm486_vm3, %v6917_v48  ;;  %5833 = vmatprep.subr.bf16.mxu0 %v6683_v7 }
 0x470   :  { %5816 = vmatpush3.bf16.xpose.msra.mxu1 %v635_v0  ;;  %5817 = vmatprep.mubr.msk.bf16.mxu1 %vm6686_vm1, %v6683_v7  ;;  %v774_v1 = vpop.permute.xlu1 %773  ;;  %v822_v2 = vpop.permute.xlu0 %821  ;;  %v7029_v0 = vrot.slane %v98_v59, %v6774_v16 }
 0x471   :  { %5827 = vmatprep.subr.bf16.mxu1 %v6683_v7  ;;  %v779_v3 = vsel %vm486_vm3, %v774_v1, 0  ;;  %v827_v9 = vsel %vm486_vm3, %v822_v2, 0  ;;  %v67_v1 = vcombine.high %v65_v47, %v65_v47 }
 0x473   :  { %v95_v14 = vrot.slane %v67_v1, %v6779_v19 }
 0x474   :  { %v966_v5 = vpop.permute.xlu0 %965  ;;  %v1014_v10 = vpop.permute.xlu1 %1013 }
 0x475   :  { %5824 = vmatmul.mubr.msk.bf16.vlgmr.msra.gmra.mrb[8].mxu0 %vm486_vm3, %v6927_v51  ;;  %v971_v6 = vsel %vm46_vm6, %v966_v5, 0  ;;  %v1019_v11 = vsel %vm46_vm6, %v1014_v10, 0  ;;  %v97_v5 = vcombine.high %v81_v55, %v81_v55  ;;  %v7043_v24 = vrot.slane %v95_v14, %v6774_v16 }
 0x476   :  { %5834 = vmatpush3.bf16.xpose.msra.mxu0 %v779_v3  ;;  %5835 = vmatprep.mubr.msk.bf16.mxu0 %vm6686_vm1, %v6683_v7 }
 0x477   :  { %5818 = vmatmul.mubr.msk.bf16.vlgmr.msra.gmra.mrb[12].mxu1 %vm486_vm3, %v6921_v49  ;;  %5845 = vmatprep.subr.bf16.mxu0 %v6683_v7  ;;  %v7040_v23 = vrot.slane %v97_v5, %v6774_v16 }
 0x478   :  { %5828 = vmatpush3.bf16.xpose.msra.mxu1 %v731_v4  ;;  %5829 = vmatprep.mubr.msk.bf16.mxu1 %vm6686_vm1, %v6683_v7 }
 0x479   :  { %5839 = vmatprep.subr.bf16.mxu1 %v6683_v7 }
 0x47d   :  { %5836 = vmatmul.mubr.msk.bf16.vlgmr.msra.gmra.mrb[12].mxu0 %vm486_vm3, %v6935_v53 }
 0x47e   :  { %5846 = vmatpush3.bf16.msra.mxu0 %v971_v6  ;;  %5847 = vmatprep.mubr.msk.bf16.mxu0 %vm6686_vm1, %v6683_v7 }
 0x47f   :  { %5830 = vmatmul.mubr.msk.bf16.vlgmr.msra.gmra.mrb[16].mxu1 %vm486_vm3, %v6925_v50  ;;  %5857 = vmatprep.subr.bf16.mxu0 %v6683_v7 }
 0x480   :  { %5840 = vmatpush3.bf16.xpose.msra.mxu1 %v827_v9  ;;  %5841 = vmatprep.mubr.msk.bf16.mxu1 %vm6686_vm1, %v6683_v7 }
 0x481   :  { %5851 = vmatprep.subr.bf16.mxu1 %v6683_v7 }
 0x487   :  { %5842 = vmatmul.mubr.msk.bf16.vlgmr.msra.gmra.mrb[20].mxu1 %vm486_vm3, %v6933_v52 }
 0x488   :  { %5852 = vmatpush3.bf16.msra.mxu1 %v1019_v11  ;;  %5853 = vmatprep.mubr.msk.bf16.mxu1 %vm6686_vm1, %v6683_v7 }
 0x489   :  { %5863 = vmatprep.subr.bf16.mxu1 %v6683_v7 }
 0x4dd   :  { %v527_v15 = vpop.f32.mrb[0].mxu1 }
 0x4de   :  { %v7002_v28 = vadd.f32 %v527_v15, %v6999_v26  ;;  %v5801_v29 = vpop.f32.mrb[1].mxu1 }
 0x4df   :  { %v530_v32 = vpop.f32.mrb[2].mxu1 }
 0x4e0   :  { %v5802_v33 = vpop.f32.mrb[3].mxu1  ;;  %v869_v34 = vsel %vm486_vm3, %v7002_v28, -inf }
 0x4e1   :  { %870 = vmax.xlane.f32.xlu1 %v869_v34 }
 0x4e5   :  { %v575_v39 = vpop.f32.mrb[4].mxu1 }
 0x4e6   :  { %v7011_v40 = vadd.f32 %v575_v39, %v7008_v37  ;;  %v5807_v41 = vpop.f32.mrb[5].mxu1  ;;  %v99_v39 = vcombine.high %v95_v14, %v95_v14 }
 0x4e7   :  { %v578_v42 = vpop.f32.mrb[6].mxu1 }
 0x4e8   :  { %v5808_v43 = vpop.f32.mrb[7].mxu1  ;;  %v872_v44 = vsel %vm486_vm3, %v7011_v40, -inf }
 0x4e9   :  { %873 = vmax.xlane.f32.xlu0 %v872_v44  ;;  %v7053_v44 = vrot.slane %v99_v39, %v6774_v16 }
 0x542   :  { %v623_v56 = vpop.f32.mrb[8].mxu1 }
 0x543   :  { %v7021_v57 = vadd.f32 %v623_v56, %v7017_v54  ;;  %v5813_v58 = vpop.f32.mrb[9].mxu1 }
 0x544   :  { %v626_v60 = vpop.f32.mrb[10].mxu1 }
 0x545   :  { %v5814_v61 = vpop.f32.mrb[11].mxu1  ;;  %v875_v62 = vsel %vm486_vm3, %v7021_v57, -inf }
 0x546   :  { %876 = vmax.xlane.f32.xlu0 %v875_v62 }
 0x548   :  { %v719_v2 = vpop.f32.mrb[8].mxu0 }
 0x549   :  { %v7032_v3 = vadd.f32 %v719_v2, %v7026_v63  ;;  %v5825_v4 = vpop.f32.mrb[9].mxu0 }
 0x54a   :  { %v671_v6 = vpop.f32.mrb[12].mxu1  ;;  %v722_v9 = vpop.f32.mrb[10].mxu0 }
 0x54b   :  { %v672_v10 = vadd.f32 %v671_v6, %v7029_v0  ;;  %v5819_v11 = vpop.f32.mrb[13].mxu1  ;;  %v5826_v12 = vpop.f32.mrb[11].mxu0  ;;  %v881_v13 = vsel %vm486_vm3, %v7032_v3, -inf }
 0x54c   :  { %v674_v20 = vpop.f32.mrb[14].mxu1  ;;  %882 = vmax.xlane.f32.xlu0 %v881_v13 }
 0x54d   :  { %v5820_v21 = vpop.f32.mrb[15].mxu1  ;;  %v878_v22 = vsel %vm486_vm3, %v672_v10, -inf }
 0x54e   :  { %879 = vmax.xlane.f32.xlu1 %v878_v22 }
 0x550   :  { %v815_v25 = vpop.f32.mrb[12].mxu0 }
 0x551   :  { %v7046_v27 = vadd.f32 %v815_v25, %v7040_v23  ;;  %v5837_v15 = vpop.f32.mrb[13].mxu0 }
 0x552   :  { %v767_v29 = vpop.f32.mrb[16].mxu1  ;;  %v818_v31 = vpop.f32.mrb[14].mxu0 }
 0x553   :  { %v768_v19 = vadd.f32 %v767_v29, %v7043_v24  ;;  %v5831_v32 = vpop.f32.mrb[17].mxu1  ;;  %v5838_v33 = vpop.f32.mrb[15].mxu0  ;;  %v887_v34 = vsel %vm486_vm3, %v7046_v27, -inf }
 0x554   :  { %v770_v41 = vpop.f32.mrb[18].mxu1  ;;  %888 = vmax.xlane.f32.xlu0 %v887_v34 }
 0x555   :  { %v5832_v42 = vpop.f32.mrb[19].mxu1  ;;  %v884_v43 = vsel %vm486_vm3, %v768_v19, -inf }
 0x556   :  { %885 = vmax.xlane.f32.xlu1 %v884_v43 }
 0x55a   :  { %v863_v45 = vpop.f32.mrb[20].mxu1 }
 0x55b   :  { %v864_v46 = vadd.f32 %v863_v45, %v7053_v44  ;;  %v5843_v47 = vpop.f32.mrb[21].mxu1 }
 0x55c   :  { %v866_v55 = vpop.f32.mrb[22].mxu1 }
 0x55d   :  { %v5844_v56 = vpop.f32.mrb[23].mxu1  ;;  %v890_v58 = vsel %vm486_vm3, %v864_v46, -inf }
 0x55e   :  { %891 = vmax.xlane.f32.xlu1 %v890_v58 }
 0x56a   :  { %1109 = vrot.lane.b32.xlu0 %v6921_v49, %s6691_s19 }
 0x56e   :  { %v871_v59 = vpop.xlane.xlu1 %870 }
 0x56f   :  { %1061 = vrot.lane.b32.xlu1 %v6917_v48, %s6691_s19  ;;  %v893_v60 = vsub.f32 %v7002_v28, %v871_v59 }
 0x571   :  { %v901_v61 = vmul.f32 1.442695, %v893_v60 }
 0x573   :  { %6470 = vpow2.f32 %v901_v61 }
 0x576   :  { %v874_v62 = vpop.xlane.xlu0 %873 }
 0x577   :  { %v894_v1 = vsub.f32 %v7011_v40, %v874_v62 }
 0x579   :  { %v903_v2 = vmul.f32 1.442695, %v894_v1 }
 0x57b   :  { %6472 = vpow2.f32 %v903_v2 }
 0x57d   :  { %v6471_v4 = vpop.eup %6470 }
 0x57e   :  { %v917_v5 = vsel %vm486_vm3, %v6471_v4, 0.0 }
 0x585   :  { %v7064_v6 = vpop.eup %6472 }
 0x586   :  { %v920_v49 = vsel %vm486_vm3, %v7064_v6, 0.0 }
 0x589   :  { %918 = vadd.xlane.f32.xlu0 %v917_v5 }
 0x593   :  { %921 = vadd.xlane.f32.xlu1 %v920_v49 }
 0x5a4   :  { %1157 = vrot.lane.b32.xlu1 %v6927_v51, %s6691_s19 }
 0x5d3   :  { %v877_v48 = vpop.xlane.xlu0 %876 }
 0x5d4   :  { %v895_v28 = vsub.f32 %v7021_v57, %v877_v48 }
 0x5d6   :  { %v905_v9 = vmul.f32 1.442695, %v895_v28 }
 0x5d8   :  { %6474 = vpow2.f32 %v905_v9 }
 0x5d9   :  { %v883_v33 = vpop.xlane.xlu0 %882 }
 0x5da   :  { %v897_v34 = vsub.f32 %v7032_v3, %v883_v33 }
 0x5db   :  { %v880_v40 = vpop.xlane.xlu1 %879 }
 0x5dc   :  { %v896_v11 = vsub.f32 %v672_v10, %v880_v40  ;;  %v909_v41 = vmul.f32 1.442695, %v897_v34 }
 0x5de   :  { %v907_v12 = vmul.f32 1.442695, %v896_v11 }
 0x5e0   :  { %6476 = vpow2.f32 %v907_v12 }
 0x5e1   :  { %v889_v39 = vpop.xlane.xlu0 %888 }
 0x5e2   :  { %v7071_v13 = vpop.eup %6474  ;;  %v899_v42 = vsub.f32 %v7046_v27, %v889_v39 }
 0x5e3   :  { %v886_v14 = vpop.xlane.xlu1 %885  ;;  %v923_v20 = vsel %vm486_vm3, %v7071_v13, 0.0 }
 0x5e4   :  { %v898_v21 = vsub.f32 %v768_v19, %v886_v14  ;;  %924 = vadd.xlane.f32.xlu0 %v923_v20  ;;  %v913_v43 = vmul.f32 1.442695, %v899_v42 }
 0x5e5   :  { %v1110_v45 = vpop.permute.xlu0 %1109 }
 0x5e6   :  { %v911_v22 = vmul.f32 1.442695, %v898_v21  ;;  %v1115_v2 = vsel %vm46_vm6, %v1110_v45, 0 }
 0x5e8   :  { %6478 = vpow2.f32 %v911_v22 }
 0x5ea   :  { %v7075_v51 = vpop.eup %6476 }
 0x5eb   :  { %v892_v25 = vpop.xlane.xlu1 %891  ;;  %v926_v57 = vsel %vm486_vm3, %v7075_v51, 0.0 }
 0x5ec   :  { %v900_v15 = vsub.f32 %v864_v46, %v892_v25  ;;  %927 = vadd.xlane.f32.xlu1 %v926_v57 }
 0x5ee   :  { %v915_v10 = vmul.f32 1.442695, %v900_v15 }
 0x5ef   :  { %v1062_v3 = vpop.permute.xlu1 %1061 }
 0x5f0   :  { %6480 = vpow2.f32 %v915_v10  ;;  %v1067_v60 = vsel %vm46_vm6, %v1062_v3, 0 }
 0x5f1   :  { %6482 = vpow2.f32 %v909_v41 }
 0x5f2   :  { %v7079_v29 = vpop.eup %6478  ;;  %6484 = vpow2.f32 %v913_v43 }
 0x5f3   :  { %v932_v31 = vsel %vm486_vm3, %v7079_v29, 0.0 }
 0x5f4   :  { %933 = vadd.xlane.f32.xlu1 %v932_v31 }
 0x5fa   :  { %v7083_v19 = vpop.eup %6480  ;;  %1205 = vrot.lane.b32.xlu0 %v6925_v50, %s6691_s19 }
 0x5fb   :  { %v938_v32 = vsel %vm486_vm3, %v7083_v19, 0.0  ;;  %v7093_v46 = vpop.eup %6482 }
 0x5fc   :  { %939 = vadd.xlane.f32.xlu1 %v938_v32  ;;  %v929_v47 = vsel %vm486_vm3, %v7093_v46, 0.0  ;;  %v7097_v55 = vpop.eup %6484 }
 0x5fd   :  { %v935_v27 = vsel %vm486_vm3, %v7097_v55, 0.0 }
 0x60d   :  { %1253 = vrot.lane.b32.xlu1 %v6935_v53, %s6691_s19 }
 0x611   :  { %1391 = vrot.lane.b32.xlu1 %v6872_v17, %s6692_s20 }
 0x616   :  { %v919_v50 = vpop.xlane.xlu0 %918 }
 0x617   :  { %6486 = vrcp.f32 %v919_v50 }
 0x619   :  { %930 = vadd.xlane.f32.xlu0 %v929_v47 }
 0x61d   :  { %936 = vadd.xlane.f32.xlu0 %v935_v27 }
 0x620   :  { %v922_v56 = vpop.xlane.xlu1 %921 }
 0x621   :  { %v6487_v58 = vpop.eup %6486  ;;  %6488 = vrcp.f32 %v922_v56 }
 0x622   :  { %v949_v53 = vmul.f32 %v6487_v58, %v6471_v4 }
 0x624   :  { %v957_v59 = vpack.c.bf16 %v949_v53, %v949_v53  ;;  %v1158_v5 = vpop.permute.xlu1 %1157 }
 0x625   :  { %v1163_v9 = vsel %vm46_vm6, %v1158_v5, 0 }
 0x626   :  { %5848 = vmatmul.mubr.msk.bf16.vlgmr.msra.gmra.mrb[16].mxu0 %vm486_vm3, %v957_v59 }
 0x627   :  { %5858 = vmatpush3.bf16.msra.mxu0 %v1067_v60  ;;  %5859 = vmatprep.mubr.msk.bf16.mxu0 %vm6686_vm1, %v6683_v7 }
 0x628   :  { %5869 = vmatprep.subr.bf16.mxu0 %v6683_v7 }
 0x62b   :  { %v6489_v61 = vpop.eup %6488 }
 0x62c   :  { %v950_v62 = vmul.f32 %v6489_v61, %v7064_v6 }
 0x62e   :  { %v958_v1 = vpack.c.bf16 %v950_v62, %v950_v62 }
 0x630   :  { %5854 = vmatmul.mubr.msk.bf16.vlgmr.msra.gmra.mrb[24].mxu1 %vm486_vm3, %v958_v1 }
 0x631   :  { %5864 = vmatpush3.bf16.msra.mxu1 %v1115_v2  ;;  %5865 = vmatprep.mubr.msk.bf16.mxu1 %vm6686_vm1, %v6683_v7 }
 0x632   :  { %5875 = vmatprep.subr.bf16.mxu1 %v6683_v7 }
 0x633   :  { %1301 = vrot.lane.b32.xlu0 %v6933_v52, %s6691_s19 }
 0x671   :  { %v925_v4 = vpop.xlane.xlu0 %924 }
 0x672   :  { %6490 = vrcp.f32 %v925_v4 }
 0x675   :  { %v1206_v12 = vpop.permute.xlu0 %1205 }
 0x679   :  { %v928_v49 = vpop.xlane.xlu1 %927 }
 0x67a   :  { %6492 = vrcp.f32 %v928_v49 }
 0x67c   :  { %v6491_v6 = vpop.eup %6490 }
 0x67d   :  { %v951_v48 = vmul.f32 %v6491_v6, %v7071_v13  ;;  %v1211_v13 = vsel %vm46_vm6, %v1206_v12, 0 }
 0x67f   :  { %v959_v28 = vpack.c.bf16 %v951_v48, %v951_v48 }
 0x681   :  { %5860 = vmatmul.mubr.msk.bf16.vlgmr.msra.gmra.mrb[20].mxu0 %vm486_vm3, %v959_v28  ;;  %v934_v40 = vpop.xlane.xlu1 %933 }
 0x682   :  { %5870 = vmatpush3.bf16.msra.mxu0 %v1163_v9  ;;  %6494 = vrcp.f32 %v934_v40  ;;  %5871 = vmatprep.mubr.msk.bf16.mxu0 %vm6686_vm1, %v6683_v7 }
 0x683   :  { %5881 = vmatprep.subr.bf16.mxu0 %v6683_v7 }
 0x684   :  { %v6493_v52 = vpop.eup %6492 }
 0x685   :  { %v952_v11 = vmul.f32 %v6493_v52, %v7075_v51 }
 0x687   :  { %v960_v14 = vpack.c.bf16 %v952_v11, %v952_v11 }
 0x689   :  { %5866 = vmatmul.mubr.msk.bf16.vlgmr.msra.gmra.mrb[28].mxu1 %vm486_vm3, %v960_v14  ;;  %v940_v51 = vpop.xlane.xlu1 %939 }
 0x68a   :  { %5876 = vmatpush3.bf16.msra.mxu1 %v1211_v13  ;;  %5877 = vmatprep.mubr.msk.bf16.mxu1 %vm6686_vm1, %v6683_v7  ;;  %6496 = vrcp.f32 %v940_v51 }
 0x68b   :  { %5887 = vmatprep.subr.bf16.mxu1 %v6683_v7 }
 0x68c   :  { %v6495_v20 = vpop.eup %6494 }
 0x68d   :  { %v954_v21 = vmul.f32 %v6495_v20, %v7079_v29  ;;  %v1254_v39 = vpop.permute.xlu1 %1253 }
 0x68f   :  { %v962_v22 = vpack.c.bf16 %v954_v21, %v954_v21 }
 0x691   :  { %5878 = vmatmul.mubr.msk.bf16.vlgmr.msra.gmra.mrb[32].mxu1 %vm486_vm3, %v962_v22  ;;  %v1392_v9 = vpop.permute.xlu1 %1391 }
 0x692   :  { %5889 = vmatprep.mubr.msk.bf16.mxu1 %vm6686_vm1, %v6683_v7 }
 0x694   :  { %v6497_v57 = vpop.eup %6496 }
 0x695   :  { %v956_v10 = vmul.f32 %v6497_v57, %v7083_v19  ;;  %v1259_v19 = vsel %vm46_vm6, %v1254_v39, 0 }
 0x697   :  { %v964_v33 = vpack.c.bf16 %v956_v10, %v956_v10 }
 0x6a6   :  { %v931_v25 = vpop.xlane.xlu0 %930 }
 0x6a7   :  { %6498 = vrcp.f32 %v931_v25 }
 0x6aa   :  { %v937_v15 = vpop.xlane.xlu0 %936 }
 0x6ab   :  { %6500 = vrcp.f32 %v937_v15 }
 0x6ae   :  { %v1302_v31 = vpop.permute.xlu0 %1301 }
 0x6af   :  { %v1307_v32 = vsel %vm46_vm6, %v1302_v31, 0 }
 0x6b0   :  { %5888 = vmatpush3.bf16.msra.mxu1 %v1307_v32 }
 0x6b1   :  { %v6499_v29 = vpop.eup %6498  ;;  %5901 = vmatprep.subr.bf16.mxu1 %v6683_v7 }
 0x6b2   :  { %v953_v34 = vmul.f32 %v6499_v29, %v7093_v46 }
 0x6b3   :  { %5890 = vmatmul.mubr.msk.bf16.vlgmr.msra.gmra.mrb[36].mxu1 %vm486_vm3, %v964_v33 }
 0x6b4   :  { %v961_v41 = vpack.c.bf16 %v953_v34, %v953_v34  ;;  %5905 = vmatprep.mubr.msk.bf16.mxu1 %vm6686_vm1, %v6683_v7 }
 0x6b5   :  { %v6501_v42 = vpop.eup %6500 }
 0x6b6   :  { %5872 = vmatmul.mubr.msk.bf16.vlgmr.msra.gmra.mrb[24].mxu0 %vm486_vm3, %v961_v41  ;;  %v955_v43 = vmul.f32 %v6501_v42, %v7097_v55 }
 0x6b7   :  { %5882 = vmatpush3.bf16.msra.mxu0 %v1259_v19  ;;  %5883 = vmatprep.mubr.msk.bf16.mxu0 %vm6686_vm1, %v6683_v7 }
 0x6b8   :  { %5893 = vmatprep.subr.bf16.mxu0 %v6683_v7  ;;  %v963_v45 = vpack.c.bf16 %v955_v43, %v955_v43 }
 0x6be   :  { %5884 = vmatmul.mubr.msk.bf16.vlgmr.msra.gmra.mrb[28].mxu0 %vm486_vm3, %v963_v45 }
 0x6bf   :  { %5897 = vmatprep.mubr.msk.bf16.mxu0 %vm6686_vm1, %v6683_v7  ;;  %5894 = vmatpush3.bf16.msra.mxu0 %v1392_v9 }
 0x6c0   :  { %5895 = vmatprep.subr.bf16.mxu0 %v6683_v7 }
 0x6f9   :  { %v1007_v46 = vpop.f32.mrb[16].mxu0 }
 0x6fa   :  { %v5849_v50 = vpop.f32.mrb[17].mxu0 }
 0x6fb   :  { %v1010_v47 = vpop.f32.mrb[18].mxu0 }
 0x6fc   :  { %v5850_v3 = vpop.f32.mrb[19].mxu0 }
 0x703   :  { %v1055_v27 = vpop.f32.mrb[24].mxu1 }
 0x704   :  { %v5855_v56 = vpop.f32.mrb[25].mxu1 }
 0x705   :  { %v1058_v58 = vpop.f32.mrb[26].mxu1 }
 0x706   :  { %v5856_v53 = vpop.f32.mrb[27].mxu1  ;;  %v1385_v58 = vrot.slane %v6905_v38, %v6801_v30 }
 0x754   :  { %v1103_v55 = vpop.f32.mrb[20].mxu0 }
 0x755   :  { %v5861_v59 = vpop.f32.mrb[21].mxu0 }
 0x756   :  { %v1106_v60 = vpop.f32.mrb[22].mxu0 }
 0x757   :  { %v5862_v61 = vpop.f32.mrb[23].mxu0 }
 0x75c   :  { %v1151_v62 = vpop.f32.mrb[28].mxu1 }
 0x75d   :  { %v6374_v1 = vpack.i.bf16 %v1151_v62, %v1103_v55  ;;  %v5867_v2 = vpop.f32.mrb[29].mxu1 }
 0x75e   :  { %v1154_v4 = vpop.f32.mrb[30].mxu1 }
 0x75f   :  { %6375 = vrot.lane.b32.xlu0 %v6374_v1, %s6693_s21  ;;  %v5868_v5 = vpop.f32.mrb[31].mxu1  ;;  %v7170_v4 = vld [vmem:[%s8139_s5 + $0x4] ss:$12 sps:$4 sm:$0xff]  }
 0x760   :  { %5902 = vmatpush3.bf16.msra.mxu1 %v7170_v4 }
 0x761   :  { %5903 = vmatprep.subr.bf16.mxu1 %v6683_v7 }
 0x764   :  { %v1247_v49 = vpop.f32.mrb[32].mxu1 }
 0x765   :  { %v5879_v6 = vpop.f32.mrb[33].mxu1 }
 0x766   :  { %v1250_v48 = vpop.f32.mrb[34].mxu1 }
 0x767   :  { %v5880_v28 = vpop.f32.mrb[35].mxu1 }
 0x786   :  { %v1343_v17 = vpop.f32.mrb[36].mxu1 }
 0x787   :  { %v5891_v40 = vpop.f32.mrb[37].mxu1 }
 0x788   :  { %v1346_v52 = vpop.f32.mrb[38].mxu1 }
 0x789   :  { %v1199_v11 = vpop.f32.mrb[24].mxu0  ;;  %v5892_v12 = vpop.f32.mrb[39].mxu1 }
 0x78a   :  { %v6379_v14 = vpack.i.bf16 %v1247_v49, %v1199_v11  ;;  %v5873_v13 = vpop.f32.mrb[25].mxu0 }
 0x78b   :  { %v1202_v20 = vpop.f32.mrb[26].mxu0 }
 0x78c   :  { %v5874_v21 = vpop.f32.mrb[27].mxu0  ;;  %6380 = vrot.lane.b32.xlu1 %v6379_v14, %s6694_s22 }
 0x78d   :  { %v345_v21 = vld [vmem:[%s8136_s2] sm:$0xff] }
 0x790   :  { %1393 = vrot.lane.b32.xlu1 %v6879_v18, %s6692_s20 }
 0x791   :  { %v1295_v22 = vpop.f32.mrb[28].mxu0 }
 0x792   :  { %v6384_v51 = vpack.i.bf16 %v1343_v17, %v1295_v22  ;;  %v5885_v25 = vpop.f32.mrb[29].mxu0  ;;  %v346_v22 = vld [vmem:[%s8136_s2 + $0x8] sm:$0xff] }
 0x793   :  { %v1298_v57 = vpop.f32.mrb[30].mxu0 }
 0x794   :  { %6385 = vrot.lane.b32.xlu0 %v6384_v51, %s6695_s23  ;;  %v5886_v15 = vpop.f32.mrb[31].mxu0  ;;  %v7197_v51 = vpack.c.bf16 %v346_v22, %v345_v21 }
 0x7d1   :  { %v6376_v31 = vpop.permute.xlu0 %6375 }
 0x7d2   :  { %v6378_v29 = vunpack.i.h.bf16 %v6376_v31  ;;  %v6377_v33 = vunpack.i.l.bf16 %v6376_v31 }
 0x7d4   :  { %v1374_v18 = vsel %vm486_vm3, %v1055_v27, %v6378_v29  ;;  %v1373_v42 = vsel %vm486_vm3, %v1007_v46, %v6377_v33  ;;  %v348_v29 = vld [vmem:[%s8136_s2 + $0x18] sm:$0xff] }
 0x7fe   :  { %v6381_v10 = vpop.permute.xlu1 %6380 }
 0x7ff   :  { %v6383_v34 = vunpack.i.h.bf16 %v6381_v10  ;;  %v6382_v39 = vunpack.i.l.bf16 %v6381_v10 }
 0x801   :  { %v1377_v45 = vsel %vm1375_vm11, %v1374_v18, %v6383_v34  ;;  %v1376_v50 = vsel %vm1375_vm11, %v1373_v42, %v6382_v39 }
 0x802   :  { %v1394_v32 = vpop.permute.xlu1 %1393 }
 0x803   :  { %5896 = vmatpush3.bf16.msra.mxu0 %v1394_v32  ;;  %v347_v32 = vld [vmem:[%s8136_s2 + $0x10] sm:$0xff] }
 0x804   :  { %v7209_v39 = vpack.c.bf16 %v348_v29, %v347_v32 }
 0x806   :  { %v6386_v41 = vpop.permute.xlu0 %6385 }
 0x807   :  { %v6388_v19 = vunpack.i.h.bf16 %v6386_v41  ;;  %v6387_v43 = vunpack.i.l.bf16 %v6386_v41  ;;  %v1471_v41 = vsub.s32 7, %v6759_v8 }
 0x809   :  { %v1378_v47 = vsel %vm223_vm7, %v1376_v50, %v6387_v43  ;;  %v1379_v3 = vsel %vm223_vm7, %v1377_v45, %v6388_v19  ;;  %v1472_v18 = vrot.slane %v6905_v38, %v1471_v41  ;;  %v7223_v19 = vld [vmem:[%s8141_s7 + $0x8] sm:$0xff] }
 0x80a   :  { %v5588_v56 = vpack.c.bf16 %v1379_v3, %v1378_v47  ;;  %v1478_v47 = vrot.slane %v7223_v19, %v6774_v16 }
 0x80c   :  { %5898 = vmatmul.mubr.msk.bf16.vlgmr.msra.gmra.mrb[32].mxu0 %vm305_vm5, %v5588_v56 }
 0x80d   :  { %5913 = vmatprep.mubr.msk.bf16.mxu0 %vm305_vm5, %v7197_v51 }
 0x8df   :  { %v1434_v53 = vpop.f32.mrb[32].mxu0 }
 0x8e0   :  { %v1435_v27 = vadd.f32 %v1434_v53, %v1385_v58  ;;  %v5899_v55 = vpop.f32.mrb[33].mxu0 }
 0x8e1   :  { %v1437_v46 = vpop.f32.mrb[34].mxu0 }
 0x8e2   :  { %v1438_v59 = vadd.f32 %v1437_v46, %v1385_v58  ;;  %v5900_v60 = vpop.f32.mrb[35].mxu0  ;;  %v1441_v61 = vadd.f32 %v1435_v27, %v6893_v35  ;;  %v7179_v35 = vld [vmem:[%s8139_s5 + $0x1c] ss:$12 sps:$4 sm:$0xff]  }
 0x8e3   :  { %5904 = vmatpush3.bf16.msra.mxu1 %v7179_v35 }
 0x8e4   :  { %v1443_v62 = vsel %vm305_vm5, %v1441_v61, 0.0  ;;  %v1442_v1 = vadd.f32 %v1438_v59, %v6895_v36  ;;  %5917 = vmatprep.subr.bf16.mxu1 %v6683_v7  ;;  %v6630_v36 = vld [vmem:[%s8134_s0] sm:$0x3] }
 0x8e5   :  { %1444 = vadd.xlane.f32.xlu0 %v1443_v62  ;;  %vm100_vm12 = vcmp.ne.s32.totalorder %v6630_v36, 0 }
 0x8e6   :  { %v1446_v2 = vsel %vm305_vm5, %v1442_v1, 0.0  ;;  %v5430_v5 = vsel %vm100_vm12, 1.0, %v6683_v7 }
 0x8e7   :  { %1447 = vadd.xlane.f32.xlu1 %v1446_v2  ;;  %v106_v49 = vrot.slane %v5430_v5, %v6774_v16  ;;  %v113_v6 = vrot.slane %v5430_v5, %v6801_v30 }
 0x8f8   :  { %1552 = vrot.lane.b32.xlu1 %v7170_v4, %s6690_s18 }
 0x8fc   :  { %108 = vbcast.lane.b32.xlu1 %v106_v49, 256 }
 0x900   :  { %115 = vbcast.lane.b32.xlu1 %v113_v6, 256 }
 0x972   :  { %v1445_v48 = vpop.xlane.xlu0 %1444 }
 0x973   :  { %v1449_v28 = vmul.f32 0.03125, %v1445_v48 }
 0x974   :  { %v1448_v9 = vpop.xlane.xlu1 %1447 }
 0x975   :  { %v1451_v17 = vsub.f32 %v1441_v61, %v1449_v28  ;;  %v1450_v40 = vmul.f32 0.03125, %v1448_v9  ;;  %v7243_v61 = vsub.s32 3, %v6759_v8 }
 0x977   :  { %v1452_v52 = vsub.f32 %v1442_v1, %v1450_v40  ;;  %v1453_v11 = vmul.f32 %v1451_v17, %v1451_v17  ;;  %v1551_v62 = vrot.slane %v6905_v38, %v7243_v61 }
 0x978   :  { %v1553_v20 = vpop.permute.xlu1 %1552 }
 0x979   :  { %v1455_v12 = vsel %vm305_vm5, %v1453_v11, 0.0  ;;  %v1454_v14 = vmul.f32 %v1452_v52, %v1452_v52  ;;  %5909 = vmatprep.subr.bf16.mxu0 %v1553_v20  ;;  %v7257_v11 = vsub.s32 2, %v6759_v8 }
 0x97a   :  { %1456 = vadd.xlane.f32.xlu0 %v1455_v12  ;;  %5910 = vmatpush3.bf16.msra.mxu0 %v1553_v20 }
 0x97b   :  { %v1458_v13 = vsel %vm305_vm5, %v1454_v14, 0.0  ;;  %v1488_v12 = vrot.slane %v6905_v38, %v7257_v11 }
 0x97c   :  { %v7225_v45 = vpop.permute.xlu1 %108 }
 0x97e   :  { %1459 = vadd.xlane.f32.xlu0 %v1458_v13 }
 0x980   :  { %v7229_v27 = vpop.permute.xlu1 %115 }
 0x994   :  { %1554 = vrot.lane.b32.xlu0 %v7179_v35, %s6690_s18 }
 0xa07   :  { %v1457_v25 = vpop.xlane.xlu0 %1456 }
 0xa08   :  { %v1461_v57 = vmul.f32 0.03125, %v1457_v25 }
 0xa0a   :  { %v1463_v15 = vadd.f32 1e-12, %v1461_v57 }
 0xa0b   :  { %v1460_v10 = vpop.xlane.xlu0 %1459 }
 0xa0c   :  { %6502 = vrsqrt.f32 %v1463_v15  ;;  %v1462_v31 = vmul.f32 0.03125, %v1460_v10 }
 0xa0e   :  { %v1464_v33 = vadd.f32 1e-12, %v1462_v31 }
 0xa0f   :  { %v1555_v34 = vpop.permute.xlu0 %1554 }
 0xa10   :  { %6504 = vrsqrt.f32 %v1464_v33  ;;  %5911 = vmatprep.subr.bf16.mxu0 %v1555_v34 }
 0xa11   :  { %5912 = vmatpush3.bf16.msra.mxu0 %v1555_v34 }
 0xa12   :  { %5923 = vmatprep.subr.bf16.mxu0 %v6683_v7 }
 0xa14   :  { %5914 = vmatmul.mubr.msk.bf16.vlgmr.msra.gmra.mrb[36].mxu0 %vm305_vm5, %v7209_v39 }
 0xa15   :  { %5925 = vmatprep.mubr.msk.bf16.mxu0 %vm6686_vm1, %v6683_v7 }
 0xa16   :  { %v6503_v42 = vpop.eup %6502 }
 0xa17   :  { %v1467_v43 = vmul.f32 %v6503_v42, %v1451_v17 }
 0xa19   :  { %v1473_v50 = vmul.f32 %v1472_v18, %v1467_v43 }
 0xa1a   :  { %v6505_v3 = vpop.eup %6504 }
 0xa1b   :  { %v1468_v56 = vmul.f32 %v6505_v3, %v1452_v52  ;;  %v1479_v53 = vadd.f32 %v1478_v47, %v1473_v50 }
 0xa1d   :  { %v1474_v58 = vmul.f32 %v1472_v18, %v1468_v56  ;;  %v7232_v46 = vmul.f32 %v1479_v53, %v7225_v45 }
 0xa1f   :  { %v1480_v55 = vadd.f32 %v1478_v47, %v1474_v58 }
 0xa21   :  { %v7235_v59 = vmul.f32 %v1480_v55, %v7229_v27 }
 0xa23   :  { %v5589_v60 = vpack.c.bf16 %v7235_v59, %v7232_v46 }
 0xa25   :  { %5906 = vmatmul.mubr.msk.bf16.vlgmr.msra.gmra.mrb[40].mxu1 %vm305_vm5, %v5589_v60 }
 0xa26   :  { %5919 = vmatprep.mubr.msk.bf16.mxu1 %vm6686_vm1, %v6683_v7 }
 0xae7   :  { %v5915_v1 = vpop.f32.mrb[36].mxu0 }
 0xae8   :  { %v1607_v2 = vadd.f32 %v5915_v1, %v1551_v62  ;;  %v1598_v36 = vpop.f32.mrb[37].mxu0 }
 0xae9   :  { %v1599_v5 = vadd.f32 %v1598_v36, %v1551_v62  ;;  %v5916_v49 = vpop.f32.mrb[38].mxu0 }
 0xaea   :  { %v1610_v6 = vadd.f32 %v5916_v49, %v1551_v62  ;;  %v1601_v48 = vpop.f32.mrb[39].mxu0 }
 0xaeb   :  { %v1602_v28 = vadd.f32 %v1601_v48, %v1551_v62 }
 0xaec   :  { %v7247_v9 = vpack.c.bf16 %v1610_v6, %v1607_v2 }
 0xaed   :  { %v1613_v17 = vpack.c.bf16 %v1602_v28, %v1599_v5 }
 0xaee   :  { %1633 = vrot.lane.b32.xlu1 %v7247_v9, %s6687_s3  ;;  %v1693_v40 = vsel %vm486_vm3, %v7247_v9, 0 }
 0xaef   :  { %1631 = vrot.lane.b32.xlu0 %v1613_v17, %s6687_s3  ;;  %5924 = vmatpush3.bf16.xpose.msra.mxu0 %v1693_v40  ;;  %v1647_v52 = vsel %vm486_vm3, %v1613_v17, 0 }
 0xaf0   :  { %5918 = vmatpush3.bf16.xpose.msra.mxu1 %v1647_v52  ;;  %5935 = vmatprep.subr.bf16.mxu0 %v6683_v7 }
 0xaf1   :  { %5929 = vmatprep.subr.bf16.mxu1 %v6683_v7 }
 0xaf2   :  { %1637 = vrot.lane.b32.xlu1 %v7247_v9, %s6688_s16 }
 0xaf3   :  { %1635 = vrot.lane.b32.xlu0 %v1613_v17, %s6688_s16 }
 0xaf8   :  { %v1539_v14 = vpop.f32.mrb[40].mxu1 }
 0xaf9   :  { %v1540_v13 = vadd.f32 %v1539_v14, %v1488_v12  ;;  %v5907_v20 = vpop.f32.mrb[41].mxu1 }
 0xafa   :  { %v1542_v21 = vpop.f32.mrb[42].mxu1 }
 0xafb   :  { %v1546_v22 = vpack.c.bf16 %v1540_v13, %v1540_v13  ;;  %v1543_v25 = vadd.f32 %v1542_v21, %v1488_v12  ;;  %v5908_v57 = vpop.f32.mrb[43].mxu1 }
 0xafd   :  { %v1547_v15 = vpack.c.bf16 %v1543_v25, %v1543_v25  ;;  %1617 = vrot.lane.b32.xlu0 %v1546_v22, %s6687_s3  ;;  %5920 = vmatmul.mubr.msk.bf16.vlgmr.msra.gmra.mrb[44].mxu1 %vm486_vm3, %v1546_v22 }
 0xafe   :  { %5931 = vmatprep.mubr.msk.bf16.mxu1 %vm6686_vm1, %v6683_v7 }
 0xaff   :  { %1619 = vrot.lane.b32.xlu1 %v1547_v15, %s6687_s3  ;;  %5926 = vmatmul.mubr.msk.bf16.vlgmr.msra.gmra.mrb[40].mxu0 %vm486_vm3, %v1547_v15 }
 0xb00   :  { %5937 = vmatprep.mubr.msk.bf16.mxu0 %vm6686_vm1, %v6683_v7 }
 0xb01   :  { %1621 = vrot.lane.b32.xlu0 %v1546_v22, %s6688_s16 }
 0xb03   :  { %1623 = vrot.lane.b32.xlu1 %v1547_v15, %s6688_s16 }
 0xb05   :  { %1639 = vrot.lane.b32.xlu0 %v1613_v17, %s6689_s17 }
 0xb07   :  { %1641 = vrot.lane.b32.xlu1 %v7247_v9, %s6689_s17 }
 0xb09   :  { %1625 = vrot.lane.b32.xlu0 %v1546_v22, %s6689_s17 }
 0xb0b   :  { %1627 = vrot.lane.b32.xlu1 %v1547_v15, %s6689_s17 }
 0xb0f   :  { %2107 = vrot.lane.b32.xlu1 %v1613_v17, %s6690_s18 }
 0xb60   :  { %v7281_v38 = vpop.permute.xlu1 %1633 }
 0xb61   :  { %v7283_v10 = vpop.permute.xlu0 %1631  ;;  %v1785_v31 = vsel %vm486_vm3, %v7281_v38, 0 }
 0xb62   :  { %v1739_v32 = vsel %vm486_vm3, %v7283_v10, 0  ;;  %5936 = vmatpush3.bf16.xpose.msra.mxu0 %v1785_v31 }
 0xb63   :  { %5930 = vmatpush3.bf16.xpose.msra.mxu1 %v1739_v32  ;;  %5947 = vmatprep.subr.bf16.mxu0 %v6683_v7 }
 0xb64   :  { %5941 = vmatprep.subr.bf16.mxu1 %v6683_v7  ;;  %v7293_v33 = vpop.permute.xlu1 %1637 }
 0xb65   :  { %v7291_v29 = vpop.permute.xlu0 %1635  ;;  %v1877_v43 = vsel %vm486_vm3, %v7293_v33, 0 }
 0xb66   :  { %v1831_v18 = vsel %vm486_vm3, %v7291_v29, 0 }
 0xb6f   :  { %v1618_v34 = vpop.permute.xlu0 %1617 }
 0xb70   :  { %5932 = vmatmul.mubr.msk.bf16.vlgmr.msra.gmra.mrb[48].mxu1 %vm486_vm3, %v1618_v34 }
 0xb71   :  { %5942 = vmatpush3.bf16.xpose.msra.mxu1 %v1831_v18  ;;  %v1620_v42 = vpop.permute.xlu1 %1619  ;;  %5943 = vmatprep.mubr.msk.bf16.mxu1 %vm6686_vm1, %v6683_v7 }
 0xb72   :  { %5938 = vmatmul.mubr.msk.bf16.vlgmr.msra.gmra.mrb[44].mxu0 %vm486_vm3, %v1620_v42  ;;  %5953 = vmatprep.subr.bf16.mxu1 %v6683_v7 }
 0xb73   :  { %5948 = vmatpush3.bf16.xpose.msra.mxu0 %v1877_v43  ;;  %v1622_v50 = vpop.permute.xlu0 %1621  ;;  %5949 = vmatprep.mubr.msk.bf16.mxu0 %vm6686_vm1, %v6683_v7 }
 0xb74   :  { %5959 = vmatprep.subr.bf16.mxu0 %v6683_v7 }
 0xb75   :  { %v1624_v47 = vpop.permute.xlu1 %1623 }
 0xb77   :  { %v7307_v3 = vpop.permute.xlu0 %1639 }
 0xb78   :  { %5944 = vmatmul.mubr.msk.bf16.vlgmr.msra.gmra.mrb[52].mxu1 %vm486_vm3, %v1622_v50  ;;  %v1923_v56 = vsel %vm486_vm3, %v7307_v3, 0 }
 0xb79   :  { %v7312_v58 = vpop.permute.xlu1 %1641  ;;  %5954 = vmatpush3.bf16.xpose.msra.mxu1 %v1923_v56  ;;  %5955 = vmatprep.mubr.msk.bf16.mxu1 %vm6686_vm1, %v6683_v7 }
 0xb7a   :  { %5950 = vmatmul.mubr.msk.bf16.vlgmr.msra.gmra.mrb[48].mxu0 %vm486_vm3, %v1624_v47  ;;  %v1969_v53 = vsel %vm486_vm3, %v7312_v58, 0  ;;  %5965 = vmatprep.subr.bf16.mxu1 %v6683_v7 }
 0xb7b   :  { %5960 = vmatpush3.bf16.xpose.msra.mxu0 %v1969_v53  ;;  %5961 = vmatprep.mubr.msk.bf16.mxu0 %vm6686_vm1, %v6683_v7  ;;  %v1626_v60 = vpop.permute.xlu0 %1625 }
 0xb7c   :  { %5971 = vmatprep.subr.bf16.mxu0 %v6683_v7 }
 0xb7d   :  { %v1628_v55 = vpop.permute.xlu1 %1627 }
 0xb80   :  { %5956 = vmatmul.mubr.msk.bf16.vlgmr.msra.gmra.mrb[56].mxu1 %vm486_vm3, %v1626_v60 }
 0xb81   :  { %v2108_v62 = vpop.permute.xlu1 %2107  ;;  %5967 = vmatprep.mubr.msk.bf16.mxu1 %vm6686_vm1, %v6683_v7 }
 0xb82   :  { %5962 = vmatmul.mubr.msk.bf16.vlgmr.msra.gmra.mrb[52].mxu0 %vm486_vm3, %v1628_v55  ;;  %5966 = vmatpush3.bf16.msra.mxu1 %v2108_v62 }
 0xb83   :  { %5973 = vmatprep.mubr.msk.bf16.mxu0 %vm6686_vm1, %v6683_v7  ;;  %5977 = vmatprep.subr.bf16.mxu1 %v6683_v7 }
 0xbd0   :  { %v1683_v1 = vpop.f32.mrb[44].mxu1 }
 0xbd1   :  { %v5921_v2 = vpop.f32.mrb[45].mxu1  ;;  %v2011_v36 = vsel %vm1375_vm11, %v1683_v1, -inf }
 0xbd2   :  { %v1729_v5 = vpop.f32.mrb[40].mxu0  ;;  %2012 = vmax.xlane.f32.xlu0 %v2011_v36  ;;  %v1686_v49 = vpop.f32.mrb[46].mxu1 }
 0xbd3   :  { %v5922_v6 = vpop.f32.mrb[47].mxu1  ;;  %v5927_v48 = vpop.f32.mrb[41].mxu0  ;;  %v2014_v28 = vsel %vm1375_vm11, %v1729_v5, -inf }
 0xbd4   :  { %v1732_v17 = vpop.f32.mrb[42].mxu0  ;;  %2015 = vmax.xlane.f32.xlu1 %v2014_v28 }
 0xbd5   :  { %v5928_v40 = vpop.f32.mrb[43].mxu0 }
 0xc43   :  { %v1775_v52 = vpop.f32.mrb[48].mxu1 }
 0xc44   :  { %v5933_v12 = vpop.f32.mrb[49].mxu1  ;;  %v2017_v14 = vsel %vm1375_vm11, %v1775_v52, -inf }
 0xc45   :  { %v1821_v13 = vpop.f32.mrb[44].mxu0  ;;  %2018 = vmax.xlane.f32.xlu0 %v2017_v14  ;;  %v1778_v20 = vpop.f32.mrb[50].mxu1 }
 0xc46   :  { %v5934_v21 = vpop.f32.mrb[51].mxu1  ;;  %v5939_v22 = vpop.f32.mrb[45].mxu0  ;;  %v2020_v15 = vsel %vm1375_vm11, %v1821_v13, -inf }
 0xc47   :  { %v1824_v25 = vpop.f32.mrb[46].mxu0 }
 0xc48   :  { %v5940_v57 = vpop.f32.mrb[47].mxu0 }
 0xc49   :  { %2021 = vmax.xlane.f32.xlu0 %v2020_v15 }
 0xc4b   :  { %v7334_v31 = vpop.f32.mrb[52].mxu1 }
 0xc4c   :  { %v5945_v32 = vpop.f32.mrb[53].mxu1  ;;  %v2023_v34 = vsel %vm1375_vm11, %v7334_v31, -inf }
 0xc4d   :  { %v7338_v18 = vpop.f32.mrb[48].mxu0  ;;  %2024 = vmax.xlane.f32.xlu1 %v2023_v34  ;;  %v1870_v42 = vpop.f32.mrb[54].mxu1 }
 0xc4e   :  { %v5946_v43 = vpop.f32.mrb[55].mxu1  ;;  %v5951_v50 = vpop.f32.mrb[49].mxu0  ;;  %v2026_v47 = vsel %vm1375_vm11, %v7338_v18, -inf }
 0xc4f   :  { %v1916_v56 = vpop.f32.mrb[50].mxu0  ;;  %2027 = vmax.xlane.f32.xlu0 %v2026_v47 }
 0xc50   :  { %v5952_v53 = vpop.f32.mrb[51].mxu0 }
 0xc53   :  { %v1959_v55 = vpop.f32.mrb[56].mxu1 }
 0xc54   :  { %v5957_v60 = vpop.f32.mrb[57].mxu1  ;;  %v2029_v62 = vsel %vm1375_vm11, %v1959_v55, -inf }
 0xc55   :  { %v2005_v2 = vpop.f32.mrb[52].mxu0  ;;  %2030 = vmax.xlane.f32.xlu1 %v2029_v62  ;;  %v1962_v36 = vpop.f32.mrb[58].mxu1 }
 0xc56   :  { %v5958_v49 = vpop.f32.mrb[59].mxu1  ;;  %v5963_v6 = vpop.f32.mrb[53].mxu0  ;;  %v2032_v48 = vsel %vm1375_vm11, %v2005_v2, -inf }
 0xc57   :  { %v2008_v28 = vpop.f32.mrb[54].mxu0  ;;  %2033 = vmax.xlane.f32.xlu0 %v2032_v48 }
 0xc58   :  { %v5964_v17 = vpop.f32.mrb[55].mxu0 }
 0xc5f   :  { %v2013_v12 = vpop.xlane.xlu0 %2012 }
 0xc60   :  { %v2035_v20 = vsub.f32 %v1683_v1, %v2013_v12 }
 0xc61   :  { %v2016_v40 = vpop.xlane.xlu1 %2015 }
 0xc62   :  { %v2036_v14 = vsub.f32 %v1729_v5, %v2016_v40  ;;  %v2043_v22 = vmul.f32 1.442695, %v2035_v20 }
 0xc64   :  { %v2045_v21 = vmul.f32 1.442695, %v2036_v14 }
 0xc66   :  { %2199 = vrot.lane.b32.xlu1 %v7283_v10, %s6690_s18  ;;  %6506 = vpow2.f32 %v2045_v21 }
 0xc67   :  { %6508 = vpow2.f32 %v2043_v22 }
 0xc6a   :  { %2245 = vrot.lane.b32.xlu1 %v7281_v38, %s6690_s18 }
 0xc6d   :  { %2153 = vrot.lane.b32.xlu0 %v7247_v9, %s6690_s18 }
 0xc70   :  { %v6507_v25 = vpop.eup %6506 }
 0xc71   :  { %v6509_v57 = vpop.eup %6508  ;;  %v2062_v15 = vsel %vm1375_vm11, %v6507_v25, 0.0 }
 0xc72   :  { %v2059_v10 = vsel %vm1375_vm11, %v6509_v57, 0.0 }
 0xc8c   :  { %2063 = vadd.xlane.f32.xlu0 %v2062_v15 }
 0xc8e   :  { %2060 = vadd.xlane.f32.xlu1 %v2059_v10 }
 0xcd2   :  { %v2019_v38 = vpop.xlane.xlu0 %2018 }
 0xcd3   :  { %v2037_v32 = vsub.f32 %v1775_v52, %v2019_v38 }
 0xcd5   :  { %v2047_v34 = vmul.f32 1.442695, %v2037_v32 }
 0xcd6   :  { %v2022_v9 = vpop.xlane.xlu0 %2021 }
 0xcd7   :  { %6510 = vpow2.f32 %v2047_v34  ;;  %v2038_v42 = vsub.f32 %v1821_v13, %v2022_v9 }
 0xcd9   :  { %v2049_v5 = vmul.f32 1.442695, %v2038_v42 }
 0xcda   :  { %v2025_v13 = vpop.xlane.xlu1 %2024 }
 0xcdb   :  { %6512 = vpow2.f32 %v2049_v5  ;;  %v2039_v60 = vsub.f32 %v7334_v31, %v2025_v13 }
 0xcdc   :  { %v2028_v1 = vpop.xlane.xlu0 %2027 }
 0xcdd   :  { %v2040_v36 = vsub.f32 %v7338_v18, %v2028_v1  ;;  %v2051_v49 = vmul.f32 1.442695, %v2039_v60 }
 0xcdf   :  { %v2053_v48 = vmul.f32 1.442695, %v2040_v36  ;;  %6514 = vpow2.f32 %v2051_v49 }
 0xce1   :  { %v7352_v43 = vpop.eup %6510  ;;  %6516 = vpow2.f32 %v2053_v48 }
 0xce2   :  { %v2065_v50 = vsel %vm1375_vm11, %v7352_v43, 0.0  ;;  %v2031_v62 = vpop.xlane.xlu1 %2030 }
 0xce3   :  { %2066 = vadd.xlane.f32.xlu1 %v2065_v50  ;;  %v2041_v6 = vsub.f32 %v1959_v55, %v2031_v62 }
 0xce4   :  { %v2034_v47 = vpop.xlane.xlu0 %2033 }
 0xce5   :  { %v7356_v56 = vpop.eup %6512  ;;  %v2055_v28 = vmul.f32 1.442695, %v2041_v6  ;;  %v2042_v17 = vsub.f32 %v2005_v2, %v2034_v47 }
 0xce6   :  { %v2068_v53 = vsel %vm1375_vm11, %v7356_v56, 0.0  ;;  %v2200_v12 = vpop.permute.xlu1 %2199 }
 0xce7   :  { %2069 = vadd.xlane.f32.xlu0 %v2068_v53  ;;  %6518 = vpow2.f32 %v2055_v28  ;;  %v2057_v40 = vmul.f32 1.442695, %v2042_v17 }
 0xce8   :  { %v2154_v52 = vpop.permute.xlu0 %2153 }
 0xce9   :  { %5972 = vmatpush3.bf16.msra.mxu0 %v2154_v52  ;;  %6520 = vpow2.f32 %v2057_v40 }
 0xcea   :  { %5983 = vmatprep.subr.bf16.mxu0 %v6683_v7  ;;  %v2246_v14 = vpop.permute.xlu1 %2245 }
 0xcf4   :  { %2337 = vrot.lane.b32.xlu1 %v7293_v33, %s6690_s18  ;;  %v7367_v33 = vpop.eup %6514 }
 0xcf5   :  { %v2071_v31 = vsel %vm1375_vm11, %v7367_v33, 0.0 }
 0xcfd   :  { %2291 = vrot.lane.b32.xlu0 %v7291_v29, %s6690_s18  ;;  %v7369_v29 = vpop.eup %6516 }
 0xcfe   :  { %v7373_v18 = vpop.eup %6518  ;;  %v2074_v2 = vsel %vm1375_vm11, %v7369_v29, 0.0 }
 0xcff   :  { %v2077_v21 = vsel %vm1375_vm11, %v7373_v18, 0.0  ;;  %v7379_v22 = vpop.eup %6520 }
 0xd00   :  { %v2080_v15 = vsel %vm1375_vm11, %v7379_v22, 0.0 }
 0xd18   :  { %2072 = vadd.xlane.f32.xlu1 %v2071_v31 }
 0xd19   :  { %v2064_v55 = vpop.xlane.xlu0 %2063 }
 0xd1a   :  { %6522 = vrcp.f32 %v2064_v55 }
 0xd1b   :  { %v2061_v20 = vpop.xlane.xlu1 %2060 }
 0xd1c   :  { %6524 = vrcp.f32 %v2061_v20  ;;  %2075 = vadd.xlane.f32.xlu0 %v2074_v2  ;;  %2078 = vadd.xlane.f32.xlu1 %v2077_v21 }
 0xd20   :  { %2081 = vadd.xlane.f32.xlu0 %v2080_v15 }
 0xd24   :  { %v6523_v10 = vpop.eup %6522 }
 0xd25   :  { %v2092_v38 = vmul.f32 %v6523_v10, %v6507_v25 }
 0xd26   :  { %v6525_v32 = vpop.eup %6524 }
 0xd27   :  { %v2100_v34 = vpack.c.bf16 %v2092_v38, %v2092_v38  ;;  %v2091_v9 = vmul.f32 %v6525_v32, %v6509_v57 }
 0xd29   :  { %5974 = vmatmul.mubr.msk.bf16.vlgmr.msra.gmra.mrb[56].mxu0 %vm1375_vm11, %v2100_v34  ;;  %v2099_v42 = vpack.c.bf16 %v2091_v9, %v2091_v9 }
 0xd2a   :  { %5984 = vmatpush3.bf16.msra.mxu0 %v2246_v14  ;;  %5985 = vmatprep.mubr.msk.bf16.mxu0 %vm6686_vm1, %v6683_v7 }
 0xd2b   :  { %5968 = vmatmul.mubr.msk.bf16.vlgmr.msra.gmra.mrb[60].mxu1 %vm1375_vm11, %v2099_v42  ;;  %5995 = vmatprep.subr.bf16.mxu0 %v6683_v7 }
 0xd2c   :  { %5978 = vmatpush3.bf16.msra.mxu1 %v2200_v12  ;;  %5979 = vmatprep.mubr.msk.bf16.mxu1 %vm6686_vm1, %v6683_v7 }
 0xd2d   :  { %2429 = vrot.lane.b32.xlu1 %v7312_v58, %s6690_s18  ;;  %5989 = vmatprep.subr.bf16.mxu1 %v6683_v7 }
 0xd36   :  { %2383 = vrot.lane.b32.xlu0 %v7307_v3, %s6690_s18 }
 0xd3a   :  { %2516 = vrot.lane.b32.xlu0 %v7170_v4, %s6692_s20 }
 0xd70   :  { %v2067_v25 = vpop.xlane.xlu1 %2066 }
 0xd71   :  { %6526 = vrcp.f32 %v2067_v25 }
 0xd74   :  { %v2070_v57 = vpop.xlane.xlu0 %2069  ;;  %v2338_v4 = vpop.permute.xlu1 %2337 }
 0xd75   :  { %6528 = vrcp.f32 %v2070_v57 }
 0xd78   :  { %v2292_v53 = vpop.permute.xlu0 %2291 }
 0xd7b   :  { %v6527_v5 = vpop.eup %6526 }
 0xd7c   :  { %v2093_v1 = vmul.f32 %v6527_v5, %v7352_v43 }
 0xd7e   :  { %v2101_v50 = vpack.c.bf16 %v2093_v1, %v2093_v1 }
 0xd7f   :  { %v6529_v47 = vpop.eup %6528 }
 0xd80   :  { %5980 = vmatmul.mubr.msk.bf16.vlgmr.msra.gmra.mrb[64].mxu1 %vm1375_vm11, %v2101_v50  ;;  %v2094_v58 = vmul.f32 %v6529_v47, %v7356_v56 }
 0xd81   :  { %5990 = vmatpush3.bf16.msra.mxu1 %v2292_v53  ;;  %5991 = vmatprep.mubr.msk.bf16.mxu1 %vm6686_vm1, %v6683_v7 }
 0xd82   :  { %v2102_v3 = vpack.c.bf16 %v2094_v58, %v2094_v58  ;;  %6001 = vmatprep.subr.bf16.mxu1 %v6683_v7 }
 0xd84   :  { %5986 = vmatmul.mubr.msk.bf16.vlgmr.msra.gmra.mrb[60].mxu0 %vm1375_vm11, %v2102_v3 }
 0xd85   :  { %5996 = vmatpush3.bf16.msra.mxu0 %v2338_v4  ;;  %5997 = vmatprep.mubr.msk.bf16.mxu0 %vm6686_vm1, %v6683_v7 }
 0xd86   :  { %6007 = vmatprep.subr.bf16.mxu0 %v6683_v7 }
 0xda5   :  { %v2073_v43 = vpop.xlane.xlu1 %2072 }
 0xda6   :  { %6530 = vrcp.f32 %v2073_v43 }
 0xda9   :  { %v2076_v52 = vpop.xlane.xlu0 %2075  ;;  %v2079_v56 = vpop.xlane.xlu1 %2078 }
 0xdaa   :  { %6532 = vrcp.f32 %v2076_v52 }
 0xdab   :  { %6534 = vrcp.f32 %v2079_v56 }
 0xdad   :  { %v2082_v13 = vpop.xlane.xlu0 %2081  ;;  %v2430_v14 = vpop.permute.xlu1 %2429 }
 0xdae   :  { %6536 = vrcp.f32 %v2082_v13 }
 0xdb0   :  { %v6531_v60 = vpop.eup %6530 }
 0xdb1   :  { %v2095_v62 = vmul.f32 %v6531_v60, %v7367_v33  ;;  %v2384_v48 = vpop.permute.xlu0 %2383 }
 0xdb3   :  { %v2103_v36 = vpack.c.bf16 %v2095_v62, %v2095_v62 }
 0xdb4   :  { %v6533_v49 = vpop.eup %6532 }
 0xdb5   :  { %v6535_v6 = vpop.eup %6534  ;;  %5992 = vmatmul.mubr.msk.bf16.vlgmr.msra.gmra.mrb[68].mxu1 %vm1375_vm11, %v2103_v36  ;;  %v2096_v28 = vmul.f32 %v6533_v49, %v7369_v29  ;;  %v2517_v38 = vpop.permute.xlu0 %2516 }
 0xdb6   :  { %6002 = vmatpush3.bf16.msra.mxu1 %v2384_v48  ;;  %6003 = vmatprep.mubr.msk.bf16.mxu1 %vm6686_vm1, %v6683_v7  ;;  %v2097_v40 = vmul.f32 %v6535_v6, %v7373_v18 }
 0xdb7   :  { %v2104_v17 = vpack.c.bf16 %v2096_v28, %v2096_v28  ;;  %6013 = vmatprep.subr.bf16.mxu1 %v6683_v7 }
 0xdb8   :  { %v6537_v12 = vpop.eup %6536  ;;  %v2105_v33 = vpack.c.bf16 %v2097_v40, %v2097_v40 }
 0xdb9   :  { %5998 = vmatmul.mubr.msk.bf16.vlgmr.msra.gmra.mrb[64].mxu0 %vm1375_vm11, %v2104_v17  ;;  %v2098_v29 = vmul.f32 %v6537_v12, %v7379_v22 }
 0xdba   :  { %6008 = vmatpush3.bf16.msra.mxu0 %v2430_v14  ;;  %6009 = vmatprep.mubr.msk.bf16.mxu0 %vm6686_vm1, %v6683_v7 }
 0xdbb   :  { %6021 = vmatprep.subr.bf16.mxu0 %v6683_v7  ;;  %v2106_v31 = vpack.c.bf16 %v2098_v29, %v2098_v29 }
 0xdbd   :  { %6004 = vmatmul.mubr.msk.bf16.vlgmr.msra.gmra.mrb[72].mxu1 %vm1375_vm11, %v2105_v33 }
 0xdbe   :  { %6017 = vmatprep.mubr.msk.bf16.mxu1 %vm6686_vm1, %v6683_v7  ;;  %6014 = vmatpush3.bf16.msra.mxu1 %v2517_v38 }
 0xdbf   :  { %6015 = vmatprep.subr.bf16.mxu1 %v6683_v7 }
 0xdc1   :  { %6010 = vmatmul.mubr.msk.bf16.vlgmr.msra.gmra.mrb[68].mxu0 %vm1375_vm11, %v2106_v31 }
 0xdc2   :  { %6025 = vmatprep.mubr.msk.bf16.mxu0 %vm6686_vm1, %v6683_v7 }
 0xdfc   :  { %v2193_v18 = vpop.f32.mrb[56].mxu0 }
 0xdfd   :  { %v5975_v55 = vpop.f32.mrb[57].mxu0 }
 0xdfe   :  { %v2147_v20 = vpop.f32.mrb[60].mxu1  ;;  %v2196_v2 = vpop.f32.mrb[58].mxu0 }
 0xdff   :  { %v5969_v21 = vpop.f32.mrb[61].mxu1  ;;  %v5976_v15 = vpop.f32.mrb[59].mxu0 }
 0xe00   :  { %v2150_v22 = vpop.f32.mrb[62].mxu1 }
 0xe01   :  { %v5970_v10 = vpop.f32.mrb[63].mxu1 }
 0xe53   :  { %v2239_v32 = vpop.f32.mrb[64].mxu1 }
 0xe54   :  { %v5981_v34 = vpop.f32.mrb[65].mxu1 }
 0xe55   :  { %v2242_v9 = vpop.f32.mrb[66].mxu1 }
 0xe56   :  { %v5982_v42 = vpop.f32.mrb[67].mxu1 }
 0xe57   :  { %v2285_v25 = vpop.f32.mrb[60].mxu0 }
 0xe58   :  { %v6389_v57 = vpack.i.bf16 %v2285_v25, %v2239_v32  ;;  %v5987_v5 = vpop.f32.mrb[61].mxu0 }
 0xe59   :  { %v2288_v1 = vpop.f32.mrb[62].mxu0 }
 0xe5a   :  { %v5988_v50 = vpop.f32.mrb[63].mxu0  ;;  %6390 = vrot.lane.b32.xlu1 %v6389_v57, %s6693_s21 }
 0xe88   :  { %v2331_v47 = vpop.f32.mrb[68].mxu1 }
 0xe89   :  { %v5993_v53 = vpop.f32.mrb[69].mxu1 }
 0xe8a   :  { %v2334_v58 = vpop.f32.mrb[70].mxu1 }
 0xe8b   :  { %v5994_v3 = vpop.f32.mrb[71].mxu1 }
 0xe8c   :  { %v2377_v4 = vpop.f32.mrb[64].mxu0 }
 0xe8d   :  { %v6394_v43 = vpack.i.bf16 %v2377_v4, %v2331_v47  ;;  %v5999_v52 = vpop.f32.mrb[65].mxu0 }
 0xe8e   :  { %v2380_v56 = vpop.f32.mrb[66].mxu0 }
 0xe8f   :  { %v6000_v13 = vpop.f32.mrb[67].mxu0  ;;  %6395 = vrot.lane.b32.xlu0 %v6394_v43, %s6694_s22 }
 0xe90   :  { %v2423_v60 = vpop.f32.mrb[72].mxu1 }
 0xe91   :  { %v6005_v62 = vpop.f32.mrb[73].mxu1 }
 0xe92   :  { %v2426_v36 = vpop.f32.mrb[74].mxu1 }
 0xe93   :  { %v6006_v49 = vpop.f32.mrb[75].mxu1  ;;  %2518 = vrot.lane.b32.xlu0 %v7179_v35, %s6692_s20 }
 0xe94   :  { %v2469_v6 = vpop.f32.mrb[68].mxu0 }
 0xe95   :  { %v6399_v48 = vpack.i.bf16 %v2469_v6, %v2423_v60  ;;  %v6011_v28 = vpop.f32.mrb[69].mxu0 }
 0xe96   :  { %v2472_v17 = vpop.f32.mrb[70].mxu0  ;;  %v6441_v28 = vld [vmem:[%s8139_s5 + $0x20] ss:$12 sps:$4 sm:$0xff]  }
 0xe97   :  { %v6012_v40 = vpop.f32.mrb[71].mxu0  ;;  %6400 = vrot.lane.b32.xlu1 %v6399_v48, %s6695_s23 }
 0xecc   :  { %v6391_v14 = vpop.permute.xlu1 %6390 }
 0xecd   :  { %v6393_v29 = vunpack.i.h.bf16 %v6391_v14  ;;  %v6392_v31 = vunpack.i.l.bf16 %v6391_v14 }
 0xecf   :  { %v2500_v35 = vsel %vm486_vm3, %v2193_v18, %v6393_v29  ;;  %v2499_v15 = vsel %vm486_vm3, %v2147_v20, %v6392_v31  ;;  %v7442_v18 = vsub.s32 4, %v6759_v8  ;;  %v7447_v20 = vld [vmem:[%s8141_s7] sm:$0xff]  ;;  %v2597_v31 = vrot.slane %v7223_v19, %v6801_v30 }
 0xed1   :  { %v2510_v25 = vrot.slane %v7447_v20, %v7442_v18 }
 0xf01   :  { %v6396_v12 = vpop.permute.xlu0 %6395 }
 0xf02   :  { %v6398_v55 = vunpack.i.h.bf16 %v6396_v12  ;;  %v6397_v2 = vunpack.i.l.bf16 %v6396_v12 }
 0xf04   :  { %v2502_v38 = vsel %vm1375_vm11, %v2500_v35, %v6398_v55  ;;  %v2501_v32 = vsel %vm1375_vm11, %v2499_v15, %v6397_v2 }
 0xf05   :  { %v2519_v33 = vpop.permute.xlu0 %2518 }
 0xf06   :  { %6016 = vmatpush3.bf16.msra.mxu1 %v2519_v33 }
 0xf07   :  { %6029 = vmatprep.subr.bf16.mxu1 %v6683_v7 }
 0xf09   :  { %v6401_v21 = vpop.permute.xlu1 %6400 }
 0xf0a   :  { %v6403_v22 = vunpack.i.h.bf16 %v6401_v21  ;;  %v6402_v10 = vunpack.i.l.bf16 %v6401_v21  ;;  %v2603_v21 = vrot.slane %v7223_v19, %v7257_v11 }
 0xf0c   :  { %v2504_v34 = vsel %vm223_vm7, %v2502_v38, %v6403_v22  ;;  %v2503_v9 = vsel %vm223_vm7, %v2501_v32, %v6402_v10 }
 0xf0d   :  { %v5590_v42 = vpack.c.bf16 %v2504_v34, %v2503_v9 }
 0xf0f   :  { %6018 = vmatmul.mubr.msk.bf16.vlgmr.msra.gmra.mrb[76].mxu1 %vm305_vm5, %v5590_v42 }
 0xf10   :  { %6045 = vmatprep.mubr.msk.bf16.mxu1 %vm6686_vm1, %v6683_v7 }
 0xfe2   :  { %v2559_v57 = vpop.f32.mrb[76].mxu1 }
 0xfe3   :  { %v2560_v5 = vadd.f32 %v2559_v57, %v2510_v25  ;;  %v6019_v1 = vpop.f32.mrb[77].mxu1  ;;  %v6443_v57 = vld [vmem:[%s8140_s6 + $0x8] sm:$0xff]  }
 0xfe4   :  { %v2562_v50 = vpop.f32.mrb[78].mxu1  ;;  %v6445_v1 = vld [vmem:[%s8140_s6 + $0x18] sm:$0xff]  }
 0xfe5   :  { %v2566_v47 = vadd.f32 %v2560_v5, %v7232_v46  ;;  %v2563_v53 = vadd.f32 %v2562_v50, %v2510_v25  ;;  %v6020_v58 = vpop.f32.mrb[79].mxu1  ;;  %v6442_v25 = vld [vmem:[%s8140_s6] sm:$0xff]   ;;  %v6444_v5 = vld [vmem:[%s8140_s6 + $0x10] sm:$0xff]  }
 0xfe6   :  { %6030 = vmatpush3.bf16.msra.mxu1 %v6442_v25  ;;  %v6446_v50 = vld [vmem:[%s8140_s6 + $0x20] sm:$0xff]   ;;  %v6449_v58 = vld [vmem:[%s8140_s6 + $0x38] sm:$0xff]  }
 0xfe7   :  { %v2567_v3 = vadd.f32 %v2563_v53, %v7235_v59  ;;  %v2568_v4 = vsel %vm305_vm5, %v2566_v47, 0.0  ;;  %v6440_v59 = vld [vmem:[%s8139_s5 + $0x8] ss:$12 sps:$4 sm:$0xff]   ;;  %6031 = vmatprep.subr.bf16.mxu1 %v6683_v7 }
 0xfe8   :  { %2569 = vadd.xlane.f32.xlu1 %v2568_v4  ;;  %6022 = vmatpush3.bf16.msra.mxu0 %v6440_v59  ;;  %v6448_v53 = vld [vmem:[%s8140_s6 + $0x30] sm:$0xff]  }
 0xfe9   :  { %v2571_v43 = vsel %vm305_vm5, %v2567_v3, 0.0  ;;  %6023 = vmatprep.subr.bf16.mxu0 %v6683_v7 }
 0xfea   :  { %2572 = vadd.xlane.f32.xlu0 %v2571_v43  ;;  %6032 = vmatpush3.bf16.msra.mxu1 %v6443_v57 }
 0xfeb   :  { %6033 = vmatprep.subr.bf16.mxu1 %v6683_v7 }
 0xfec   :  { %6024 = vmatpush3.bf16.msra.mxu0 %v6441_v28 }
 0xfed   :  { %6049 = vmatprep.subr.bf16.mxu0 %v6683_v7 }
 0xfee   :  { %6034 = vmatpush3.bf16.msra.mxu1 %v6444_v5 }
 0xfef   :  { %6035 = vmatprep.subr.bf16.mxu1 %v6683_v7 }
 0xff2   :  { %6036 = vmatpush3.bf16.msra.mxu1 %v6445_v1 }
 0xff3   :  { %6037 = vmatprep.subr.bf16.mxu1 %v6683_v7 }
 0xff6   :  { %6038 = vmatpush3.bf16.msra.mxu1 %v6446_v50 }
 0xff7   :  { %6039 = vmatprep.subr.bf16.mxu1 %v6683_v7 }
0x1075   :  { %v2570_v52 = vpop.xlane.xlu1 %2569 }
0x1076   :  { %v2574_v56 = vmul.f32 0.03125, %v2570_v52 }
0x1077   :  { %v2573_v13 = vpop.xlane.xlu0 %2572 }
0x1078   :  { %v2576_v60 = vsub.f32 %v2566_v47, %v2574_v56  ;;  %v2575_v62 = vmul.f32 0.03125, %v2573_v13  ;;  %v6447_v47 = vld [vmem:[%s8140_s6 + $0x28] sm:$0xff]  }
0x1079   :  { %6040 = vmatpush3.bf16.msra.mxu1 %v6447_v47 }
0x107a   :  { %v2577_v36 = vsub.f32 %v2567_v3, %v2575_v62  ;;  %v2578_v49 = vmul.f32 %v2576_v60, %v2576_v60  ;;  %6041 = vmatprep.subr.bf16.mxu1 %v6683_v7  ;;  %v2612_v3 = vsub.s32 5, %v6759_v8 }
0x107c   :  { %v2580_v6 = vsel %vm305_vm5, %v2578_v49, 0.0  ;;  %v2579_v46 = vmul.f32 %v2577_v36, %v2577_v36  ;;  %v2613_v4 = vrot.slane %v7447_v20, %v2612_v3 }
0x107d   :  { %2581 = vadd.xlane.f32.xlu0 %v2580_v6  ;;  %6042 = vmatpush3.bf16.msra.mxu1 %v6448_v53 }
0x107e   :  { %v2583_v48 = vsel %vm305_vm5, %v2579_v46, 0.0  ;;  %6043 = vmatprep.subr.bf16.mxu1 %v6683_v7 }
0x107f   :  { %2584 = vadd.xlane.f32.xlu1 %v2583_v48 }
0x1081   :  { %6044 = vmatpush3.bf16.msra.mxu1 %v6449_v58 }
0x1082   :  { %6075 = vmatprep.subr.bf16.mxu1 %v6683_v7 }
0x110a   :  { %v2582_v17 = vpop.xlane.xlu0 %2581 }
0x110b   :  { %v2586_v40 = vmul.f32 0.03125, %v2582_v17 }
0x110c   :  { %v2585_v12 = vpop.xlane.xlu1 %2584 }
0x110d   :  { %v2588_v14 = vadd.f32 1e-12, %v2586_v40  ;;  %v2587_v33 = vmul.f32 0.03125, %v2585_v12 }
0x110f   :  { %6538 = vrsqrt.f32 %v2588_v14  ;;  %v2589_v29 = vadd.f32 1e-12, %v2587_v33 }
0x1111   :  { %6540 = vrsqrt.f32 %v2589_v29 }
0x1119   :  { %v6539_v55 = vpop.eup %6538 }
0x111a   :  { %v2592_v2 = vmul.f32 %v6539_v55, %v2576_v60 }
0x111b   :  { %v6541_v35 = vpop.eup %6540 }
0x111c   :  { %v2598_v15 = vmul.f32 %v2597_v31, %v2592_v2  ;;  %v2593_v22 = vmul.f32 %v6541_v35, %v2577_v36 }
0x111e   :  { %v2599_v10 = vmul.f32 %v2597_v31, %v2593_v22  ;;  %v2604_v38 = vadd.f32 %v2603_v21, %v2598_v15  ;;  %v2713_v22 = vsub.s32 6, %v6759_v8 }
0x1120   :  { %v2605_v32 = vadd.f32 %v2603_v21, %v2599_v10  ;;  %v7470_v34 = vmul.f32 %v2604_v38, %v7225_v45  ;;  %v2714_v10 = vrot.slane %v7447_v20, %v2713_v22 }
0x1122   :  { %v7473_v9 = vmul.f32 %v2605_v32, %v7229_v27 }
0x1124   :  { %v5591_v42 = vpack.c.bf16 %v7473_v9, %v7470_v34 }
0x1126   :  { %6026 = vmatmul.mubr.msk.bf16.vlgmr.msra.gmra.mrb[72].mxu0 %vm305_vm5, %v5591_v42 }
0x1127   :  { %6053 = vmatprep.mubr.msk.bf16.mxu0 %vm6686_vm1, %v6683_v7 }
0x11f9   :  { %v2668_v43 = vpop.f32.mrb[72].mxu0 }
0x11fa   :  { %v2669_v52 = vadd.f32 %v2668_v43, %v2613_v4  ;;  %v6027_v56 = vpop.f32.mrb[73].mxu0 }
0x11fb   :  { %v2671_v13 = vpop.f32.mrb[74].mxu0 }
0x11fc   :  { %v2677_v60 = vmul.f32 0.044715, %v2669_v52  ;;  %v2672_v62 = vadd.f32 %v2671_v13, %v2613_v4  ;;  %v6028_v36 = vpop.f32.mrb[75].mxu0  ;;  %v2675_v31 = vmul.f32 0.5, %v2669_v52 }
0x11fd   :  { %v7537_v36 = vld [vmem:[%s8139_s5 + $0x48] ss:$12 sps:$4 sm:$0xff]  }
0x11fe   :  { %v2679_v49 = vmul.f32 %v2677_v60, %v2669_v52  ;;  %v2678_v6 = vmul.f32 0.044715, %v2672_v62  ;;  %v2676_v55 = vmul.f32 0.5, %v2672_v62 }
0x1200   :  { %v2681_v46 = vmul.f32 %v2679_v49, %v2669_v52  ;;  %v2680_v48 = vmul.f32 %v2678_v6, %v2672_v62 }
0x1202   :  { %v2683_v59 = vadd.f32 %v2681_v46, %v2669_v52  ;;  %v2682_v28 = vmul.f32 %v2680_v48, %v2672_v62 }
0x1204   :  { %v2685_v17 = vmul.f32 0.7978846, %v2683_v59  ;;  %v2684_v40 = vadd.f32 %v2682_v28, %v2672_v62 }
0x1206   :  { %6542 = vtanh.f32 %v2685_v17  ;;  %v2686_v12 = vmul.f32 0.7978846, %v2684_v40  ;;  %v2841_v17 = vrot.slane %v7223_v19, %v7243_v61 }
0x1208   :  { %6544 = vtanh.f32 %v2686_v12 }
0x1210   :  { %v6543_v14 = vpop.eup %6542 }
0x1211   :  { %v2689_v33 = vadd.f32 1.0, %v6543_v14  ;;  %v2847_v14 = vrot.slane %v7223_v19, %v7442_v18  ;;  %v7560_v19 = vld [vmem:[%s8141_s7 + $0x10] sm:$0xff] }
0x1212   :  { %v6545_v29 = vpop.eup %6544 }
0x1213   :  { %v2690_v2 = vadd.f32 1.0, %v6545_v29  ;;  %v2691_v21 = vmul.f32 %v2689_v33, %v2675_v31 }
0x1215   :  { %v2692_v35 = vmul.f32 %v2690_v2, %v2676_v55 }
0x1217   :  { %v5592_v15 = vpack.c.bf16 %v2692_v35, %v2691_v21 }
0x1219   :  { %6046 = vmatmul.mubr.bf16.vlgmr.msra.gmra.mrb[80].mxu1 %v5592_v15 }
0x121a   :  { %6077 = vmatprep.mubr.msk.bf16.mxu1 %vm6686_vm1, %v6683_v7 }
0x12ec   :  { %v2803_v38 = vpop.f32.mrb[80].mxu1 }
0x12ed   :  { %v2804_v32 = vadd.f32 %v2803_v38, %v2714_v10  ;;  %v6047_v42 = vpop.f32.mrb[81].mxu1  ;;  %v2869_v38 = vrot.slane %v7560_v19, %v6774_v16 }
0x12ee   :  { %v2806_v25 = vpop.f32.mrb[82].mxu1 }
0x12ef   :  { %v2810_v57 = vadd.f32 %v2804_v32, %v7470_v34  ;;  %v2807_v5 = vadd.f32 %v2806_v25, %v2714_v10  ;;  %v6048_v1 = vpop.f32.mrb[83].mxu1 }
0x12f1   :  { %v2811_v50 = vadd.f32 %v2807_v5, %v7473_v9  ;;  %v2812_v47 = vsel %vm305_vm5, %v2810_v57, 0.0  ;;  %v7531_v9 = vld [vmem:[%s8139_s5 + $0x30] ss:$12 sps:$4 sm:$0xff]  }
0x12f2   :  { %2813 = vadd.xlane.f32.xlu0 %v2812_v47  ;;  %6050 = vmatpush3.bf16.msra.mxu0 %v7531_v9 }
0x12f3   :  { %v2815_v53 = vsel %vm305_vm5, %v2811_v50, 0.0  ;;  %6051 = vmatprep.subr.bf16.mxu0 %v6683_v7 }
0x12f4   :  { %2816 = vadd.xlane.f32.xlu1 %v2815_v53 }
0x12f6   :  { %6052 = vmatpush3.bf16.msra.mxu0 %v7537_v36 }
0x12f7   :  { %6057 = vmatprep.subr.bf16.mxu0 %v6683_v7 }
0x137f   :  { %v2814_v58 = vpop.xlane.xlu0 %2813 }
0x1380   :  { %v2818_v4 = vmul.f32 0.03125, %v2814_v58 }
0x1381   :  { %v2817_v43 = vpop.xlane.xlu1 %2816 }
0x1382   :  { %v2820_v20 = vsub.f32 %v2810_v57, %v2818_v4  ;;  %v2819_v52 = vmul.f32 0.03125, %v2817_v43 }
0x1384   :  { %v2821_v56 = vsub.f32 %v2811_v50, %v2819_v52  ;;  %v2822_v13 = vmul.f32 %v2820_v20, %v2820_v20 }
0x1386   :  { %v2824_v60 = vsel %vm305_vm5, %v2822_v13, 0.0  ;;  %v2823_v34 = vmul.f32 %v2821_v56, %v2821_v56 }
0x1387   :  { %2825 = vadd.xlane.f32.xlu0 %v2824_v60 }
0x1388   :  { %v2827_v62 = vsel %vm305_vm5, %v2823_v34, 0.0 }
0x1389   :  { %2828 = vadd.xlane.f32.xlu1 %v2827_v62 }
0x1414   :  { %v2826_v49 = vpop.xlane.xlu0 %2825 }
0x1415   :  { %v2830_v6 = vmul.f32 0.03125, %v2826_v49 }
0x1416   :  { %v2829_v46 = vpop.xlane.xlu1 %2828 }
0x1417   :  { %v2832_v48 = vadd.f32 1e-12, %v2830_v6  ;;  %v2831_v59 = vmul.f32 0.03125, %v2829_v46 }
0x1419   :  { %6546 = vrsqrt.f32 %v2832_v48  ;;  %v2833_v28 = vadd.f32 1e-12, %v2831_v59 }
0x141b   :  { %6548 = vrsqrt.f32 %v2833_v28 }
0x1423   :  { %v6547_v40 = vpop.eup %6546 }
0x1424   :  { %v2836_v12 = vmul.f32 %v6547_v40, %v2820_v20 }
0x1425   :  { %v6549_v33 = vpop.eup %6548 }
0x1426   :  { %v2842_v29 = vmul.f32 %v2841_v17, %v2836_v12  ;;  %v2837_v31 = vmul.f32 %v6549_v33, %v2821_v56 }
0x1428   :  { %v2843_v55 = vmul.f32 %v2841_v17, %v2837_v31  ;;  %v2848_v2 = vadd.f32 %v2847_v14, %v2842_v29 }
0x142a   :  { %v2849_v21 = vadd.f32 %v2847_v14, %v2843_v55  ;;  %v7547_v35 = vmul.f32 %v2848_v2, %v7225_v45 }
0x142c   :  { %v7550_v15 = vmul.f32 %v2849_v21, %v7229_v27 }
0x142e   :  { %v5593_v10 = vpack.c.bf16 %v7550_v15, %v7547_v35 }
0x1430   :  { %6054 = vmatmul.mubr.msk.bf16.vlgmr.msra.gmra.mrb[76].mxu0 %vm305_vm5, %v5593_v10 }
0x1431   :  { %6059 = vmatprep.mubr.msk.bf16.mxu0 %vm6686_vm1, %v6683_v7 }
0x1503   :  { %v2924_v32 = vpop.f32.mrb[76].mxu0 }
0x1504   :  { %v2925_v42 = vadd.f32 %v2924_v32, %v2869_v38  ;;  %v6055_v25 = vpop.f32.mrb[77].mxu0 }
0x1505   :  { %v2927_v57 = vpop.f32.mrb[78].mxu0 }
0x1506   :  { %v2931_v5 = vpack.c.bf16 %v2925_v42, %v2925_v42  ;;  %v2928_v1 = vadd.f32 %v2927_v57, %v2869_v38  ;;  %v6056_v50 = vpop.f32.mrb[79].mxu0 }
0x1508   :  { %v2932_v47 = vpack.c.bf16 %v2928_v1, %v2928_v1  ;;  %2935 = vrot.lane.b32.xlu0 %v2931_v5, %s6687_s3 }
0x150a   :  { %2937 = vrot.lane.b32.xlu1 %v2932_v47, %s6687_s3 }
0x150c   :  { %2941 = vrot.lane.b32.xlu0 %v2932_v47, %s6688_s16 }
0x150e   :  { %2939 = vrot.lane.b32.xlu1 %v2931_v5, %s6688_s16 }
0x1510   :  { %2945 = vrot.lane.b32.xlu0 %v2932_v47, %s6689_s17 }
0x1512   :  { %2943 = vrot.lane.b32.xlu1 %v2931_v5, %s6689_s17 }
0x1514   :  { %2995 = vrot.lane.b32.xlu0 %v2932_v47, %s6690_s18 }
0x1516   :  { %2947 = vrot.lane.b32.xlu1 %v2931_v5, %s6690_s18 }
0x157a   :  { %v7572_v53 = vpop.permute.xlu0 %2935 }
0x157b   :  { %3043 = vrot.lane.b32.xlu1 %v7572_v53, %s6690_s18 }
0x157c   :  { %v7576_v58 = vpop.permute.xlu1 %2937 }
0x157d   :  { %3091 = vrot.lane.b32.xlu0 %v7576_v58, %s6690_s18 }
0x157e   :  { %v7580_v4 = vpop.permute.xlu0 %2941 }
0x1580   :  { %v7582_v43 = vpop.permute.xlu1 %2939 }
0x1581   :  { %3187 = vrot.lane.b32.xlu0 %v7580_v4, %s6690_s18  ;;  %3139 = vrot.lane.b32.xlu1 %v7582_v43, %s6690_s18 }
0x1582   :  { %v7588_v20 = vpop.permute.xlu0 %2945 }
0x1584   :  { %v7590_v52 = vpop.permute.xlu1 %2943 }
0x1585   :  { %3283 = vrot.lane.b32.xlu0 %v7588_v20, %s6690_s18  ;;  %3235 = vrot.lane.b32.xlu1 %v7590_v52, %s6690_s18 }
0x1586   :  { %v2996_v60 = vpop.permute.xlu0 %2995 }
0x1587   :  { %v3001_v34 = vsel %vm486_vm3, %v2996_v60, 0 }
0x1588   :  { %v2948_v56 = vpop.permute.xlu1 %2947 }
0x1589   :  { %v2953_v13 = vsel %vm486_vm3, %v2948_v56, 0  ;;  %3427 = vrot.lane.b32.xlu0 %v2931_v5, %s6691_s19  ;;  %3475 = vrot.lane.b32.xlu1 %v2932_v47, %s6691_s19 }
0x158a   :  { %6058 = vmatpush3.bf16.xpose.msra.mxu0 %v2953_v13 }
0x158b   :  { %6063 = vmatprep.subr.bf16.mxu0 %v6683_v7 }
0x1591   :  { %6060 = vmatmul.mubr.msk.bf16.vlgmr.msra.gmra.mrb[80].mxu0 %vm486_vm3, %v2931_v5 }
0x1592   :  { %6064 = vmatpush3.bf16.xpose.msra.mxu0 %v3001_v34  ;;  %6065 = vmatprep.mubr.msk.bf16.mxu0 %vm6686_vm1, %v6683_v7 }
0x1593   :  { %6069 = vmatprep.subr.bf16.mxu0 %v6683_v7 }
0x1599   :  { %6066 = vmatmul.mubr.msk.bf16.vlgmr.msra.gmra.mrb[84].mxu0 %vm486_vm3, %v2932_v47 }
0x159a   :  { %6071 = vmatprep.mubr.msk.bf16.mxu0 %vm6686_vm1, %v6683_v7 }
0x15ed   :  { %v3044_v62 = vpop.permute.xlu1 %3043 }
0x15ee   :  { %v3049_v49 = vsel %vm486_vm3, %v3044_v62, 0 }
0x15ef   :  { %v3092_v6 = vpop.permute.xlu0 %3091  ;;  %6070 = vmatpush3.bf16.xpose.msra.mxu0 %v3049_v49 }
0x15f0   :  { %v3097_v46 = vsel %vm486_vm3, %v3092_v6, 0  ;;  %6081 = vmatprep.subr.bf16.mxu0 %v6683_v7 }
0x15f1   :  { %6076 = vmatpush3.bf16.xpose.msra.mxu1 %v3097_v46 }
0x15f2   :  { %6087 = vmatprep.subr.bf16.mxu1 %v6683_v7 }
0x15f3   :  { %v3140_v48 = vpop.permute.xlu1 %3139  ;;  %v3188_v59 = vpop.permute.xlu0 %3187 }
0x15f4   :  { %v3145_v28 = vsel %vm486_vm3, %v3140_v48, 0  ;;  %v3193_v17 = vsel %vm486_vm3, %v3188_v59, 0 }
0x15f6   :  { %6072 = vmatmul.mubr.msk.bf16.vlgmr.msra.gmra.mrb[88].mxu0 %vm486_vm3, %v7572_v53 }
0x15f7   :  { %6082 = vmatpush3.bf16.xpose.msra.mxu0 %v3145_v28  ;;  %6083 = vmatprep.mubr.msk.bf16.mxu0 %vm6686_vm1, %v6683_v7  ;;  %v3236_v40 = vpop.permute.xlu1 %3235  ;;  %v3284_v12 = vpop.permute.xlu0 %3283 }
0x15f8   :  { %6078 = vmatmul.mubr.msk.bf16.vlgmr.msra.gmra.mrb[84].mxu1 %vm486_vm3, %v7576_v58  ;;  %6093 = vmatprep.subr.bf16.mxu0 %v6683_v7  ;;  %v3241_v14 = vsel %vm486_vm3, %v3236_v40, 0  ;;  %v3289_v33 = vsel %vm486_vm3, %v3284_v12, 0 }
0x15f9   :  { %6088 = vmatpush3.bf16.xpose.msra.mxu1 %v3193_v17  ;;  %6089 = vmatprep.mubr.msk.bf16.mxu1 %vm6686_vm1, %v6683_v7 }
0x15fa   :  { %6099 = vmatprep.subr.bf16.mxu1 %v6683_v7 }
0x15fb   :  { %v3428_v29 = vpop.permute.xlu0 %3427  ;;  %v3476_v31 = vpop.permute.xlu1 %3475 }
0x15fc   :  { %v3433_v55 = vsel %vm46_vm6, %v3428_v29, 0  ;;  %v3481_v2 = vsel %vm46_vm6, %v3476_v31, 0 }
0x15fe   :  { %6084 = vmatmul.mubr.msk.bf16.vlgmr.msra.gmra.mrb[92].mxu0 %vm486_vm3, %v7582_v43 }
0x15ff   :  { %6094 = vmatpush3.bf16.xpose.msra.mxu0 %v3241_v14  ;;  %6095 = vmatprep.mubr.msk.bf16.mxu0 %vm6686_vm1, %v6683_v7 }
0x1600   :  { %6090 = vmatmul.mubr.msk.bf16.vlgmr.msra.gmra.mrb[88].mxu1 %vm486_vm3, %v7580_v4  ;;  %6105 = vmatprep.subr.bf16.mxu0 %v6683_v7 }
0x1601   :  { %6100 = vmatpush3.bf16.xpose.msra.mxu1 %v3289_v33  ;;  %6101 = vmatprep.mubr.msk.bf16.mxu1 %vm6686_vm1, %v6683_v7 }
0x1602   :  { %6111 = vmatprep.subr.bf16.mxu1 %v6683_v7 }
0x1606   :  { %6096 = vmatmul.mubr.msk.bf16.vlgmr.msra.gmra.mrb[96].mxu0 %vm486_vm3, %v7590_v52 }
0x1607   :  { %6106 = vmatpush3.bf16.msra.mxu0 %v3433_v55  ;;  %6107 = vmatprep.mubr.msk.bf16.mxu0 %vm6686_vm1, %v6683_v7 }
0x1608   :  { %6102 = vmatmul.mubr.msk.bf16.vlgmr.msra.gmra.mrb[92].mxu1 %vm486_vm3, %v7588_v20  ;;  %6117 = vmatprep.subr.bf16.mxu0 %v6683_v7 }
0x1609   :  { %6112 = vmatpush3.bf16.msra.mxu1 %v3481_v2  ;;  %6113 = vmatprep.mubr.msk.bf16.mxu1 %vm6686_vm1, %v6683_v7 }
0x160a   :  { %6123 = vmatprep.subr.bf16.mxu1 %v6683_v7 }
0x1664   :  { %v2989_v21 = vpop.f32.mrb[80].mxu0 }
0x1665   :  { %v2990_v10 = vadd.f32 %v2989_v21, %v6999_v26  ;;  %v6061_v38 = vpop.f32.mrb[81].mxu0 }
0x1666   :  { %v2992_v32 = vpop.f32.mrb[82].mxu0 }
0x1667   :  { %v6062_v42 = vpop.f32.mrb[83].mxu0  ;;  %v3331_v25 = vsel %vm486_vm3, %v2990_v10, -inf }
0x1668   :  { %3332 = vmax.xlane.f32.xlu1 %v3331_v25 }
0x166c   :  { %v3037_v57 = vpop.f32.mrb[84].mxu0 }
0x166d   :  { %v3038_v5 = vadd.f32 %v3037_v57, %v7008_v37  ;;  %v6067_v1 = vpop.f32.mrb[85].mxu0 }
0x166e   :  { %v3040_v50 = vpop.f32.mrb[86].mxu0 }
0x166f   :  { %v6068_v47 = vpop.f32.mrb[87].mxu0  ;;  %v3334_v56 = vsel %vm486_vm3, %v3038_v5, -inf }
0x1670   :  { %3335 = vmax.xlane.f32.xlu0 %v3334_v56 }
0x16c9   :  { %v3085_v13 = vpop.f32.mrb[88].mxu0 }
0x16ca   :  { %v3086_v60 = vadd.f32 %v3085_v13, %v7017_v54  ;;  %v6073_v34 = vpop.f32.mrb[89].mxu0 }
0x16cb   :  { %v3088_v26 = vpop.f32.mrb[90].mxu0  ;;  %v3133_v62 = vpop.f32.mrb[84].mxu1 }
0x16cc   :  { %v3134_v49 = vadd.f32 %v3133_v62, %v7029_v0  ;;  %v6074_v6 = vpop.f32.mrb[91].mxu0  ;;  %v6079_v46 = vpop.f32.mrb[85].mxu1  ;;  %v3337_v48 = vsel %vm486_vm3, %v3086_v60, -inf }
0x16cd   :  { %3338 = vmax.xlane.f32.xlu0 %v3337_v48  ;;  %v3136_v37 = vpop.f32.mrb[86].mxu1 }
0x16ce   :  { %v6080_v59 = vpop.f32.mrb[87].mxu1  ;;  %v3340_v28 = vsel %vm486_vm3, %v3134_v49, -inf }
0x16cf   :  { %3341 = vmax.xlane.f32.xlu1 %v3340_v28 }
0x16d1   :  { %v3181_v17 = vpop.f32.mrb[92].mxu0 }
0x16d2   :  { %v7657_v40 = vadd.f32 %v3181_v17, %v7026_v63  ;;  %v6085_v54 = vpop.f32.mrb[93].mxu0 }
0x16d3   :  { %v3184_v12 = vpop.f32.mrb[94].mxu0  ;;  %v3229_v14 = vpop.f32.mrb[88].mxu1 }
0x16d4   :  { %v3230_v33 = vadd.f32 %v3229_v14, %v7043_v24  ;;  %v6086_v0 = vpop.f32.mrb[95].mxu0  ;;  %v6091_v29 = vpop.f32.mrb[89].mxu1  ;;  %v3343_v31 = vsel %vm486_vm3, %v7657_v40, -inf }
0x16d5   :  { %3344 = vmax.xlane.f32.xlu0 %v3343_v31  ;;  %v3232_v55 = vpop.f32.mrb[90].mxu1 }
0x16d6   :  { %v6092_v2 = vpop.f32.mrb[91].mxu1  ;;  %v3346_v21 = vsel %vm486_vm3, %v3230_v33, -inf }
0x16d7   :  { %3347 = vmax.xlane.f32.xlu1 %v3346_v21 }
0x16d9   :  { %v3277_v38 = vpop.f32.mrb[96].mxu0 }
0x16da   :  { %v7664_v63 = vadd.f32 %v3277_v38, %v7040_v23  ;;  %v6097_v32 = vpop.f32.mrb[97].mxu0 }
0x16db   :  { %v3280_v42 = vpop.f32.mrb[98].mxu0  ;;  %v3325_v25 = vpop.f32.mrb[92].mxu1 }
0x16dc   :  { %v3326_v24 = vadd.f32 %v3325_v25, %v7053_v44  ;;  %v6098_v57 = vpop.f32.mrb[99].mxu0  ;;  %v6103_v1 = vpop.f32.mrb[93].mxu1  ;;  %v3349_v50 = vsel %vm486_vm3, %v7664_v63, -inf }
0x16dd   :  { %3350 = vmax.xlane.f32.xlu0 %v3349_v50  ;;  %v3328_v47 = vpop.f32.mrb[94].mxu1 }
0x16de   :  { %v6104_v56 = vpop.f32.mrb[95].mxu1  ;;  %v3352_v13 = vsel %vm486_vm3, %v3326_v24, -inf }
0x16df   :  { %3353 = vmax.xlane.f32.xlu1 %v3352_v13 }
0x16f0   :  { %3523 = vrot.lane.b32.xlu1 %v7572_v53, %s6691_s19 }
0x16f3   :  { %3571 = vrot.lane.b32.xlu0 %v7576_v58, %s6691_s19 }
0x16f5   :  { %v3333_v23 = vpop.xlane.xlu1 %3332 }
0x16f6   :  { %v3355_v34 = vsub.f32 %v2990_v10, %v3333_v23 }
0x16f8   :  { %v3363_v62 = vmul.f32 1.442695, %v3355_v34 }
0x16fa   :  { %6550 = vpow2.f32 %v3363_v62 }
0x16fd   :  { %v3336_v44 = vpop.xlane.xlu0 %3335 }
0x16fe   :  { %v3356_v26 = vsub.f32 %v3038_v5, %v3336_v44 }
0x1700   :  { %v3365_v6 = vmul.f32 1.442695, %v3356_v26 }
0x1702   :  { %6552 = vpow2.f32 %v3365_v6 }
0x1704   :  { %v6551_v46 = vpop.eup %6550 }
0x1705   :  { %v3379_v37 = vsel %vm486_vm3, %v6551_v46, 0.0 }
0x170c   :  { %v6553_v48 = vpop.eup %6552 }
0x170d   :  { %v3382_v59 = vsel %vm486_vm3, %v6553_v48, 0.0 }
0x1712   :  { %3380 = vadd.xlane.f32.xlu0 %v3379_v37 }
0x1714   :  { %3383 = vadd.xlane.f32.xlu1 %v3382_v59 }
0x1725   :  { %3619 = vrot.lane.b32.xlu1 %v7582_v43, %s6691_s19 }
0x175a   :  { %v3339_v53 = vpop.xlane.xlu0 %3338 }
0x175b   :  { %v3357_v58 = vsub.f32 %v3086_v60, %v3339_v53 }
0x175c   :  { %v3342_v10 = vpop.xlane.xlu1 %3341 }
0x175d   :  { %v3367_v28 = vmul.f32 1.442695, %v3357_v58  ;;  %v3358_v5 = vsub.f32 %v3134_v49, %v3342_v10 }
0x175f   :  { %6554 = vpow2.f32 %v3367_v28  ;;  %v3369_v17 = vmul.f32 1.442695, %v3358_v5 }
0x1761   :  { %6556 = vpow2.f32 %v3369_v17 }
0x1762   :  { %v3345_v32 = vpop.xlane.xlu0 %3344 }
0x1763   :  { %v3359_v42 = vsub.f32 %v7657_v40, %v3345_v32 }
0x1764   :  { %v3348_v54 = vpop.xlane.xlu1 %3347 }
0x1765   :  { %v3360_v12 = vsub.f32 %v3230_v33, %v3348_v54 }
0x1767   :  { %v3373_v14 = vmul.f32 1.442695, %v3360_v12 }
0x1769   :  { %v7678_v0 = vpop.eup %6554  ;;  %6558 = vpow2.f32 %v3373_v14 }
0x176a   :  { %v3385_v29 = vsel %vm486_vm3, %v7678_v0, 0.0  ;;  %v3351_v25 = vpop.xlane.xlu0 %3350 }
0x176b   :  { %v7682_v31 = vpop.eup %6556  ;;  %3386 = vadd.xlane.f32.xlu0 %v3385_v29  ;;  %v3361_v57 = vsub.f32 %v7664_v63, %v3351_v25 }
0x176c   :  { %v3354_v43 = vpop.xlane.xlu1 %3353  ;;  %v3388_v60 = vsel %vm486_vm3, %v7682_v31, 0.0 }
0x176d   :  { %v3362_v49 = vsub.f32 %v3326_v24, %v3354_v43  ;;  %3389 = vadd.xlane.f32.xlu1 %v3388_v60  ;;  %v3371_v24 = vmul.f32 1.442695, %v3359_v42  ;;  %v3375_v1 = vmul.f32 1.442695, %v3361_v57 }
0x176e   :  { %v3572_v50 = vpop.permute.xlu0 %3571 }
0x176f   :  { %v3377_v55 = vmul.f32 1.442695, %v3362_v49  ;;  %v3577_v37 = vsel %vm46_vm6, %v3572_v50, 0 }
0x1771   :  { %6560 = vpow2.f32 %v3377_v55 }
0x1772   :  { %6562 = vpow2.f32 %v3371_v24 }
0x1773   :  { %v7686_v2 = vpop.eup %6558  ;;  %6564 = vpow2.f32 %v3375_v1 }
0x1774   :  { %v3394_v33 = vsel %vm486_vm3, %v7686_v2, 0.0 }
0x1775   :  { %3395 = vadd.xlane.f32.xlu1 %v3394_v33 }
0x177b   :  { %v7690_v21 = vpop.eup %6560 }
0x177c   :  { %v3400_v38 = vsel %vm486_vm3, %v7690_v21, 0.0  ;;  %v7702_v47 = vpop.eup %6562 }
0x177d   :  { %3401 = vadd.xlane.f32.xlu1 %v3400_v38  ;;  %v3391_v40 = vsel %vm486_vm3, %v7702_v47, 0.0  ;;  %v7706_v13 = vpop.eup %6564 }
0x1781   :  { %3667 = vrot.lane.b32.xlu0 %v7580_v4, %s6691_s19  ;;  %v3524_v4 = vpop.permute.xlu1 %3523 }
0x1782   :  { %v3529_v62 = vsel %vm46_vm6, %v3524_v4, 0 }
0x178e   :  { %3715 = vrot.lane.b32.xlu1 %v7590_v52, %s6691_s19  ;;  %v3397_v52 = vsel %vm486_vm3, %v7706_v13, 0.0 }
0x1792   :  { %3852 = vrot.lane.b32.xlu1 %v7531_v9, %s6692_s20 }
0x179f   :  { %v3381_v56 = vpop.xlane.xlu0 %3380 }
0x17a0   :  { %6566 = vrcp.f32 %v3381_v56  ;;  %3392 = vadd.xlane.f32.xlu0 %v3391_v40 }
0x17a1   :  { %v3384_v63 = vpop.xlane.xlu1 %3383 }
0x17a2   :  { %6568 = vrcp.f32 %v3384_v63 }
0x17a4   :  { %3398 = vadd.xlane.f32.xlu0 %v3397_v52 }
0x17aa   :  { %v6567_v9 = vpop.eup %6566 }
0x17ab   :  { %v3411_v23 = vmul.f32 %v6567_v9, %v6551_v46  ;;  %v3620_v46 = vpop.permute.xlu1 %3619 }
0x17ac   :  { %v6569_v34 = vpop.eup %6568  ;;  %v3625_v12 = vsel %vm46_vm6, %v3620_v46, 0 }
0x17ad   :  { %v3412_v44 = vmul.f32 %v6569_v34, %v6553_v48  ;;  %v3419_v26 = vpack.c.bf16 %v3411_v23, %v3411_v23 }
0x17af   :  { %6108 = vmatmul.mubr.msk.bf16.vlgmr.msra.gmra.mrb[100].mxu0 %vm486_vm3, %v3419_v26  ;;  %v3420_v6 = vpack.c.bf16 %v3412_v44, %v3412_v44 }
0x17b0   :  { %6118 = vmatpush3.bf16.msra.mxu0 %v3529_v62  ;;  %6119 = vmatprep.mubr.msk.bf16.mxu0 %vm6686_vm1, %v6683_v7 }
0x17b1   :  { %6114 = vmatmul.mubr.msk.bf16.vlgmr.msra.gmra.mrb[96].mxu1 %vm486_vm3, %v3420_v6  ;;  %6129 = vmatprep.subr.bf16.mxu0 %v6683_v7 }
0x17b2   :  { %6124 = vmatpush3.bf16.msra.mxu1 %v3577_v37  ;;  %6125 = vmatprep.mubr.msk.bf16.mxu1 %vm6686_vm1, %v6683_v7 }
0x17b3   :  { %6135 = vmatprep.subr.bf16.mxu1 %v6683_v7 }
0x17ba   :  { %3763 = vrot.lane.b32.xlu0 %v7588_v20, %s6691_s19 }
0x17f8   :  { %v3387_v48 = vpop.xlane.xlu0 %3386 }
0x17f9   :  { %6570 = vrcp.f32 %v3387_v48 }
0x17fa   :  { %v3390_v59 = vpop.xlane.xlu1 %3389 }
0x17fb   :  { %6572 = vrcp.f32 %v3390_v59 }
0x17fc   :  { %v3668_v54 = vpop.permute.xlu0 %3667 }
0x17fd   :  { %v3673_v14 = vsel %vm46_vm6, %v3668_v54, 0 }
0x1802   :  { %v3396_v53 = vpop.xlane.xlu1 %3395 }
0x1803   :  { %v6571_v58 = vpop.eup %6570  ;;  %6574 = vrcp.f32 %v3396_v53 }
0x1804   :  { %v3413_v10 = vmul.f32 %v6571_v58, %v7678_v0 }
0x1805   :  { %v6573_v28 = vpop.eup %6572 }
0x1806   :  { %v3414_v5 = vmul.f32 %v6573_v28, %v7682_v31  ;;  %v3421_v17 = vpack.c.bf16 %v3413_v10, %v3413_v10 }
0x1808   :  { %6120 = vmatmul.mubr.msk.bf16.vlgmr.msra.gmra.mrb[104].mxu0 %vm486_vm3, %v3421_v17  ;;  %v3422_v20 = vpack.c.bf16 %v3414_v5, %v3414_v5 }
0x1809   :  { %6130 = vmatpush3.bf16.msra.mxu0 %v3625_v12  ;;  %6131 = vmatprep.mubr.msk.bf16.mxu0 %vm6686_vm1, %v6683_v7 }
0x180a   :  { %6126 = vmatmul.mubr.msk.bf16.vlgmr.msra.gmra.mrb[100].mxu1 %vm486_vm3, %v3422_v20  ;;  %6141 = vmatprep.subr.bf16.mxu0 %v6683_v7  ;;  %v3402_v43 = vpop.xlane.xlu1 %3401 }
0x180b   :  { %6136 = vmatpush3.bf16.msra.mxu1 %v3673_v14  ;;  %6137 = vmatprep.mubr.msk.bf16.mxu1 %vm6686_vm1, %v6683_v7  ;;  %6576 = vrcp.f32 %v3402_v43 }
0x180c   :  { %6147 = vmatprep.subr.bf16.mxu1 %v6683_v7 }
0x180d   :  { %v6575_v0 = vpop.eup %6574 }
0x180e   :  { %v3416_v29 = vmul.f32 %v6575_v0, %v7686_v2  ;;  %v3716_v24 = vpop.permute.xlu1 %3715 }
0x1810   :  { %v3424_v31 = vpack.c.bf16 %v3416_v29, %v3416_v29 }
0x1812   :  { %6138 = vmatmul.mubr.msk.bf16.vlgmr.msra.gmra.mrb[104].mxu1 %vm486_vm3, %v3424_v31  ;;  %v3853_v44 = vpop.permute.xlu1 %3852 }
0x1813   :  { %6149 = vmatprep.mubr.msk.bf16.mxu1 %vm6686_vm1, %v6683_v7 }
0x1815   :  { %v6577_v49 = vpop.eup %6576 }
0x1816   :  { %v3418_v33 = vmul.f32 %v6577_v49, %v7690_v21  ;;  %v3721_v21 = vsel %vm46_vm6, %v3716_v24, 0 }
0x1818   :  { %v3426_v42 = vpack.c.bf16 %v3418_v33, %v3418_v33 }
0x182d   :  { %v3393_v60 = vpop.xlane.xlu0 %3392 }
0x182e   :  { %6578 = vrcp.f32 %v3393_v60 }
0x1831   :  { %v3399_v55 = vpop.xlane.xlu0 %3398 }
0x1832   :  { %6580 = vrcp.f32 %v3399_v55 }
0x1835   :  { %v3764_v38 = vpop.permute.xlu0 %3763 }
0x1836   :  { %v3769_v32 = vsel %vm46_vm6, %v3764_v38, 0 }
0x1837   :  { %6148 = vmatpush3.bf16.msra.mxu1 %v3769_v32 }
0x1838   :  { %v6579_v2 = vpop.eup %6578  ;;  %6161 = vmatprep.subr.bf16.mxu1 %v6683_v7 }
0x1839   :  { %v3415_v25 = vmul.f32 %v6579_v2, %v7702_v47 }
0x183a   :  { %6150 = vmatmul.mubr.msk.bf16.vlgmr.msra.gmra.mrb[108].mxu1 %vm486_vm3, %v3426_v42 }
0x183b   :  { %v3423_v57 = vpack.c.bf16 %v3415_v25, %v3415_v25  ;;  %6165 = vmatprep.mubr.msk.bf16.mxu1 %vm6686_vm1, %v6683_v7 }
0x183c   :  { %v6581_v1 = vpop.eup %6580 }
0x183d   :  { %6132 = vmatmul.mubr.msk.bf16.vlgmr.msra.gmra.mrb[108].mxu0 %vm486_vm3, %v3423_v57  ;;  %v3417_v50 = vmul.f32 %v6581_v1, %v7706_v13 }
0x183e   :  { %6142 = vmatpush3.bf16.msra.mxu0 %v3721_v21  ;;  %6143 = vmatprep.mubr.msk.bf16.mxu0 %vm6686_vm1, %v6683_v7 }
0x183f   :  { %6153 = vmatprep.subr.bf16.mxu0 %v6683_v7  ;;  %v3425_v47 = vpack.c.bf16 %v3417_v50, %v3417_v50 }
0x1845   :  { %6144 = vmatmul.mubr.msk.bf16.vlgmr.msra.gmra.mrb[112].mxu0 %vm486_vm3, %v3425_v47 }
0x1846   :  { %6157 = vmatprep.mubr.msk.bf16.mxu0 %vm6686_vm1, %v6683_v7  ;;  %6154 = vmatpush3.bf16.msra.mxu0 %v3853_v44 }
0x1847   :  { %6155 = vmatprep.subr.bf16.mxu0 %v6683_v7 }
0x1882   :  { %v3469_v4 = vpop.f32.mrb[100].mxu0 }
0x1883   :  { %v6109_v56 = vpop.f32.mrb[101].mxu0 }
0x1884   :  { %v3472_v40 = vpop.f32.mrb[102].mxu0  ;;  %v3517_v63 = vpop.f32.mrb[96].mxu1 }
0x1885   :  { %v6110_v52 = vpop.f32.mrb[103].mxu0  ;;  %v6115_v9 = vpop.f32.mrb[97].mxu1 }
0x1886   :  { %v3520_v23 = vpop.f32.mrb[98].mxu1 }
0x1887   :  { %v6116_v34 = vpop.f32.mrb[99].mxu1 }
0x18db   :  { %v3565_v13 = vpop.f32.mrb[104].mxu0 }
0x18dc   :  { %v6121_v26 = vpop.f32.mrb[105].mxu0 }
0x18dd   :  { %v3568_v62 = vpop.f32.mrb[106].mxu0  ;;  %v3613_v6 = vpop.f32.mrb[100].mxu1 }
0x18de   :  { %v6404_v37 = vpack.i.bf16 %v3613_v6, %v3565_v13  ;;  %v6122_v46 = vpop.f32.mrb[107].mxu0  ;;  %v6127_v48 = vpop.f32.mrb[101].mxu1 }
0x18df   :  { %v3616_v59 = vpop.f32.mrb[102].mxu1 }
0x18e0   :  { %6405 = vrot.lane.b32.xlu0 %v6404_v37, %s6693_s21  ;;  %v6128_v53 = vpop.f32.mrb[103].mxu1 }
0x18e5   :  { %v3709_v58 = vpop.f32.mrb[104].mxu1 }
0x18e6   :  { %v6139_v10 = vpop.f32.mrb[105].mxu1 }
0x18e7   :  { %v3712_v28 = vpop.f32.mrb[106].mxu1 }
0x18e8   :  { %v6140_v5 = vpop.f32.mrb[107].mxu1 }
0x190d   :  { %v3805_v17 = vpop.f32.mrb[108].mxu1 }
0x190e   :  { %v6151_v54 = vpop.f32.mrb[109].mxu1 }
0x190f   :  { %v3808_v12 = vpop.f32.mrb[110].mxu1 }
0x1910   :  { %v3661_v20 = vpop.f32.mrb[108].mxu0  ;;  %v6152_v14 = vpop.f32.mrb[111].mxu1 }
0x1911   :  { %v6409_v0 = vpack.i.bf16 %v3709_v58, %v3661_v20  ;;  %v6133_v29 = vpop.f32.mrb[109].mxu0 }
0x1912   :  { %v3664_v31 = vpop.f32.mrb[110].mxu0 }
0x1913   :  { %v6134_v43 = vpop.f32.mrb[111].mxu0  ;;  %6410 = vrot.lane.b32.xlu1 %v6409_v0, %s6694_s22 }
0x1917   :  { %3854 = vrot.lane.b32.xlu1 %v7537_v36, %s6692_s20 }
0x1918   :  { %v3757_v60 = vpop.f32.mrb[112].mxu0 }
0x1919   :  { %v6414_v49 = vpack.i.bf16 %v3805_v17, %v3757_v60  ;;  %v6145_v55 = vpop.f32.mrb[113].mxu0 }
0x191a   :  { %v3760_v33 = vpop.f32.mrb[114].mxu0 }
0x191b   :  { %v6146_v38 = vpop.f32.mrb[115].mxu0  ;;  %6415 = vrot.lane.b32.xlu0 %v6414_v49, %s6695_s23  ;;  %v3933_v33 = vrot.slane %v7560_v19, %v1471_v41 }
0x1952   :  { %v6406_v2 = vpop.permute.xlu0 %6405 }
0x1953   :  { %v6408_v25 = vunpack.i.h.bf16 %v6406_v2  ;;  %v6407_v24 = vunpack.i.l.bf16 %v6406_v2 }
0x1955   :  { %v3836_v50 = vsel %vm486_vm3, %v3517_v63, %v6408_v25  ;;  %v3835_v36 = vsel %vm486_vm3, %v3469_v4, %v6407_v24  ;;  %v3846_v63 = vrot.slane %v7560_v19, %v6801_v30 }
0x1985   :  { %v6411_v32 = vpop.permute.xlu1 %6410 }
0x1986   :  { %v6413_v57 = vunpack.i.h.bf16 %v6411_v32  ;;  %v6412_v1 = vunpack.i.l.bf16 %v6411_v32  ;;  %v7806_v32 = vld [vmem:[%s8141_s7 + $0x18] sm:$0xff] }
0x1987   :  { %v3939_v25 = vrot.slane %v7806_v32, %v6774_v16  ;;  %v4012_v16 = vrot.slane %v7560_v19, %v7243_v61 }
0x1988   :  { %v3838_v40 = vsel %vm1375_vm11, %v3836_v50, %v6413_v57  ;;  %v3837_v52 = vsel %vm1375_vm11, %v3835_v36, %v6412_v1 }
0x1989   :  { %v3855_v42 = vpop.permute.xlu1 %3854 }
0x198a   :  { %6156 = vmatpush3.bf16.msra.mxu0 %v3855_v42 }
0x198d   :  { %v6416_v21 = vpop.permute.xlu0 %6415 }
0x198e   :  { %v6418_v47 = vunpack.i.h.bf16 %v6416_v21  ;;  %v6417_v56 = vunpack.i.l.bf16 %v6416_v21 }
0x1990   :  { %v3840_v9 = vsel %vm223_vm7, %v3838_v40, %v6418_v47  ;;  %v3839_v23 = vsel %vm223_vm7, %v3837_v52, %v6417_v56 }
0x1991   :  { %v5594_v34 = vpack.c.bf16 %v3840_v9, %v3839_v23 }
0x1993   :  { %6158 = vmatmul.mubr.msk.bf16.vlgmr.msra.gmra.mrb[116].mxu0 %vm305_vm5, %v5594_v34 }
0x1994   :  { %6173 = vmatprep.mubr.msk.bf16.mxu0 %vm305_vm5, %v7197_v51  ;;  %v7778_v51 = vld [vmem:[%s8139_s5 + $0x34] ss:$12 sps:$4 sm:$0xff]  }
0x1995   :  { %6162 = vmatpush3.bf16.msra.mxu1 %v7778_v51 }
0x1996   :  { %6163 = vmatprep.subr.bf16.mxu1 %v6683_v7 }
0x1a66   :  { %v3895_v4 = vpop.f32.mrb[116].mxu0 }
0x1a67   :  { %v3896_v44 = vadd.f32 %v3895_v4, %v3846_v63  ;;  %v6159_v13 = vpop.f32.mrb[117].mxu0 }
0x1a68   :  { %v3898_v26 = vpop.f32.mrb[118].mxu0 }
0x1a69   :  { %v3902_v62 = vadd.f32 %v3896_v44, %v7547_v35  ;;  %v3899_v6 = vadd.f32 %v3898_v26, %v3846_v63  ;;  %v6160_v37 = vpop.f32.mrb[119].mxu0  ;;  %v7787_v35 = vld [vmem:[%s8139_s5 + $0x4c] ss:$12 sps:$4 sm:$0xff]  }
0x1a6a   :  { %6164 = vmatpush3.bf16.msra.mxu1 %v7787_v35 }
0x1a6b   :  { %v3903_v46 = vadd.f32 %v3899_v6, %v7550_v15  ;;  %v3904_v48 = vsel %vm305_vm5, %v3902_v62, 0.0  ;;  %6177 = vmatprep.subr.bf16.mxu1 %v6683_v7 }
0x1a6c   :  { %3905 = vadd.xlane.f32.xlu0 %v3904_v48 }
0x1a6d   :  { %v3907_v59 = vsel %vm305_vm5, %v3903_v46, 0.0 }
0x1a6e   :  { %3908 = vadd.xlane.f32.xlu1 %v3907_v59 }
0x1a7f   :  { %4013 = vrot.lane.b32.xlu1 %v7778_v51, %s6690_s18 }
0x1af9   :  { %v3906_v15 = vpop.xlane.xlu0 %3905 }
0x1afa   :  { %v3910_v53 = vmul.f32 0.03125, %v3906_v15 }
0x1afb   :  { %v3909_v58 = vpop.xlane.xlu1 %3908 }
0x1afc   :  { %v3912_v10 = vsub.f32 %v3902_v62, %v3910_v53  ;;  %v3911_v28 = vmul.f32 0.03125, %v3909_v58  ;;  %v3949_v62 = vrot.slane %v7560_v19, %v7257_v11 }
0x1afe   :  { %v3913_v5 = vsub.f32 %v3903_v46, %v3911_v28  ;;  %v3914_v17 = vmul.f32 %v3912_v10, %v3912_v10 }
0x1aff   :  { %v4014_v14 = vpop.permute.xlu1 %4013 }
0x1b00   :  { %v3916_v54 = vsel %vm305_vm5, %v3914_v17, 0.0  ;;  %v3915_v12 = vmul.f32 %v3913_v5, %v3913_v5  ;;  %6169 = vmatprep.subr.bf16.mxu0 %v4014_v14 }
0x1b01   :  { %3917 = vadd.xlane.f32.xlu0 %v3916_v54  ;;  %6170 = vmatpush3.bf16.msra.mxu0 %v4014_v14 }
0x1b02   :  { %v3919_v20 = vsel %vm305_vm5, %v3915_v12, 0.0 }
0x1b05   :  { %3920 = vadd.xlane.f32.xlu0 %v3919_v20 }
0x1b1b   :  { %4015 = vrot.lane.b32.xlu0 %v7787_v35, %s6690_s18 }
0x1b8e   :  { %v3918_v0 = vpop.xlane.xlu0 %3917 }
0x1b8f   :  { %v3922_v29 = vmul.f32 0.03125, %v3918_v0 }
0x1b91   :  { %v3924_v31 = vadd.f32 1e-12, %v3922_v29 }
0x1b92   :  { %v3921_v43 = vpop.xlane.xlu0 %3920 }
0x1b93   :  { %6582 = vrsqrt.f32 %v3924_v31  ;;  %v3923_v60 = vmul.f32 0.03125, %v3921_v43 }
0x1b95   :  { %v3925_v49 = vadd.f32 1e-12, %v3923_v60 }
0x1b96   :  { %v4016_v55 = vpop.permute.xlu0 %4015 }
0x1b97   :  { %6584 = vrsqrt.f32 %v3925_v49  ;;  %6171 = vmatprep.subr.bf16.mxu0 %v4016_v55 }
0x1b98   :  { %6172 = vmatpush3.bf16.msra.mxu0 %v4016_v55 }
0x1b99   :  { %6183 = vmatprep.subr.bf16.mxu0 %v6683_v7 }
0x1b9b   :  { %6174 = vmatmul.mubr.msk.bf16.vlgmr.msra.gmra.mrb[120].mxu0 %vm305_vm5, %v7209_v39 }
0x1b9c   :  { %6185 = vmatprep.mubr.msk.bf16.mxu0 %vm6686_vm1, %v6683_v7 }
0x1b9d   :  { %v6583_v38 = vpop.eup %6582 }
0x1b9e   :  { %v3928_v2 = vmul.f32 %v6583_v38, %v3912_v10 }
0x1ba0   :  { %v3934_v42 = vmul.f32 %v3933_v33, %v3928_v2 }
0x1ba1   :  { %v6585_v24 = vpop.eup %6584 }
0x1ba2   :  { %v3929_v39 = vmul.f32 %v6585_v24, %v3913_v5  ;;  %v3940_v1 = vadd.f32 %v3939_v25, %v3934_v42 }
0x1ba4   :  { %v3935_v57 = vmul.f32 %v3933_v33, %v3929_v39  ;;  %v7811_v41 = vmul.f32 %v3940_v1, %v7225_v45 }
0x1ba6   :  { %v3941_v21 = vadd.f32 %v3939_v25, %v3935_v57 }
0x1ba8   :  { %v7814_v50 = vmul.f32 %v3941_v21, %v7229_v27 }
0x1baa   :  { %v5595_v36 = vpack.c.bf16 %v7814_v50, %v7811_v41 }
0x1bac   :  { %6166 = vmatmul.mubr.msk.bf16.vlgmr.msra.gmra.mrb[112].mxu1 %vm305_vm5, %v5595_v36 }
0x1bad   :  { %6179 = vmatprep.mubr.msk.bf16.mxu1 %vm6686_vm1, %v6683_v7 }
0x1c6e   :  { %v6175_v47 = vpop.f32.mrb[120].mxu0 }
0x1c6f   :  { %v4062_v56 = vadd.f32 %v6175_v47, %v4012_v16  ;;  %v4053_v40 = vpop.f32.mrb[121].mxu0 }
0x1c70   :  { %v4054_v52 = vadd.f32 %v4053_v40, %v4012_v16  ;;  %v6176_v9 = vpop.f32.mrb[122].mxu0 }
0x1c71   :  { %v4065_v23 = vadd.f32 %v6176_v9, %v4012_v16  ;;  %v4056_v34 = vpop.f32.mrb[123].mxu0 }
0x1c72   :  { %v4057_v63 = vadd.f32 %v4056_v34, %v4012_v16 }
0x1c73   :  { %v7823_v4 = vpack.c.bf16 %v4065_v23, %v4062_v56 }
0x1c74   :  { %v4068_v44 = vpack.c.bf16 %v4057_v63, %v4054_v52 }
0x1c75   :  { %v4148_v13 = vsel %vm486_vm3, %v7823_v4, 0 }
0x1c76   :  { %4086 = vrot.lane.b32.xlu1 %v4068_v44, %s6687_s3  ;;  %4090 = vrot.lane.b32.xlu0 %v4068_v44, %s6688_s16  ;;  %v4102_v26 = vsel %vm486_vm3, %v4068_v44, 0 }
0x1c77   :  { %6184 = vmatpush3.bf16.xpose.msra.mxu0 %v4148_v13  ;;  %6178 = vmatpush3.bf16.xpose.msra.mxu1 %v4102_v26 }
0x1c78   :  { %6189 = vmatprep.subr.bf16.mxu1 %v6683_v7  ;;  %6195 = vmatprep.subr.bf16.mxu0 %v6683_v7 }
0x1c7a   :  { %4088 = vrot.lane.b32.xlu1 %v7823_v4, %s6687_s3 }
0x1c7e   :  { %4092 = vrot.lane.b32.xlu1 %v7823_v4, %s6688_s16 }
0x1c7f   :  { %v4000_v6 = vpop.f32.mrb[112].mxu1 }
0x1c80   :  { %v4001_v37 = vadd.f32 %v4000_v6, %v3949_v62  ;;  %v6167_v46 = vpop.f32.mrb[113].mxu1 }
0x1c81   :  { %v4003_v48 = vpop.f32.mrb[114].mxu1 }
0x1c82   :  { %v4007_v59 = vpack.c.bf16 %v4001_v37, %v4001_v37  ;;  %v4004_v15 = vadd.f32 %v4003_v48, %v3949_v62  ;;  %v6168_v53 = vpop.f32.mrb[115].mxu1 }
0x1c84   :  { %v4008_v58 = vpack.c.bf16 %v4004_v15, %v4004_v15  ;;  %4072 = vrot.lane.b32.xlu0 %v4007_v59, %s6687_s3  ;;  %6180 = vmatmul.mubr.msk.bf16.vlgmr.msra.gmra.mrb[116].mxu1 %vm486_vm3, %v4007_v59 }
0x1c85   :  { %6191 = vmatprep.mubr.msk.bf16.mxu1 %vm6686_vm1, %v6683_v7 }
0x1c86   :  { %4074 = vrot.lane.b32.xlu1 %v4008_v58, %s6687_s3  ;;  %6186 = vmatmul.mubr.msk.bf16.vlgmr.msra.gmra.mrb[124].mxu0 %vm486_vm3, %v4008_v58 }
0x1c87   :  { %6197 = vmatprep.mubr.msk.bf16.mxu0 %vm6686_vm1, %v6683_v7 }
0x1c88   :  { %4076 = vrot.lane.b32.xlu0 %v4007_v59, %s6688_s16 }
0x1c8a   :  { %4078 = vrot.lane.b32.xlu1 %v4008_v58, %s6688_s16 }
0x1c8c   :  { %4094 = vrot.lane.b32.xlu0 %v4068_v44, %s6689_s17 }
0x1c8e   :  { %4096 = vrot.lane.b32.xlu1 %v7823_v4, %s6689_s17 }
0x1c90   :  { %4080 = vrot.lane.b32.xlu0 %v4007_v59, %s6689_s17 }
0x1c92   :  { %4082 = vrot.lane.b32.xlu1 %v4008_v58, %s6689_s17 }
0x1c96   :  { %4562 = vrot.lane.b32.xlu1 %v4068_v44, %s6690_s18 }
0x1ce8   :  { %v7854_v19 = vpop.permute.xlu1 %4086  ;;  %v7864_v17 = vpop.permute.xlu0 %4090 }
0x1ce9   :  { %v4194_v10 = vsel %vm486_vm3, %v7854_v19, 0  ;;  %v4286_v20 = vsel %vm486_vm3, %v7864_v17, 0 }
0x1cea   :  { %6190 = vmatpush3.bf16.xpose.msra.mxu1 %v4194_v10 }
0x1ceb   :  { %6201 = vmatprep.subr.bf16.mxu1 %v6683_v7 }
0x1cec   :  { %v7859_v28 = vpop.permute.xlu1 %4088 }
0x1ced   :  { %v4240_v5 = vsel %vm486_vm3, %v7859_v28, 0 }
0x1cee   :  { %6196 = vmatpush3.bf16.xpose.msra.mxu0 %v4240_v5 }
0x1cef   :  { %6207 = vmatprep.subr.bf16.mxu0 %v6683_v7 }
0x1cf0   :  { %v7866_v54 = vpop.permute.xlu1 %4092 }
0x1cf1   :  { %v4332_v0 = vsel %vm486_vm3, %v7866_v54, 0 }
0x1cf6   :  { %v4073_v12 = vpop.permute.xlu0 %4072 }
0x1cf7   :  { %6192 = vmatmul.mubr.msk.bf16.vlgmr.msra.gmra.mrb[120].mxu1 %vm486_vm3, %v4073_v12 }
0x1cf8   :  { %6202 = vmatpush3.bf16.xpose.msra.mxu1 %v4286_v20  ;;  %v4075_v14 = vpop.permute.xlu1 %4074  ;;  %6203 = vmatprep.mubr.msk.bf16.mxu1 %vm6686_vm1, %v6683_v7 }
0x1cf9   :  { %6198 = vmatmul.mubr.msk.bf16.vlgmr.msra.gmra.mrb[128].mxu0 %vm486_vm3, %v4075_v14  ;;  %6213 = vmatprep.subr.bf16.mxu1 %v6683_v7 }
0x1cfa   :  { %6208 = vmatpush3.bf16.xpose.msra.mxu0 %v4332_v0  ;;  %v4077_v29 = vpop.permute.xlu0 %4076  ;;  %6209 = vmatprep.mubr.msk.bf16.mxu0 %vm6686_vm1, %v6683_v7 }
0x1cfb   :  { %6219 = vmatprep.subr.bf16.mxu0 %v6683_v7 }
0x1cfc   :  { %v4079_v31 = vpop.permute.xlu1 %4078 }
0x1cfe   :  { %v7880_v43 = vpop.permute.xlu0 %4094 }
0x1cff   :  { %v4378_v60 = vsel %vm486_vm3, %v7880_v43, 0  ;;  %6204 = vmatmul.mubr.msk.bf16.vlgmr.msra.gmra.mrb[124].mxu1 %vm486_vm3, %v4077_v29 }
0x1d00   :  { %6214 = vmatpush3.bf16.xpose.msra.mxu1 %v4378_v60  ;;  %v7885_v49 = vpop.permute.xlu1 %4096  ;;  %6215 = vmatprep.mubr.msk.bf16.mxu1 %vm6686_vm1, %v6683_v7 }
0x1d01   :  { %v4424_v55 = vsel %vm486_vm3, %v7885_v49, 0  ;;  %6210 = vmatmul.mubr.msk.bf16.vlgmr.msra.gmra.mrb[132].mxu0 %vm486_vm3, %v4079_v31  ;;  %6225 = vmatprep.subr.bf16.mxu1 %v6683_v7 }
0x1d02   :  { %6220 = vmatpush3.bf16.xpose.msra.mxu0 %v4424_v55  ;;  %6221 = vmatprep.mubr.msk.bf16.mxu0 %vm6686_vm1, %v6683_v7  ;;  %v4081_v38 = vpop.permute.xlu0 %4080 }
0x1d03   :  { %6231 = vmatprep.subr.bf16.mxu0 %v6683_v7 }
0x1d04   :  { %v4083_v33 = vpop.permute.xlu1 %4082 }
0x1d07   :  { %6216 = vmatmul.mubr.msk.bf16.vlgmr.msra.gmra.mrb[128].mxu1 %vm486_vm3, %v4081_v38 }
0x1d08   :  { %v4563_v2 = vpop.permute.xlu1 %4562  ;;  %6227 = vmatprep.mubr.msk.bf16.mxu1 %vm6686_vm1, %v6683_v7 }
0x1d09   :  { %6222 = vmatmul.mubr.msk.bf16.vlgmr.msra.gmra.mrb[136].mxu0 %vm486_vm3, %v4083_v33  ;;  %6226 = vmatpush3.bf16.msra.mxu1 %v4563_v2 }
0x1d0a   :  { %6233 = vmatprep.mubr.msk.bf16.mxu0 %vm6686_vm1, %v6683_v7  ;;  %6237 = vmatprep.subr.bf16.mxu1 %v6683_v7 }
0x1d57   :  { %v4138_v42 = vpop.f32.mrb[116].mxu1 }
0x1d58   :  { %v6181_v25 = vpop.f32.mrb[117].mxu1  ;;  %v4466_v24 = vsel %vm1375_vm11, %v4138_v42, -inf }
0x1d59   :  { %v4184_v39 = vpop.f32.mrb[124].mxu0  ;;  %4467 = vmax.xlane.f32.xlu0 %v4466_v24  ;;  %v4141_v57 = vpop.f32.mrb[118].mxu1 }
0x1d5a   :  { %v6182_v1 = vpop.f32.mrb[119].mxu1  ;;  %v6187_v21 = vpop.f32.mrb[125].mxu0  ;;  %v4469_v36 = vsel %vm1375_vm11, %v4184_v39, -inf }
0x1d5b   :  { %4470 = vmax.xlane.f32.xlu1 %v4469_v36  ;;  %v4187_v16 = vpop.f32.mrb[126].mxu0 }
0x1d5c   :  { %v6188_v47 = vpop.f32.mrb[127].mxu0 }
0x1dca   :  { %v4230_v56 = vpop.f32.mrb[120].mxu1 }
0x1dcb   :  { %v6193_v40 = vpop.f32.mrb[121].mxu1  ;;  %v4472_v52 = vsel %vm1375_vm11, %v4230_v56, -inf }
0x1dcc   :  { %v4276_v9 = vpop.f32.mrb[128].mxu0  ;;  %4473 = vmax.xlane.f32.xlu0 %v4472_v52  ;;  %v4233_v23 = vpop.f32.mrb[122].mxu1 }
0x1dcd   :  { %v6194_v34 = vpop.f32.mrb[123].mxu1  ;;  %v6199_v63 = vpop.f32.mrb[129].mxu0  ;;  %v4475_v26 = vsel %vm1375_vm11, %v4276_v9, -inf }
0x1dce   :  { %v4279_v44 = vpop.f32.mrb[130].mxu0 }
0x1dcf   :  { %v6200_v13 = vpop.f32.mrb[131].mxu0 }
0x1dd0   :  { %4476 = vmax.xlane.f32.xlu0 %v4475_v26 }
0x1dd2   :  { %v7907_v62 = vpop.f32.mrb[124].mxu1 }
0x1dd3   :  { %v6205_v6 = vpop.f32.mrb[125].mxu1  ;;  %v4478_v37 = vsel %vm1375_vm11, %v7907_v62, -inf }
0x1dd4   :  { %v7911_v46 = vpop.f32.mrb[132].mxu0  ;;  %4479 = vmax.xlane.f32.xlu1 %v4478_v37  ;;  %v4325_v48 = vpop.f32.mrb[126].mxu1 }
0x1dd5   :  { %v6206_v59 = vpop.f32.mrb[127].mxu1  ;;  %v6211_v15 = vpop.f32.mrb[133].mxu0  ;;  %v4481_v53 = vsel %vm1375_vm11, %v7911_v46, -inf }
0x1dd6   :  { %v4371_v58 = vpop.f32.mrb[134].mxu0  ;;  %4482 = vmax.xlane.f32.xlu0 %v4481_v53 }
0x1dd7   :  { %v6212_v10 = vpop.f32.mrb[135].mxu0 }
0x1dda   :  { %v4414_v5 = vpop.f32.mrb[128].mxu1 }
0x1ddb   :  { %v6217_v12 = vpop.f32.mrb[129].mxu1  ;;  %v4484_v20 = vsel %vm1375_vm11, %v4414_v5, -inf }
0x1ddc   :  { %v4460_v14 = vpop.f32.mrb[136].mxu0  ;;  %4485 = vmax.xlane.f32.xlu1 %v4484_v20  ;;  %v4417_v0 = vpop.f32.mrb[130].mxu1 }
0x1ddd   :  { %v6218_v29 = vpop.f32.mrb[131].mxu1  ;;  %v6223_v31 = vpop.f32.mrb[137].mxu0  ;;  %v4487_v60 = vsel %vm1375_vm11, %v4460_v14, -inf }
0x1dde   :  { %v4463_v55 = vpop.f32.mrb[138].mxu0  ;;  %4488 = vmax.xlane.f32.xlu0 %v4487_v60 }
0x1ddf   :  { %v6224_v33 = vpop.f32.mrb[139].mxu0 }
0x1de6   :  { %v4468_v2 = vpop.xlane.xlu0 %4467 }
0x1de7   :  { %v4490_v24 = vsub.f32 %v4138_v42, %v4468_v2 }
0x1de8   :  { %v4471_v38 = vpop.xlane.xlu1 %4470 }
0x1de9   :  { %v4491_v25 = vsub.f32 %v4184_v39, %v4471_v38  ;;  %v4498_v1 = vmul.f32 1.442695, %v4490_v24 }
0x1deb   :  { %v4500_v57 = vmul.f32 1.442695, %v4491_v25 }
0x1ded   :  { %4654 = vrot.lane.b32.xlu1 %v7854_v19, %s6690_s18  ;;  %6586 = vpow2.f32 %v4500_v57 }
0x1dee   :  { %6588 = vpow2.f32 %v4498_v1 }
0x1df1   :  { %4700 = vrot.lane.b32.xlu1 %v7859_v28, %s6690_s18 }
0x1df4   :  { %4608 = vrot.lane.b32.xlu0 %v7823_v4, %s6690_s18 }
0x1df7   :  { %v6587_v21 = vpop.eup %6586 }
0x1df8   :  { %v6589_v36 = vpop.eup %6588  ;;  %v4517_v16 = vsel %vm1375_vm11, %v6587_v21, 0.0 }
0x1df9   :  { %v4514_v19 = vsel %vm1375_vm11, %v6589_v36, 0.0 }
0x1e13   :  { %4518 = vadd.xlane.f32.xlu0 %v4517_v16 }
0x1e15   :  { %4515 = vadd.xlane.f32.xlu1 %v4514_v19 }
0x1e59   :  { %v4474_v28 = vpop.xlane.xlu0 %4473 }
0x1e5a   :  { %v4492_v47 = vsub.f32 %v4230_v56, %v4474_v28 }
0x1e5c   :  { %v4502_v40 = vmul.f32 1.442695, %v4492_v47 }
0x1e5d   :  { %v4477_v4 = vpop.xlane.xlu0 %4476 }
0x1e5e   :  { %6590 = vpow2.f32 %v4502_v40  ;;  %v4493_v52 = vsub.f32 %v4276_v9, %v4477_v4 }
0x1e60   :  { %v4504_v39 = vmul.f32 1.442695, %v4493_v52 }
0x1e61   :  { %v4480_v9 = vpop.xlane.xlu1 %4479 }
0x1e62   :  { %6592 = vpow2.f32 %v4504_v39  ;;  %v4494_v26 = vsub.f32 %v7907_v62, %v4480_v9 }
0x1e63   :  { %v4483_v42 = vpop.xlane.xlu0 %4482 }
0x1e64   :  { %v4495_v37 = vsub.f32 %v7911_v46, %v4483_v42  ;;  %v4506_v48 = vmul.f32 1.442695, %v4494_v26 }
0x1e66   :  { %v4508_v15 = vmul.f32 1.442695, %v4495_v37  ;;  %6594 = vpow2.f32 %v4506_v48 }
0x1e68   :  { %v7925_v23 = vpop.eup %6590  ;;  %6596 = vpow2.f32 %v4508_v15 }
0x1e69   :  { %v4520_v34 = vsel %vm1375_vm11, %v7925_v23, 0.0  ;;  %v4486_v6 = vpop.xlane.xlu1 %4485 }
0x1e6a   :  { %4521 = vadd.xlane.f32.xlu1 %v4520_v34  ;;  %v4496_v59 = vsub.f32 %v4414_v5, %v4486_v6 }
0x1e6b   :  { %v4489_v63 = vpop.xlane.xlu0 %4488 }
0x1e6c   :  { %v7929_v44 = vpop.eup %6592  ;;  %v4510_v53 = vmul.f32 1.442695, %v4496_v59  ;;  %v4497_v58 = vsub.f32 %v4460_v14, %v4489_v63 }
0x1e6d   :  { %v4523_v13 = vsel %vm1375_vm11, %v7929_v44, 0.0  ;;  %v4655_v12 = vpop.permute.xlu1 %4654 }
0x1e6e   :  { %4524 = vadd.xlane.f32.xlu0 %v4523_v13  ;;  %6598 = vpow2.f32 %v4510_v53  ;;  %v4512_v10 = vmul.f32 1.442695, %v4497_v58 }
0x1e6f   :  { %v4609_v56 = vpop.permute.xlu0 %4608 }
0x1e70   :  { %6232 = vmatpush3.bf16.msra.mxu0 %v4609_v56  ;;  %6600 = vpow2.f32 %v4512_v10 }
0x1e71   :  { %6243 = vmatprep.subr.bf16.mxu0 %v6683_v7  ;;  %v4701_v20 = vpop.permute.xlu1 %4700 }
0x1e7b   :  { %4792 = vrot.lane.b32.xlu1 %v7866_v54, %s6690_s18  ;;  %v7940_v54 = vpop.eup %6594 }
0x1e7c   :  { %v4526_v62 = vsel %vm1375_vm11, %v7940_v54, 0.0 }
0x1e84   :  { %4746 = vrot.lane.b32.xlu0 %v7864_v17, %s6690_s18  ;;  %v7942_v17 = vpop.eup %6596 }
0x1e85   :  { %v7946_v46 = vpop.eup %6598  ;;  %v4529_v14 = vsel %vm1375_vm11, %v7942_v17, 0.0 }
0x1e86   :  { %v4532_v29 = vsel %vm1375_vm11, %v7946_v46, 0.0  ;;  %v7952_v31 = vpop.eup %6600 }
0x1e87   :  { %v4535_v60 = vsel %vm1375_vm11, %v7952_v31, 0.0 }
0x1e9f   :  { %4527 = vadd.xlane.f32.xlu1 %v4526_v62 }
0x1ea0   :  { %v4519_v5 = vpop.xlane.xlu0 %4518 }
0x1ea1   :  { %6602 = vrcp.f32 %v4519_v5 }
0x1ea2   :  { %v4516_v0 = vpop.xlane.xlu1 %4515 }
0x1ea3   :  { %6604 = vrcp.f32 %v4516_v0  ;;  %4530 = vadd.xlane.f32.xlu0 %v4529_v14  ;;  %4533 = vadd.xlane.f32.xlu1 %v4532_v29 }
0x1ea7   :  { %4536 = vadd.xlane.f32.xlu0 %v4535_v60 }
0x1eab   :  { %v6603_v55 = vpop.eup %6602 }
0x1eac   :  { %v4547_v33 = vmul.f32 %v6603_v55, %v6587_v21 }
0x1ead   :  { %v6605_v38 = vpop.eup %6604 }
0x1eae   :  { %v4546_v2 = vmul.f32 %v6605_v38, %v6589_v36  ;;  %v4555_v25 = vpack.c.bf16 %v4547_v33, %v4547_v33 }
0x1eb0   :  { %6234 = vmatmul.mubr.msk.bf16.vlgmr.msra.gmra.mrb[140].mxu0 %vm1375_vm11, %v4555_v25  ;;  %v4554_v24 = vpack.c.bf16 %v4546_v2, %v4546_v2 }
0x1eb1   :  { %6244 = vmatpush3.bf16.msra.mxu0 %v4701_v20  ;;  %6245 = vmatprep.mubr.msk.bf16.mxu0 %vm6686_vm1, %v6683_v7 }
0x1eb2   :  { %6228 = vmatmul.mubr.msk.bf16.vlgmr.msra.gmra.mrb[132].mxu1 %vm1375_vm11, %v4554_v24  ;;  %6255 = vmatprep.subr.bf16.mxu0 %v6683_v7 }
0x1eb3   :  { %6238 = vmatpush3.bf16.msra.mxu1 %v4655_v12  ;;  %6239 = vmatprep.mubr.msk.bf16.mxu1 %vm6686_vm1, %v6683_v7 }
0x1eb4   :  { %4884 = vrot.lane.b32.xlu1 %v7885_v49, %s6690_s18  ;;  %6249 = vmatprep.subr.bf16.mxu1 %v6683_v7 }
0x1ebd   :  { %4838 = vrot.lane.b32.xlu0 %v7880_v43, %s6690_s18 }
0x1ec1   :  { %4971 = vrot.lane.b32.xlu0 %v7778_v51, %s6692_s20 }
0x1ef7   :  { %v4522_v57 = vpop.xlane.xlu1 %4521 }
0x1ef8   :  { %6606 = vrcp.f32 %v4522_v57 }
0x1efb   :  { %v4525_v1 = vpop.xlane.xlu0 %4524  ;;  %v4793_v51 = vpop.permute.xlu1 %4792 }
0x1efc   :  { %6608 = vrcp.f32 %v4525_v1 }
0x1eff   :  { %v4747_v49 = vpop.permute.xlu0 %4746 }
0x1f02   :  { %v6607_v21 = vpop.eup %6606 }
0x1f03   :  { %v4548_v36 = vmul.f32 %v6607_v21, %v7925_v23 }
0x1f05   :  { %v4556_v16 = vpack.c.bf16 %v4548_v36, %v4548_v36 }
0x1f06   :  { %v6609_v19 = vpop.eup %6608 }
0x1f07   :  { %v4549_v28 = vmul.f32 %v6609_v19, %v7929_v44  ;;  %6240 = vmatmul.mubr.msk.bf16.vlgmr.msra.gmra.mrb[136].mxu1 %vm1375_vm11, %v4556_v16 }
0x1f08   :  { %6250 = vmatpush3.bf16.msra.mxu1 %v4747_v49  ;;  %6251 = vmatprep.mubr.msk.bf16.mxu1 %vm6686_vm1, %v6683_v7 }
0x1f09   :  { %v4557_v43 = vpack.c.bf16 %v4549_v28, %v4549_v28  ;;  %6261 = vmatprep.subr.bf16.mxu1 %v6683_v7 }
0x1f0b   :  { %6246 = vmatmul.mubr.msk.bf16.vlgmr.msra.gmra.mrb[144].mxu0 %vm1375_vm11, %v4557_v43 }
0x1f0c   :  { %6256 = vmatpush3.bf16.msra.mxu0 %v4793_v51  ;;  %6257 = vmatprep.mubr.msk.bf16.mxu0 %vm6686_vm1, %v6683_v7 }
0x1f0d   :  { %6267 = vmatprep.subr.bf16.mxu0 %v6683_v7 }
0x1f2c   :  { %v4528_v47 = vpop.xlane.xlu1 %4527 }
0x1f2d   :  { %6610 = vrcp.f32 %v4528_v47 }
0x1f30   :  { %v4531_v40 = vpop.xlane.xlu0 %4530  ;;  %v4534_v4 = vpop.xlane.xlu1 %4533 }
0x1f31   :  { %6612 = vrcp.f32 %v4531_v40 }
0x1f32   :  { %6614 = vrcp.f32 %v4534_v4 }
0x1f34   :  { %v4537_v52 = vpop.xlane.xlu0 %4536  ;;  %v4885_v6 = vpop.permute.xlu1 %4884 }
0x1f35   :  { %6616 = vrcp.f32 %v4537_v52 }
0x1f37   :  { %v6611_v39 = vpop.eup %6610 }
0x1f38   :  { %v4550_v42 = vmul.f32 %v6611_v39, %v7940_v54  ;;  %v4839_v13 = vpop.permute.xlu0 %4838 }
0x1f3a   :  { %v4558_v23 = vpack.c.bf16 %v4550_v42, %v4550_v42 }
0x1f3b   :  { %v6613_v34 = vpop.eup %6612 }
0x1f3c   :  { %v6615_v63 = vpop.eup %6614  ;;  %v4551_v44 = vmul.f32 %v6613_v34, %v7942_v17  ;;  %6252 = vmatmul.mubr.msk.bf16.vlgmr.msra.gmra.mrb[140].mxu1 %vm1375_vm11, %v4558_v23  ;;  %v4972_v62 = vpop.permute.xlu0 %4971 }
0x1f3d   :  { %6262 = vmatpush3.bf16.msra.mxu1 %v4839_v13  ;;  %6263 = vmatprep.mubr.msk.bf16.mxu1 %vm6686_vm1, %v6683_v7  ;;  %v4552_v56 = vmul.f32 %v6615_v63, %v7946_v46 }
0x1f3e   :  { %v4559_v9 = vpack.c.bf16 %v4551_v44, %v4551_v44  ;;  %6273 = vmatprep.subr.bf16.mxu1 %v6683_v7 }
0x1f3f   :  { %v6617_v26 = vpop.eup %6616  ;;  %v4560_v48 = vpack.c.bf16 %v4552_v56, %v4552_v56 }
0x1f40   :  { %6258 = vmatmul.mubr.msk.bf16.vlgmr.msra.gmra.mrb[148].mxu0 %vm1375_vm11, %v4559_v9  ;;  %v4553_v37 = vmul.f32 %v6617_v26, %v7952_v31 }
0x1f41   :  { %6268 = vmatpush3.bf16.msra.mxu0 %v4885_v6  ;;  %6269 = vmatprep.mubr.msk.bf16.mxu0 %vm6686_vm1, %v6683_v7 }
0x1f42   :  { %6281 = vmatprep.subr.bf16.mxu0 %v6683_v7  ;;  %v4561_v59 = vpack.c.bf16 %v4553_v37, %v4553_v37 }
0x1f44   :  { %6264 = vmatmul.mubr.msk.bf16.vlgmr.msra.gmra.mrb[144].mxu1 %vm1375_vm11, %v4560_v48 }
0x1f45   :  { %6277 = vmatprep.mubr.msk.bf16.mxu1 %vm6686_vm1, %v6683_v7  ;;  %6274 = vmatpush3.bf16.msra.mxu1 %v4972_v62 }
0x1f46   :  { %6275 = vmatprep.subr.bf16.mxu1 %v6683_v7 }
0x1f48   :  { %6270 = vmatmul.mubr.msk.bf16.vlgmr.msra.gmra.mrb[152].mxu0 %vm1375_vm11, %v4561_v59 }
0x1f49   :  { %6285 = vmatprep.mubr.msk.bf16.mxu0 %vm6686_vm1, %v6683_v7 }
0x1f83   :  { %v4648_v15 = vpop.f32.mrb[140].mxu0 }
0x1f84   :  { %v6235_v53 = vpop.f32.mrb[141].mxu0 }
0x1f85   :  { %v4602_v58 = vpop.f32.mrb[132].mxu1  ;;  %v4651_v10 = vpop.f32.mrb[142].mxu0 }
0x1f86   :  { %v6229_v12 = vpop.f32.mrb[133].mxu1  ;;  %v6236_v54 = vpop.f32.mrb[143].mxu0 }
0x1f87   :  { %v4605_v17 = vpop.f32.mrb[134].mxu1 }
0x1f88   :  { %v6230_v20 = vpop.f32.mrb[135].mxu1 }
0x1fda   :  { %v4694_v46 = vpop.f32.mrb[136].mxu1 }
0x1fdb   :  { %v6241_v5 = vpop.f32.mrb[137].mxu1 }
0x1fdc   :  { %v4697_v0 = vpop.f32.mrb[138].mxu1 }
0x1fdd   :  { %v6242_v14 = vpop.f32.mrb[139].mxu1 }
0x1fde   :  { %v4740_v29 = vpop.f32.mrb[144].mxu0 }
0x1fdf   :  { %v6419_v31 = vpack.i.bf16 %v4740_v29, %v4694_v46  ;;  %v6247_v60 = vpop.f32.mrb[145].mxu0 }
0x1fe0   :  { %v4743_v55 = vpop.f32.mrb[146].mxu0 }
0x1fe1   :  { %v6248_v33 = vpop.f32.mrb[147].mxu0  ;;  %6420 = vrot.lane.b32.xlu1 %v6419_v31, %s6693_s21 }
0x200f   :  { %v4786_v38 = vpop.f32.mrb[140].mxu1 }
0x2010   :  { %v6253_v2 = vpop.f32.mrb[141].mxu1 }
0x2011   :  { %v4789_v25 = vpop.f32.mrb[142].mxu1 }
0x2012   :  { %v6254_v24 = vpop.f32.mrb[143].mxu1 }
0x2013   :  { %v4832_v57 = vpop.f32.mrb[148].mxu0 }
0x2014   :  { %v6424_v1 = vpack.i.bf16 %v4832_v57, %v4786_v38  ;;  %v6259_v21 = vpop.f32.mrb[149].mxu0 }
0x2015   :  { %v4835_v36 = vpop.f32.mrb[150].mxu0 }
0x2016   :  { %v6260_v16 = vpop.f32.mrb[151].mxu0  ;;  %6425 = vrot.lane.b32.xlu0 %v6424_v1, %s6694_s22  ;;  %v6457_v1 = vld [vmem:[%s8139_s5 + $0x50] ss:$12 sps:$4 sm:$0xff]  }
0x2017   :  { %v4878_v19 = vpop.f32.mrb[144].mxu1 }
0x2018   :  { %v6265_v28 = vpop.f32.mrb[145].mxu1 }
0x2019   :  { %v4881_v49 = vpop.f32.mrb[146].mxu1 }
0x201a   :  { %v6266_v43 = vpop.f32.mrb[147].mxu1  ;;  %4973 = vrot.lane.b32.xlu0 %v7787_v35, %s6692_s20 }
0x201b   :  { %v4924_v51 = vpop.f32.mrb[152].mxu0  ;;  %v5052_v43 = vrot.slane %v7806_v32, %v6801_v30  ;;  %v6458_v30 = vld [vmem:[%s8140_s6 + $0x40] sm:$0xff]  }
0x201c   :  { %v6429_v47 = vpack.i.bf16 %v4924_v51, %v4878_v19  ;;  %v6271_v40 = vpop.f32.mrb[153].mxu0 }
0x201d   :  { %v4927_v4 = vpop.f32.mrb[154].mxu0  ;;  %v5058_v40 = vrot.slane %v7806_v32, %v7257_v11  ;;  %v6459_v11 = vld [vmem:[%s8140_s6 + $0x48] sm:$0xff]  }
0x201e   :  { %v6272_v52 = vpop.f32.mrb[155].mxu0  ;;  %6430 = vrot.lane.b32.xlu1 %v6429_v47, %s6695_s23 }
0x2053   :  { %v6421_v42 = vpop.permute.xlu1 %6420 }
0x2054   :  { %v6423_v34 = vunpack.i.h.bf16 %v6421_v42  ;;  %v6422_v63 = vunpack.i.l.bf16 %v6421_v42 }
0x2056   :  { %v4955_v35 = vsel %vm486_vm3, %v4648_v15, %v6423_v34  ;;  %v4954_v9 = vsel %vm486_vm3, %v4602_v58, %v6422_v63  ;;  %v8017_v15 = vld [vmem:[%s8141_s7 + $0x10] sm:$0xff] }
0x2057   :  { %v4965_v58 = vrot.slane %v8017_v15, %v7442_v18 }
0x2088   :  { %v6426_v39 = vpop.permute.xlu0 %6425 }
0x2089   :  { %v6428_v44 = vunpack.i.h.bf16 %v6426_v39  ;;  %v6427_v13 = vunpack.i.l.bf16 %v6426_v39 }
0x208b   :  { %v4957_v37 = vsel %vm1375_vm11, %v4955_v35, %v6428_v44  ;;  %v4956_v48 = vsel %vm1375_vm11, %v4954_v9, %v6427_v13  ;;  %v6461_v35 = vld [vmem:[%s8140_s6 + $0x58] sm:$0xff]   ;;  %v6462_v9 = vld [vmem:[%s8140_s6 + $0x60] sm:$0xff]  }
0x208c   :  { %v4974_v23 = vpop.permute.xlu0 %4973 }
0x208d   :  { %6276 = vmatpush3.bf16.msra.mxu1 %v4974_v23 }
0x208e   :  { %6289 = vmatprep.subr.bf16.mxu1 %v6683_v7 }
0x2090   :  { %v6431_v56 = vpop.permute.xlu1 %6430 }
0x2091   :  { %v6433_v26 = vunpack.i.h.bf16 %v6431_v56  ;;  %v6432_v6 = vunpack.i.l.bf16 %v6431_v56  ;;  %v6460_v56 = vld [vmem:[%s8140_s6 + $0x50] sm:$0xff]  }
0x2093   :  { %v4959_v59 = vsel %vm223_vm7, %v4957_v37, %v6433_v26  ;;  %v4958_v53 = vsel %vm223_vm7, %v4956_v48, %v6432_v6  ;;  %v6463_v26 = vld [vmem:[%s8140_s6 + $0x68] sm:$0xff]   ;;  %v6464_v6 = vld [vmem:[%s8140_s6 + $0x70] sm:$0xff]   ;;  %v6465_v37 = vld [vmem:[%s8140_s6 + $0x78] sm:$0xff]   ;;  %v5068_v48 = vrot.slane %v8017_v15, %v2612_v3 }
0x2094   :  { %v5596_v10 = vpack.c.bf16 %v4959_v59, %v4958_v53 }
0x2096   :  { %6278 = vmatmul.mubr.msk.bf16.vlgmr.msra.gmra.mrb[148].mxu1 %vm305_vm5, %v5596_v10 }
0x2097   :  { %6305 = vmatprep.mubr.msk.bf16.mxu1 %vm6686_vm1, %v6683_v7  ;;  %6290 = vmatpush3.bf16.msra.mxu1 %v6458_v30  ;;  %v5313_v30 = vld [vmem:[%s8138_s4 + $0x18] sm:$0xff] }
0x2098   :  { %6291 = vmatprep.subr.bf16.mxu1 %v6683_v7 }
0x209b   :  { %6292 = vmatpush3.bf16.msra.mxu1 %v6459_v11 }
0x209c   :  { %6293 = vmatprep.subr.bf16.mxu1 %v6683_v7 }
0x209f   :  { %6294 = vmatpush3.bf16.msra.mxu1 %v6460_v56 }
0x20a0   :  { %6295 = vmatprep.subr.bf16.mxu1 %v6683_v7 }
0x20a3   :  { %6296 = vmatpush3.bf16.msra.mxu1 %v6461_v35 }
0x20a4   :  { %6297 = vmatprep.subr.bf16.mxu1 %v6683_v7 }
0x20a7   :  { %6298 = vmatpush3.bf16.msra.mxu1 %v6462_v9 }
0x20a8   :  { %6299 = vmatprep.subr.bf16.mxu1 %v6683_v7 }
0x20ab   :  { %6300 = vmatpush3.bf16.msra.mxu1 %v6463_v26 }
0x20ac   :  { %6301 = vmatprep.subr.bf16.mxu1 %v6683_v7 }
0x20af   :  { %6302 = vmatpush3.bf16.msra.mxu1 %v6464_v6 }
0x20b0   :  { %6303 = vmatprep.subr.bf16.mxu1 %v6683_v7 }
0x20b3   :  { %6304 = vmatpush3.bf16.msra.mxu1 %v6465_v37 }
0x2169   :  { %v5014_v12 = vpop.f32.mrb[148].mxu1 }
0x216a   :  { %v5015_v54 = vadd.f32 %v5014_v12, %v4965_v58  ;;  %v6279_v17 = vpop.f32.mrb[149].mxu1 }
0x216b   :  { %v5017_v20 = vpop.f32.mrb[150].mxu1 }
0x216c   :  { %v5021_v62 = vadd.f32 %v5015_v54, %v7811_v41  ;;  %v5018_v46 = vadd.f32 %v5017_v20, %v4965_v58  ;;  %v6280_v5 = vpop.f32.mrb[151].mxu1 }
0x216e   :  { %v5022_v0 = vadd.f32 %v5018_v46, %v7814_v50  ;;  %v5023_v14 = vsel %vm305_vm5, %v5021_v62, 0.0  ;;  %v6456_v50 = vld [vmem:[%s8139_s5 + $0x38] ss:$12 sps:$4 sm:$0xff]  }
0x216f   :  { %5024 = vadd.xlane.f32.xlu1 %v5023_v14  ;;  %6282 = vmatpush3.bf16.msra.mxu0 %v6456_v50 }
0x2170   :  { %v5026_v29 = vsel %vm305_vm5, %v5022_v0, 0.0  ;;  %6283 = vmatprep.subr.bf16.mxu0 %v6683_v7 }
0x2171   :  { %5027 = vadd.xlane.f32.xlu0 %v5026_v29 }
0x2173   :  { %6284 = vmatpush3.bf16.msra.mxu0 %v6457_v1 }
0x21fc   :  { %v5025_v31 = vpop.xlane.xlu1 %5024 }
0x21fd   :  { %v5029_v60 = vmul.f32 0.03125, %v5025_v31 }
0x21fe   :  { %v5028_v55 = vpop.xlane.xlu0 %5027 }
0x21ff   :  { %v5031_v33 = vsub.f32 %v5021_v62, %v5029_v60  ;;  %v5030_v38 = vmul.f32 0.03125, %v5028_v55 }
0x2201   :  { %v5032_v2 = vsub.f32 %v5022_v0, %v5030_v38  ;;  %v5033_v25 = vmul.f32 %v5031_v33, %v5031_v33 }
0x2203   :  { %v5035_v24 = vsel %vm305_vm5, %v5033_v25, 0.0  ;;  %v5034_v41 = vmul.f32 %v5032_v2, %v5032_v2 }
0x2204   :  { %5036 = vadd.xlane.f32.xlu0 %v5035_v24 }
0x2205   :  { %v5038_v57 = vsel %vm305_vm5, %v5034_v41, 0.0 }
0x2206   :  { %5039 = vadd.xlane.f32.xlu1 %v5038_v57  ;;  %v5170_v57 = vrot.slane %v8017_v15, %v2713_v22 }
0x2291   :  { %v5037_v21 = vpop.xlane.xlu0 %5036 }
0x2292   :  { %v5041_v36 = vmul.f32 0.03125, %v5037_v21 }
0x2293   :  { %v5040_v16 = vpop.xlane.xlu1 %5039 }
0x2294   :  { %v5043_v19 = vadd.f32 1e-12, %v5041_v36  ;;  %v5042_v28 = vmul.f32 0.03125, %v5040_v16 }
0x2296   :  { %6618 = vrsqrt.f32 %v5043_v19  ;;  %v5044_v49 = vadd.f32 1e-12, %v5042_v28 }
0x2298   :  { %6620 = vrsqrt.f32 %v5044_v49 }
0x22a0   :  { %v6619_v51 = vpop.eup %6618 }
0x22a1   :  { %v5047_v47 = vmul.f32 %v6619_v51, %v5031_v33 }
0x22a2   :  { %v6621_v4 = vpop.eup %6620 }
0x22a3   :  { %v5053_v52 = vmul.f32 %v5052_v43, %v5047_v47  ;;  %v5048_v39 = vmul.f32 %v6621_v4, %v5032_v2 }
0x22a5   :  { %v5054_v42 = vmul.f32 %v5052_v43, %v5048_v39  ;;  %v5059_v23 = vadd.f32 %v5058_v40, %v5053_v52 }
0x22a7   :  { %v5060_v34 = vadd.f32 %v5058_v40, %v5054_v42  ;;  %v5061_v63 = vmul.f32 %v5059_v23, %v7225_v45 }
0x22a9   :  { %v8040_v44 = vmul.f32 %v5060_v34, %v7229_v27  ;;  %v5310_v34 = vld [vmem:[%s8138_s4] sm:$0xff] }
0x22ab   :  { %v5597_v13 = vpack.c.bf16 %v8040_v44, %v5061_v63 }
0x22ad   :  { %6286 = vmatmul.mubr.msk.bf16.vlgmr.msra.gmra.mrb[156].mxu0 %vm305_vm5, %v5597_v13  ;;  %v5312_v13 = vld [vmem:[%s8138_s4 + $0x10] sm:$0xff] }
0x22ae   :  { %v6351_v11 = vpack.c.bf16 %v5313_v30, %v5312_v13 }
0x2380   :  { %v5123_v59 = vpop.f32.mrb[156].mxu0 }
0x2381   :  { %v5124_v53 = vadd.f32 %v5123_v59, %v5068_v48  ;;  %v6287_v10 = vpop.f32.mrb[157].mxu0 }
0x2382   :  { %v5126_v58 = vpop.f32.mrb[158].mxu0  ;;  %v5303_v10 = vrot.slane %v7806_v32, %v7442_v18 }
0x2383   :  { %v5132_v12 = vmul.f32 0.044715, %v5124_v53  ;;  %v5127_v54 = vadd.f32 %v5126_v58, %v5068_v48  ;;  %v6288_v17 = vpop.f32.mrb[159].mxu0  ;;  %v5130_v33 = vmul.f32 0.5, %v5124_v53  ;;  %v5297_v48 = vrot.slane %v7806_v32, %v7243_v61 }
0x2385   :  { %v5134_v20 = vmul.f32 %v5132_v12, %v5124_v53  ;;  %v5133_v62 = vmul.f32 0.044715, %v5127_v54  ;;  %v5131_v38 = vmul.f32 0.5, %v5127_v54 }
0x2387   :  { %v5136_v46 = vmul.f32 %v5134_v20, %v5124_v53  ;;  %v5135_v5 = vmul.f32 %v5133_v62, %v5127_v54 }
0x2389   :  { %v5138_v0 = vadd.f32 %v5136_v46, %v5124_v53  ;;  %v5137_v14 = vmul.f32 %v5135_v5, %v5127_v54 }
0x238b   :  { %v5140_v29 = vmul.f32 0.7978846, %v5138_v0  ;;  %v5139_v7 = vadd.f32 %v5137_v14, %v5127_v54 }
0x238d   :  { %6622 = vtanh.f32 %v5140_v29  ;;  %v5141_v31 = vmul.f32 0.7978846, %v5139_v7 }
0x238f   :  { %6624 = vtanh.f32 %v5141_v31 }
0x2397   :  { %v6623_v60 = vpop.eup %6622 }
0x2398   :  { %v5144_v3 = vadd.f32 1.0, %v6623_v60 }
0x2399   :  { %v6625_v55 = vpop.eup %6624 }
0x239a   :  { %v5145_v2 = vadd.f32 1.0, %v6625_v55  ;;  %v5146_v25 = vmul.f32 %v5144_v3, %v5130_v33 }
0x239c   :  { %v5147_v24 = vmul.f32 %v5145_v2, %v5131_v38 }
0x239e   :  { %v5598_v41 = vpack.c.bf16 %v5147_v24, %v5146_v25 }
0x23a0   :  { %6306 = vmatmul.mubr.bf16.vlgmr.msra.gmra.mrb[152].mxu1 %v5598_v41 }
0x2473   :  { %v5259_v50 = vpop.f32.mrb[152].mxu1 }
0x2474   :  { %v5260_v1 = vadd.f32 %v5259_v50, %v5170_v57  ;;  %v6307_v21 = vpop.f32.mrb[153].mxu1 }
0x2475   :  { %v5262_v36 = vpop.f32.mrb[154].mxu1 }
0x2476   :  { %v5266_v16 = vadd.f32 %v5260_v1, %v5061_v63  ;;  %v5263_v19 = vadd.f32 %v5262_v36, %v5170_v57  ;;  %v6308_v28 = vpop.f32.mrb[155].mxu1  ;;  %v5311_v63 = vld [vmem:[%s8138_s4 + $0x8] sm:$0xff]  ;;  %s6696_s4 = smov [#allocation2]  }
0x2477   :  { %s5403_s17 = sshll.u32 %s6696_s4, 4  ;;  %s5404_s17 = int_to_ptr.vmem [resolvable:$true] %s5403_s17 }
0x2478   :  { %v5267_v49 = vadd.f32 %v5263_v19, %v8040_v44  ;;  %v5268_v43 = vsel %vm305_vm5, %v5266_v16, 0.0  ;;  %v6347_v44 = vpack.c.bf16 %v5311_v63, %v5310_v34  ;;  %s6633_s18 = scalar_lea.vmem %s5404_s17, 256  ;;  %p6638_p1 = scmp.lt.s32.totalorder %s5404_s17, %s5404_s17 }
0x2479   :  { %5269 = vadd.xlane.f32.xlu0 %v5268_v43  ;;  %p6634_p0 = scmp.ne.s32.totalorder %s5404_s17, %s6633_s18  ;;  %p6639_p2 = scmp.lt.s32.totalorder %s6633_s18, %s6633_s18 }
0x247a   :  { %v5271_v51 = vsel %vm305_vm5, %v5267_v49, 0.0  ;;  %6348 = vmatprep.subr.bf16.mxu0 %v6347_v44 }
0x247b   :  { %5272 = vadd.xlane.f32.xlu1 %v5271_v51  ;;  %6350 = vmatpush3.bf16.msra.mxu0 %v6347_v44  ;;  %p6640_p3 = por %p6639_p2, %p6638_p1 }
0x247c   :  { %6352 = vmatprep.subr.bf16.mxu0 %v6351_v11 }
0x247d   :  { %p6641_p4 = pnand %p6640_p3, %p6634_p0 }
0x247f   :  { %6354 = vmatpush3.bf16.msra.mxu0 %v6351_v11 }
0x2506   :  { %v5270_v47 = vpop.xlane.xlu0 %5269 }
0x2507   :  { %v5274_v40 = vmul.f32 0.03125, %v5270_v47 }
0x2508   :  { %v5273_v8 = vpop.xlane.xlu1 %5272 }
0x2509   :  { %v5276_v4 = vsub.f32 %v5266_v16, %v5274_v40  ;;  %v5275_v22 = vmul.f32 0.03125, %v5273_v8 }
0x250b   :  { %v5277_v15 = vsub.f32 %v5267_v49, %v5275_v22  ;;  %v5278_v52 = vmul.f32 %v5276_v4, %v5276_v4 }
0x250d   :  { %v5280_v39 = vsel %vm305_vm5, %v5278_v52, 0.0  ;;  %v5279_v42 = vmul.f32 %v5277_v15, %v5277_v15 }
0x250e   :  { %5281 = vadd.xlane.f32.xlu0 %v5280_v39 }
0x250f   :  { %v5283_v23 = vsel %vm305_vm5, %v5279_v42, 0.0 }
0x2510   :  { %5284 = vadd.xlane.f32.xlu1 %v5283_v23 }
0x259b   :  { %v5282_v56 = vpop.xlane.xlu0 %5281 }
0x259c   :  { %v5286_v35 = vmul.f32 0.03125, %v5282_v56 }
0x259d   :  { %v5285_v9 = vpop.xlane.xlu1 %5284 }
0x259e   :  { %v5288_v26 = vadd.f32 1e-12, %v5286_v35  ;;  %v5287_v6 = vmul.f32 0.03125, %v5285_v9 }
0x25a0   :  { %6626 = vrsqrt.f32 %v5288_v26  ;;  %v5289_v37 = vadd.f32 1e-12, %v5287_v6 }
0x25a2   :  { %6628 = vrsqrt.f32 %v5289_v37 }
0x25aa   :  { %v6627_v59 = vpop.eup %6626 }
0x25ab   :  { %v5292_v53 = vmul.f32 %v6627_v59, %v5276_v4 }
0x25ac   :  { %v6629_v58 = vpop.eup %6628 }
0x25ad   :  { %v5293_v12 = vmul.f32 %v6629_v58, %v5277_v15  ;;  %v5298_v54 = vmul.f32 %v5297_v48, %v5292_v53 }
0x25af   :  { %v5299_v17 = vmul.f32 %v5297_v48, %v5293_v12  ;;  %v5304_v20 = vadd.f32 %v5303_v10, %v5298_v54 }
0x25b1   :  { %v5305_v62 = vadd.f32 %v5303_v10, %v5299_v17  ;;  %v5306_v46 = vmul.f32 %v5304_v20, %v7225_v45 }
0x25b3   :  { %6317 = vmatprep.mubr.msk.f32.mxu0 %vm305_vm5, %v5306_v46  ;;  %5308 = vst.msk [vmem:[#allocation2] sm:$0xff] %vm305_vm5, %v5306_v46  ;;  %v5307_v5 = vmul.f32 %v5305_v62, %v7229_v27 }
0x25b5   :  { %6318 = vmatmul.mubr.msk.f32.vlgmr.msra.gmra.mrb[160].mxu0 %vm305_vm5, %v5307_v5  ;;  %5309 = vst.msk [vmem:[#allocation2 + $0x8] sm:$0xff] %vm305_vm5, %v5307_v5 }
0x25b6   :  { %6644 = shalt.err (!%p6641_p4)
}
0x25b7   :  { %s6645_s22 = scalar_lea.hbm %s8142_s8, 256 }
0x25b8   :  { %p6646_p5 = scmp.ne.s32.totalorder %s8142_s8, %s6645_s22  ;;  %p6649_p6 = scmp.lt.u32.totalorder %s6645_s22, %s8142_s8 }
0x25ba   :  { %p6651_p7 = pnand %p6649_p6, %p6646_p5 }
0x25bc   :  { %6654 = shalt.err (!%p6651_p7)
}
0x25bd   :  { %s6697_s28 = smov 128   ;;  %s6698_s30 = smov [#allocation4]   ;;  %vm5395_vm7 = vcmask 523264  }
0x25be   :  { %5409 = dma.vmem_to_hbm [thread:$0]  %s5404_s17, 256, %s8142_s8, [#allocation3], %s6697_s28, %s6697_s28, %s6693_s21  }
0x25bf   :  { %s5415_s10 = sshll.u32 %s6698_s30, 4  ;;  %s5416_s10 = int_to_ptr.vmem [resolvable:$true] %s5415_s10 }
0x25c0   :  { %s6655_s11 = scalar_lea.vmem %s5416_s10, 256  ;;  %p6660_p9 = scmp.lt.s32.totalorder %s5416_s10, %s5416_s10 }
0x25c1   :  { %p6656_p8 = scmp.ne.s32.totalorder %s5416_s10, %s6655_s11  ;;  %p6661_p10 = scmp.lt.s32.totalorder %s6655_s11, %s6655_s11 }
0x25c3   :  { %p6662_p11 = por %p6661_p10, %p6660_p9 }
0x25c5   :  { %p6663_p12 = pnand %p6662_p11, %p6656_p8 }
0x2688   :  { %v6319_v45 = vpop.f32.mrb[160].mxu0 }
0x2689   :  { %5397 = vst.msk [vmem:[#allocation4 + $0x8] sm:$0xff] %vm5395_vm7, %v6319_v45  ;;  %v5386_v27 = vpop.f32.mrb[161].mxu0 }
0x268a   :  { %5396 = vst.msk [vmem:[#allocation4] sm:$0xff] %vm5395_vm7, %v5386_v27 }
0x268b   :  { %6666 = shalt.err (!%p6663_p12)
}
0x268c   :  { %s6667_s19 = scalar_lea.hbm %s8143_s9, 256 }
0x268d   :  { %p6668_p13 = scmp.ne.s32.totalorder %s8143_s9, %s6667_s19  ;;  %p6671_p0 = scmp.lt.u32.totalorder %s6667_s19, %s8143_s9 }
0x268f   :  { %p6673_p1 = pnand %p6671_p0, %p6668_p13 }
0x2691   :  { %6676 = shalt.err (!%p6673_p1)
}
0x2692   :  { %5421 = dma.vmem_to_hbm [thread:$0]  %s5416_s10, 256, %s8143_s9, [#allocation5], %s6697_s28, %s6697_s28, %s6693_s21  }
0x2693   :  { %6677 = dma.done.wait [#allocation3], 256  }
0x2694   :  { %6678 = vsyncadd [#allocation3], 4294967040 }
0x2695   :  { %6679 = dma.done.wait [#allocation5], 256  }
0x2696   :  { %6680 = vsyncadd [#allocation5], 4294967040 }
0x2697   :  { %5428 = vsyncpa [#allocation3], 1 }
0x2698   :  { %5429 = vsyncpa [#allocation5], 1 }

</bundles_post_ra>
